<compile_context>
chip_gen: v7x
topology: tpu7x:2x2x1
jax: 0.10.0
libtpu: 0.0.40
codegen_flags: <defaults>
</compile_context>

<pallas_src>
import jax
import jax.numpy as jnp
from jax import lax
from jax.experimental import pallas as pl
from jax.experimental.pallas import tpu as pltpu

KS = 5                                   # LBP kernel_size (YRGBL1LBP default)
OC = 64                                  # LBP out_channels
NC = 4                                   # YRGB channels
LUM = (0.29891, 0.58661, 0.11448)        # BT.601 luminance weights
CHARB_EPS = 1.0e-3                       # CharbonnierLoss eps
CLAMP_ETA = 1.0e-3                       # ClampLoss eta
LBP_WEIGHT = 0.4                         # YRGBL1LBP weight
G_ROWS = 8                               # conv output rows per MXU chunk
GG = G_ROWS + KS - 1                     # 12 input rows needed per chunk
GG_PAD = 16                              # sublane-aligned slot per kx shift (bf16 tile)
K_PAD = KS * GG_PAD                      # 80: zero-padded contraction dim


# ---------------------------------------------------------------------------
# deterministic synthetic LBP filter (shape (64, 1, 5, 5)), mirrors
# generate_lbp_kernel: random +-1 sparse filters, filter 0 = pure center tap.
# ---------------------------------------------------------------------------
def generate_lbp_weight(out_channels=OC, in_channels=1, kernel_size=KS,
                        sparsity=0.9, seed=71):
    key = jax.random.PRNGKey(seed)
    k1, k2 = jax.random.split(key)
    shape = (out_channels, in_channels, kernel_size, kernel_size)
    signs = jax.random.bernoulli(k1, 0.5, shape).astype(jnp.float32) * 2.0 - 1.0
    keep = (jax.random.uniform(k2, shape) <= sparsity).astype(jnp.float32)
    w = signs * keep
    w = w.at[0].set(0.0)
    w = w.at[0, :, kernel_size // 2, kernel_size // 2].set(0.5 * kernel_size ** 2)
    return w


# ---------------------------------------------------------------------------
# banded bf16 weight matrix: the 5x5 valid conv of G output rows becomes
#   (G*OC, K_PAD) @ (K_PAD, ncols)
# on lane-shifted input windows staged at 16-row slots:
#   LHS[(g, oc), kx*GG_PAD + iy] = w[oc, iy - g, kx]  for 0 <= iy - g < 5
# (rows iy in [GG, GG_PAD) of every slot are zero; +-1 / 12.5 are bf16-exact)
# ---------------------------------------------------------------------------
def _build_banded_lhs(lbp_kernel, g_rows, gg_pad):
    w = jnp.asarray(lbp_kernel, jnp.float32)[:, 0]       # (OC, KS, KS) [oc,ky,kx]
    w_kxky = jnp.transpose(w, (0, 2, 1))                 # (OC, KS, KS) [oc,kx,ky]
    lhs = jnp.zeros((g_rows, OC, KS, gg_pad), jnp.float32)
    for g in range(g_rows):
        lhs = lhs.at[g, :, :, g:g + KS].set(w_kxky)
    return lhs.reshape(g_rows * OC, KS * gg_pad).astype(jnp.bfloat16)


def _vmem_limit_bytes(needed):
    try:
        phys = int(pltpu.get_tpu_info().vmem_capacity_bytes)
    except Exception:
        phys = 128 * 1024 * 1024
    cap = max(32 * 1024 * 1024, phys - 32 * 1024 * 1024)
    return int(min(max(needed, 32 * 1024 * 1024), cap))


# ---------------------------------------------------------------------------
# Pallas kernel: grid=(B,), one RGB pair per step, both loss branches reduced
# on-chip to a single per-image partial written into a lane-dense (1,8,128) slab.
# ---------------------------------------------------------------------------
def yrgb_l1_lbp_loss(x, t, lbp_kernel):
    """x, t: (B, 3, H, W) RGB (any float dtype); lbp_kernel: (64, 1, 5, 5)."""
    B, C, H, W = x.shape
    assert C == 3 and H >= KS and W >= KS
    assert t.shape == x.shape
    Ho, Wo = H - KS + 1, W - KS + 1
    G = G_ROWS
    n_chunks = pl.cdiv(Ho, G)
    rows_pad = n_chunks * G + KS - 1          # zero-padded rows for the last chunk
    W4 = W + KS - 1                           # per-channel padded width
    ncols = NC * W4                           # 4 channel planes packed on lanes
    g_last = Ho - (n_chunks - 1) * G          # valid output rows in last chunk

    lhs = _build_banded_lhs(lbp_kernel, G, GG_PAD)        # (G*OC, K_PAD) bf16

    inv_hw = 1.0 / float(H * W)
    inv_conv4 = 1.0 / float(NC * Ho * Wo * OC)
    eps2 = CHARB_EPS * CHARB_EPS
    eta = CLAMP_ETA

    def kernel(x_ref, t_ref, lhs_ref, out_ref, d_ref, rhs_ref):
        # -- keep scratch padding exactly zero (scratch persists per core but the
        #    batch axis may be split across TensorCores -> redo every step).
        #    Only the borders need it: the interiors are rewritten per image.
        rhs_ref[...] = jnp.zeros(rhs_ref.shape, rhs_ref.dtype)
        if rows_pad > H:
            d_ref[H:rows_pad, :] = jnp.zeros((rows_pad - H, ncols), jnp.float32)
        for c in range(NC):
            d_ref[0:H, c * W4 + W:(c + 1) * W4] = \
                jnp.zeros((H, KS - 1), jnp.float32)

        # -- fused rgb_to_yrgb + per-channel L1 stats; clipped diffs -> d plane
        xr = x_ref[0, 0].astype(jnp.float32)
        xg = x_ref[0, 1].astype(jnp.float32)
        xb = x_ref[0, 2].astype(jnp.float32)
        tr = t_ref[0, 0].astype(jnp.float32)
        tg = t_ref[0, 1].astype(jnp.float32)
        tb = t_ref[0, 2].astype(jnp.float32)
        y_x = jnp.clip(LUM[0] * xr + LUM[1] * xg + LUM[2] * xb, 0.0, 1.0)
        y_t = jnp.clip(LUM[0] * tr + LUM[1] * tg + LUM[2] * tb, 0.0, 1.0)

        # channel 0 (Y): already clamped, so clipped diff == raw diff
        d0 = y_x - y_t
        madu_sum = jnp.sum(jnp.abs(d0)) * inv_hw
        d_ref[0:H, 0:W] = d0

        l1_total = jnp.float32(0.0)
        chans = ((xr, tr), (xg, tg), (xb, tb))
        for c in range(1, NC):
            cx, ct = chans[c - 1]
            du = cx - ct
            madu = jnp.sum(jnp.abs(du)) * inv_hw
            dc = jnp.clip(cx, 0.0, 1.0) - jnp.clip(ct, 0.0, 1.0)
            madc = jnp.sum(jnp.abs(dc)) * inv_hw
            d_ref[0:H, c * W4:c * W4 + W] = dc
            l1_total = l1_total + LUM[c - 1] * (madc + eta * madu)
            madu_sum = madu_sum + madu

        # -- grouped 5x5 valid conv (conv is linear & bias-free, so
        #    conv(clip x) - conv(clip t) == conv(d)), 4 channels batched on lanes.
        def conv_chunk(start):
            win = d_ref[pl.ds(start, GG), :].astype(jnp.bfloat16)   # (GG, ncols)
            for kx in range(KS):                                    # aligned slots
                rhs_ref[kx * GG_PAD:kx * GG_PAD + GG, 0:ncols - kx] = win[:, kx:]
            o = jnp.dot(lhs_ref[...], rhs_ref[...],
                        preferred_element_type=jnp.float32)          # (G*OC, ncols)
            return jnp.sqrt(o * o + eps2)

        def chunk_body(i, vec_acc):
            charb = conv_chunk(pl.multiple_of(i * G, G))
            return vec_acc + jnp.sum(charb, axis=0, keepdims=True)

        vec0 = jnp.zeros((1, ncols), jnp.float32)
        unroll_n = 2 if (n_chunks - 1) >= 2 else 1
        vec_acc = lax.fori_loop(0, n_chunks - 1, chunk_body, vec0,
                                unroll=unroll_n)

        # peeled last chunk: also mask invalid / zero-padded output rows
        charb_last = conv_chunk((n_chunks - 1) * G)
        if g_last < G:
            row = lax.broadcasted_iota(jnp.int32, charb_last.shape, 0)
            charb_last = jnp.where(row < g_last * OC, charb_last, 0.0)
        vec_acc = vec_acc + jnp.sum(charb_last, axis=0, keepdims=True)

        # column mask applied once after the loop: valid cols are (j mod W4) < Wo
        col = lax.broadcasted_iota(jnp.int32, (1, ncols), 1)
        valid = col < Wo
        for c in range(1, NC):
            valid = jnp.logical_or(
                valid, jnp.logical_and(col >= c * W4, col < c * W4 + Wo))
        charb_sum = jnp.sum(vec_acc * valid.astype(jnp.float32))

        # l1 branch:  sum_c lum_c * (madc_c + eta * madu_c)          (lum_Y = 0)
        # lbp branch: mean_c charbonnier + eta * mean_c l1(unclipped)
        total = (l1_total
                 + LBP_WEIGHT * (charb_sum * inv_conv4 + 0.25 * eta * madu_sum))
        out_ref[...] = jnp.broadcast_to(total, out_ref.shape).astype(jnp.float32)

    in_bytes = 3 * H * W * jnp.dtype(x.dtype).itemsize
    needed = (4 * in_bytes                       # x, t double-buffered blocks
              + rows_pad * ncols * 4             # diff plane scratch
              + K_PAD * ncols * 2                # bf16 RHS staging scratch
              + 2 * (G * OC) * K_PAD * 2         # bf16 banded LHS (double-buffered)
              + 4 * (G * OC) * ncols * 4         # matmul output + epilogue temps
              + 12 * H * W * 4                   # elementwise temporaries
              + (2 << 20))

    partials = pl.pallas_call(
        kernel,
        out_shape=jax.ShapeDtypeStruct((B, 8, 128), jnp.float32),
        grid_spec=pltpu.PrefetchScalarGridSpec(
            num_scalar_prefetch=0,
            grid=(B,),
            in_specs=[
                pl.BlockSpec((1, 3, H, W), lambda b: (b, 0, 0, 0)),
                pl.BlockSpec((1, 3, H, W), lambda b: (b, 0, 0, 0)),
                pl.BlockSpec((G * OC, K_PAD), lambda b: (0, 0)),
            ],
            out_specs=pl.BlockSpec((1, 8, 128), lambda b: (b, 0, 0)),
            scratch_shapes=[
                pltpu.VMEM((rows_pad, ncols), jnp.float32),   # packed diff plane
                pltpu.VMEM((K_PAD, ncols), jnp.bfloat16),     # shifted-window RHS
            ],
        ),
        compiler_params=pltpu.CompilerParams(
            dimension_semantics=("parallel",),
            vmem_limit_bytes=_vmem_limit_bytes(needed),
        ),
    )(x, t, lhs)

    return jnp.sum(partials[:, 0, 0]) / B


# ---------------------------------------------------------------------------
# pure-JAX f32 reference (same math, uses lax.conv) for a sanity check
# ---------------------------------------------------------------------------
def reference_loss(x, t, w):
    x = x.astype(jnp.float32)
    t = t.astype(jnp.float32)

    def rgb_to_yrgb(img):
        y = jnp.clip(LUM[0] * img[:, 0:1] + LUM[1] * img[:, 1:2]
                     + LUM[2] * img[:, 2:3], 0.0, 1.0)
        return jnp.concatenate([y, img], axis=1)

    def conv(z1):
        return lax.conv_general_dilated(
            z1, w, (1, 1), "VALID",
            dimension_numbers=("NCHW", "OIHW", "NCHW"))

    yx, yt = rgb_to_yrgb(x), rgb_to_yrgb(t)
    cx, ct = jnp.clip(yx, 0.0, 1.0), jnp.clip(yt, 0.0, 1.0)
    charb = 0.0
    for c in range(4):
        o = conv(cx[:, c:c + 1]) - conv(ct[:, c:c + 1])
        charb = charb + jnp.mean(jnp.sqrt(o * o + CHARB_EPS ** 2))
    lbp_loss = charb / 4.0 + CLAMP_ETA * jnp.mean(jnp.abs(yx - yt))
    l1_clamp = sum(LUM[i] * jnp.mean(jnp.abs(jnp.clip(x[:, i], 0, 1)
                                             - jnp.clip(t[:, i], 0, 1)))
                   for i in range(3))
    l1_aux = sum(LUM[i] * jnp.mean(jnp.abs(x[:, i] - t[:, i])) for i in range(3))
    l1_loss = l1_clamp + CLAMP_ETA * l1_aux
    return l1_loss + LBP_WEIGHT * lbp_loss


if __name__ == "__main__":
    key = jax.random.PRNGKey(0)
    kx, kt = jax.random.split(key)
    B, H, W = 2, 16, 16
    # values slightly outside [0,1] to exercise the clamp paths
    x = jax.random.uniform(kx, (B, 3, H, W), jnp.float32, minval=-0.1, maxval=1.1)
    t = jax.random.uniform(kt, (B, 3, H, W), jnp.float32, minval=-0.1, maxval=1.1)
    lbp_w = generate_lbp_weight()

    got = yrgb_l1_lbp_loss(x, t, lbp_w)
    got = jax.block_until_ready(got)

    ref = float(reference_loss(x, t, lbp_w))
    # tolerance loosened slightly for the bf16 MXU operands (f32 accumulation)
    assert abs(float(got) - ref) <= 1e-4 + 1e-2 * abs(ref), (float(got), ref)

    print("KERNEL_OK")
</pallas_src>

<mosaic_0001>
module attributes {stable_mosaic.version = 11 : i64} {
  func.func @kernel(%arg0: i32, %arg1: memref<1x3x16x16xf32, #tpu.memory_space<vmem>>, %arg2: memref<1x3x16x16xf32, #tpu.memory_space<vmem>>, %arg3: memref<512x80xbf16, #tpu.memory_space<vmem>>, %arg4: memref<1x8x128xf32, #tpu.memory_space<vmem>>, %arg5: memref<20x80xf32, #tpu.memory_space<vmem>>, %arg6: memref<80x80xbf16, #tpu.memory_space<vmem>>) attributes {dimension_semantics = [#tpu.dimension_semantics<parallel>], iteration_bounds = array<i64: 2>, scalar_prefetch = 0 : i64, scratch_operands = 2 : i64, tpu.core_type = #tpu.core_type<tc>, window_params = [{transform_indices = @transform_0, window_bounds = array<i64: 1, 3, 16, 16>}, {transform_indices = @transform_1, window_bounds = array<i64: 1, 3, 16, 16>}, {pipeline_mode = #tpu.pipeline_mode<synchronous>, transform_indices = @transform_2, window_bounds = array<i64: 512, 80>}, {transform_indices = @transform_3, window_bounds = array<i64: 1, 8, 128>}]} {
    %cst = arith.constant 0.000000e+00 : bf16
    %0 = vector.broadcast %cst : bf16 to vector<80x80xbf16>
    %c0 = arith.constant 0 : index
    %c0_0 = arith.constant 0 : index
    %1 = vector.load %arg6[%c0, %c0_0] : memref<80x80xbf16, #tpu.memory_space<vmem>>, vector<80x80xbf16>
    tpu.vector_store %arg6[%c0, %c0_0], %0 {strides = array<i32>} : memref<80x80xbf16, #tpu.memory_space<vmem>>, vector<80x80xbf16>,
    %cst_1 = arith.constant 0.000000e+00 : f32
    %2 = vector.broadcast %cst_1 : f32 to vector<4x80xf32>
    %c16 = arith.constant 16 : index
    %c0_2 = arith.constant 0 : index
    %3 = vector.load %arg5[%c16, %c0_2] : memref<20x80xf32, #tpu.memory_space<vmem>>, vector<4x80xf32>
    tpu.vector_store %arg5[%c16, %c0_2], %2 {strides = array<i32>} : memref<20x80xf32, #tpu.memory_space<vmem>>, vector<4x80xf32>,
    %cst_3 = arith.constant 0.000000e+00 : f32
    %4 = vector.broadcast %cst_3 : f32 to vector<16x4xf32>
    %c0_4 = arith.constant 0 : index
    %c16_5 = arith.constant 16 : index
    %5 = vector.load %arg5[%c0_4, %c16_5] : memref<20x80xf32, #tpu.memory_space<vmem>>, vector<16x4xf32>
    tpu.vector_store %arg5[%c0_4, %c16_5], %4 {strides = array<i32>} : memref<20x80xf32, #tpu.memory_space<vmem>>, vector<16x4xf32>,
    %cst_6 = arith.constant 0.000000e+00 : f32
    %6 = vector.broadcast %cst_6 : f32 to vector<16x4xf32>
    %c0_7 = arith.constant 0 : index
    %c36 = arith.constant 36 : index
    %7 = vector.load %arg5[%c0_7, %c36] : memref<20x80xf32, #tpu.memory_space<vmem>>, vector<16x4xf32>
    tpu.vector_store %arg5[%c0_7, %c36], %6 {strides = array<i32>} : memref<20x80xf32, #tpu.memory_space<vmem>>, vector<16x4xf32>,
    %cst_8 = arith.constant 0.000000e+00 : f32
    %8 = vector.broadcast %cst_8 : f32 to vector<16x4xf32>
    %c0_9 = arith.constant 0 : index
    %c56 = arith.constant 56 : index
    %9 = vector.load %arg5[%c0_9, %c56] : memref<20x80xf32, #tpu.memory_space<vmem>>, vector<16x4xf32>
    tpu.vector_store %arg5[%c0_9, %c56], %8 {strides = array<i32>} : memref<20x80xf32, #tpu.memory_space<vmem>>, vector<16x4xf32>,
    %cst_10 = arith.constant 0.000000e+00 : f32
    %10 = vector.broadcast %cst_10 : f32 to vector<16x4xf32>
    %c0_11 = arith.constant 0 : index
    %c76 = arith.constant 76 : index
    %11 = vector.load %arg5[%c0_11, %c76] : memref<20x80xf32, #tpu.memory_space<vmem>>, vector<16x4xf32>
    tpu.vector_store %arg5[%c0_11, %c76], %10 {strides = array<i32>} : memref<20x80xf32, #tpu.memory_space<vmem>>, vector<16x4xf32>,
    %c0_12 = arith.constant 0 : index
    %c0_13 = arith.constant 0 : index
    %c0_14 = arith.constant 0 : index
    %c0_15 = arith.constant 0 : index
    %12 = vector.load %arg1[%c0_12, %c0_13, %c0_14, %c0_15] : memref<1x3x16x16xf32, #tpu.memory_space<vmem>>, vector<1x1x16x16xf32>
    %13 = vector.shape_cast %12 : vector<1x1x16x16xf32> to vector<16x16xf32>
    %c0_16 = arith.constant 0 : index
    %c1 = arith.constant 1 : index
    %c0_17 = arith.constant 0 : index
    %c0_18 = arith.constant 0 : index
    %14 = vector.load %arg1[%c0_16, %c1, %c0_17, %c0_18] : memref<1x3x16x16xf32, #tpu.memory_space<vmem>>, vector<1x1x16x16xf32>
    %15 = vector.shape_cast %14 : vector<1x1x16x16xf32> to vector<16x16xf32>
    %c0_19 = arith.constant 0 : index
    %c2 = arith.constant 2 : index
    %c0_20 = arith.constant 0 : index
    %c0_21 = arith.constant 0 : index
    %16 = vector.load %arg1[%c0_19, %c2, %c0_20, %c0_21] : memref<1x3x16x16xf32, #tpu.memory_space<vmem>>, vector<1x1x16x16xf32>
    %17 = vector.shape_cast %16 : vector<1x1x16x16xf32> to vector<16x16xf32>
    %c0_22 = arith.constant 0 : index
    %c0_23 = arith.constant 0 : index
    %c0_24 = arith.constant 0 : index
    %c0_25 = arith.constant 0 : index
    %18 = vector.load %arg2[%c0_22, %c0_23, %c0_24, %c0_25] : memref<1x3x16x16xf32, #tpu.memory_space<vmem>>, vector<1x1x16x16xf32>
    %19 = vector.shape_cast %18 : vector<1x1x16x16xf32> to vector<16x16xf32>
    %c0_26 = arith.constant 0 : index
    %c1_27 = arith.constant 1 : index
    %c0_28 = arith.constant 0 : index
    %c0_29 = arith.constant 0 : index
    %20 = vector.load %arg2[%c0_26, %c1_27, %c0_28, %c0_29] : memref<1x3x16x16xf32, #tpu.memory_space<vmem>>, vector<1x1x16x16xf32>
    %21 = vector.shape_cast %20 : vector<1x1x16x16xf32> to vector<16x16xf32>
    %c0_30 = arith.constant 0 : index
    %c2_31 = arith.constant 2 : index
    %c0_32 = arith.constant 0 : index
    %c0_33 = arith.constant 0 : index
    %22 = vector.load %arg2[%c0_30, %c2_31, %c0_32, %c0_33] : memref<1x3x16x16xf32, #tpu.memory_space<vmem>>, vector<1x1x16x16xf32>
    %23 = vector.shape_cast %22 : vector<1x1x16x16xf32> to vector<16x16xf32>
    %cst_34 = arith.constant 2.989100e-01 : f32
    %24 = vector.broadcast %cst_34 : f32 to vector<16x16xf32>
    %25 = arith.mulf %24, %13 : vector<16x16xf32>
    %cst_35 = arith.constant 5.866100e-01 : f32
    %26 = vector.broadcast %cst_35 : f32 to vector<16x16xf32>
    %27 = arith.mulf %26, %15 : vector<16x16xf32>
    %28 = arith.addf %25, %27 : vector<16x16xf32>
    %cst_36 = arith.constant 1.144800e-01 : f32
    %29 = vector.broadcast %cst_36 : f32 to vector<16x16xf32>
    %30 = arith.mulf %29, %17 : vector<16x16xf32>
    %31 = arith.addf %28, %30 : vector<16x16xf32>
    %cst_37 = arith.constant 0.000000e+00 : f32
    %cst_38 = arith.constant 1.000000e+00 : f32
    %32 = vector.broadcast %cst_37 : f32 to vector<16x16xf32>
    %33 = arith.maximumf %32, %31 : vector<16x16xf32>
    %34 = vector.broadcast %cst_38 : f32 to vector<16x16xf32>
    %35 = arith.minimumf %34, %33 : vector<16x16xf32>
    %cst_39 = arith.constant 2.989100e-01 : f32
    %36 = vector.broadcast %cst_39 : f32 to vector<16x16xf32>
    %37 = arith.mulf %36, %19 : vector<16x16xf32>
    %cst_40 = arith.constant 5.866100e-01 : f32
    %38 = vector.broadcast %cst_40 : f32 to vector<16x16xf32>
    %39 = arith.mulf %38, %21 : vector<16x16xf32>
    %40 = arith.addf %37, %39 : vector<16x16xf32>
    %cst_41 = arith.constant 1.144800e-01 : f32
    %41 = vector.broadcast %cst_41 : f32 to vector<16x16xf32>
    %42 = arith.mulf %41, %23 : vector<16x16xf32>
    %43 = arith.addf %40, %42 : vector<16x16xf32>
    %cst_42 = arith.constant 0.000000e+00 : f32
    %cst_43 = arith.constant 1.000000e+00 : f32
    %44 = vector.broadcast %cst_42 : f32 to vector<16x16xf32>
    %45 = arith.maximumf %44, %43 : vector<16x16xf32>
    %46 = vector.broadcast %cst_43 : f32 to vector<16x16xf32>
    %47 = arith.minimumf %46, %45 : vector<16x16xf32>
    %48 = arith.subf %35, %47 : vector<16x16xf32>
    %49 = math.absf %48 : vector<16x16xf32>
    %50 = vector.shape_cast %49 : vector<16x16xf32> to vector<1x16x16xf32>
    %cst_44 = arith.constant dense<0.000000e+00> : vector<1xf32>
    %51 = vector.multi_reduction <add>, %50, %cst_44 [1, 2] : vector<1x16x16xf32> to vector<1xf32>
    %52 = vector.shape_cast %51 : vector<1xf32> to vector<1x1x1xf32>
    %53 = vector.extract %52[0, 0, 0] : f32 from vector<1x1x1xf32>
    %cst_45 = arith.constant 3.906250e-03 : f32
    %54 = arith.mulf %53, %cst_45 : f32
    %c0_46 = arith.constant 0 : index
    %c0_47 = arith.constant 0 : index
    %55 = vector.load %arg5[%c0_46, %c0_47] : memref<20x80xf32, #tpu.memory_space<vmem>>, vector<16x16xf32>
    tpu.vector_store %arg5[%c0_46, %c0_47], %48 {strides = array<i32>} : memref<20x80xf32, #tpu.memory_space<vmem>>, vector<16x16xf32>,
    %56 = arith.subf %13, %19 : vector<16x16xf32>
    %57 = math.absf %56 : vector<16x16xf32>
    %58 = vector.shape_cast %57 : vector<16x16xf32> to vector<1x16x16xf32>
    %cst_48 = arith.constant dense<0.000000e+00> : vector<1xf32>
    %59 = vector.multi_reduction <add>, %58, %cst_48 [1, 2] : vector<1x16x16xf32> to vector<1xf32>
    %60 = vector.shape_cast %59 : vector<1xf32> to vector<1x1x1xf32>
    %61 = vector.extract %60[0, 0, 0] : f32 from vector<1x1x1xf32>
    %cst_49 = arith.constant 3.906250e-03 : f32
    %62 = arith.mulf %61, %cst_49 : f32
    %cst_50 = arith.constant 0.000000e+00 : f32
    %cst_51 = arith.constant 1.000000e+00 : f32
    %63 = vector.broadcast %cst_50 : f32 to vector<16x16xf32>
    %64 = arith.maximumf %63, %13 : vector<16x16xf32>
    %65 = vector.broadcast %cst_51 : f32 to vector<16x16xf32>
    %66 = arith.minimumf %65, %64 : vector<16x16xf32>
    %cst_52 = arith.constant 0.000000e+00 : f32
    %cst_53 = arith.constant 1.000000e+00 : f32
    %67 = vector.broadcast %cst_52 : f32 to vector<16x16xf32>
    %68 = arith.maximumf %67, %19 : vector<16x16xf32>
    %69 = vector.broadcast %cst_53 : f32 to vector<16x16xf32>
    %70 = arith.minimumf %69, %68 : vector<16x16xf32>
    %71 = arith.subf %66, %70 : vector<16x16xf32>
    %72 = math.absf %71 : vector<16x16xf32>
    %73 = vector.shape_cast %72 : vector<16x16xf32> to vector<1x16x16xf32>
    %cst_54 = arith.constant dense<0.000000e+00> : vector<1xf32>
    %74 = vector.multi_reduction <add>, %73, %cst_54 [1, 2] : vector<1x16x16xf32> to vector<1xf32>
    %75 = vector.shape_cast %74 : vector<1xf32> to vector<1x1x1xf32>
    %76 = vector.extract %75[0, 0, 0] : f32 from vector<1x1x1xf32>
    %cst_55 = arith.constant 3.906250e-03 : f32
    %77 = arith.mulf %76, %cst_55 : f32
    %c0_56 = arith.constant 0 : index
    %c20 = arith.constant 20 : index
    %78 = vector.load %arg5[%c0_56, %c20] : memref<20x80xf32, #tpu.memory_space<vmem>>, vector<16x16xf32>
    tpu.vector_store %arg5[%c0_56, %c20], %71 {strides = array<i32>} : memref<20x80xf32, #tpu.memory_space<vmem>>, vector<16x16xf32>,
    %cst_57 = arith.constant 1.000000e-03 : f32
    %79 = arith.mulf %cst_57, %62 : f32
    %80 = arith.addf %77, %79 : f32
    %cst_58 = arith.constant 2.989100e-01 : f32
    %81 = arith.mulf %cst_58, %80 : f32
    %cst_59 = arith.constant 0.000000e+00 : f32
    %82 = arith.addf %cst_59, %81 : f32
    %83 = arith.addf %54, %62 : f32
    %84 = arith.subf %15, %21 : vector<16x16xf32>
    %85 = math.absf %84 : vector<16x16xf32>
    %86 = vector.shape_cast %85 : vector<16x16xf32> to vector<1x16x16xf32>
    %cst_60 = arith.constant dense<0.000000e+00> : vector<1xf32>
    %87 = vector.multi_reduction <add>, %86, %cst_60 [1, 2] : vector<1x16x16xf32> to vector<1xf32>
    %88 = vector.shape_cast %87 : vector<1xf32> to vector<1x1x1xf32>
    %89 = vector.extract %88[0, 0, 0] : f32 from vector<1x1x1xf32>
    %cst_61 = arith.constant 3.906250e-03 : f32
    %90 = arith.mulf %89, %cst_61 : f32
    %cst_62 = arith.constant 0.000000e+00 : f32
    %cst_63 = arith.constant 1.000000e+00 : f32
    %91 = vector.broadcast %cst_62 : f32 to vector<16x16xf32>
    %92 = arith.maximumf %91, %15 : vector<16x16xf32>
    %93 = vector.broadcast %cst_63 : f32 to vector<16x16xf32>
    %94 = arith.minimumf %93, %92 : vector<16x16xf32>
    %cst_64 = arith.constant 0.000000e+00 : f32
    %cst_65 = arith.constant 1.000000e+00 : f32
    %95 = vector.broadcast %cst_64 : f32 to vector<16x16xf32>
    %96 = arith.maximumf %95, %21 : vector<16x16xf32>
    %97 = vector.broadcast %cst_65 : f32 to vector<16x16xf32>
    %98 = arith.minimumf %97, %96 : vector<16x16xf32>
    %99 = arith.subf %94, %98 : vector<16x16xf32>
    %100 = math.absf %99 : vector<16x16xf32>
    %101 = vector.shape_cast %100 : vector<16x16xf32> to vector<1x16x16xf32>
    %cst_66 = arith.constant dense<0.000000e+00> : vector<1xf32>
    %102 = vector.multi_reduction <add>, %101, %cst_66 [1, 2] : vector<1x16x16xf32> to vector<1xf32>
    %103 = vector.shape_cast %102 : vector<1xf32> to vector<1x1x1xf32>
    %104 = vector.extract %103[0, 0, 0] : f32 from vector<1x1x1xf32>
    %cst_67 = arith.constant 3.906250e-03 : f32
    %105 = arith.mulf %104, %cst_67 : f32
    %c0_68 = arith.constant 0 : index
    %c40 = arith.constant 40 : index
    %106 = vector.load %arg5[%c0_68, %c40] : memref<20x80xf32, #tpu.memory_space<vmem>>, vector<16x16xf32>
    tpu.vector_store %arg5[%c0_68, %c40], %99 {strides = array<i32>} : memref<20x80xf32, #tpu.memory_space<vmem>>, vector<16x16xf32>,
    %cst_69 = arith.constant 1.000000e-03 : f32
    %107 = arith.mulf %cst_69, %90 : f32
    %108 = arith.addf %105, %107 : f32
    %cst_70 = arith.constant 5.866100e-01 : f32
    %109 = arith.mulf %cst_70, %108 : f32
    %110 = arith.addf %82, %109 : f32
    %111 = arith.addf %83, %90 : f32
    %112 = arith.subf %17, %23 : vector<16x16xf32>
    %113 = math.absf %112 : vector<16x16xf32>
    %114 = vector.shape_cast %113 : vector<16x16xf32> to vector<1x16x16xf32>
    %cst_71 = arith.constant dense<0.000000e+00> : vector<1xf32>
    %115 = vector.multi_reduction <add>, %114, %cst_71 [1, 2] : vector<1x16x16xf32> to vector<1xf32>
    %116 = vector.shape_cast %115 : vector<1xf32> to vector<1x1x1xf32>
    %117 = vector.extract %116[0, 0, 0] : f32 from vector<1x1x1xf32>
    %cst_72 = arith.constant 3.906250e-03 : f32
    %118 = arith.mulf %117, %cst_72 : f32
    %cst_73 = arith.constant 0.000000e+00 : f32
    %cst_74 = arith.constant 1.000000e+00 : f32
    %119 = vector.broadcast %cst_73 : f32 to vector<16x16xf32>
    %120 = arith.maximumf %119, %17 : vector<16x16xf32>
    %121 = vector.broadcast %cst_74 : f32 to vector<16x16xf32>
    %122 = arith.minimumf %121, %120 : vector<16x16xf32>
    %cst_75 = arith.constant 0.000000e+00 : f32
    %cst_76 = arith.constant 1.000000e+00 : f32
    %123 = vector.broadcast %cst_75 : f32 to vector<16x16xf32>
    %124 = arith.maximumf %123, %23 : vector<16x16xf32>
    %125 = vector.broadcast %cst_76 : f32 to vector<16x16xf32>
    %126 = arith.minimumf %125, %124 : vector<16x16xf32>
    %127 = arith.subf %122, %126 : vector<16x16xf32>
    %128 = math.absf %127 : vector<16x16xf32>
    %129 = vector.shape_cast %128 : vector<16x16xf32> to vector<1x16x16xf32>
    %cst_77 = arith.constant dense<0.000000e+00> : vector<1xf32>
    %130 = vector.multi_reduction <add>, %129, %cst_77 [1, 2] : vector<1x16x16xf32> to vector<1xf32>
    %131 = vector.shape_cast %130 : vector<1xf32> to vector<1x1x1xf32>
    %132 = vector.extract %131[0, 0, 0] : f32 from vector<1x1x1xf32>
    %cst_78 = arith.constant 3.906250e-03 : f32
    %133 = arith.mulf %132, %cst_78 : f32
    %c0_79 = arith.constant 0 : index
    %c60 = arith.constant 60 : index
    %134 = vector.load %arg5[%c0_79, %c60] : memref<20x80xf32, #tpu.memory_space<vmem>>, vector<16x16xf32>
    tpu.vector_store %arg5[%c0_79, %c60], %127 {strides = array<i32>} : memref<20x80xf32, #tpu.memory_space<vmem>>, vector<16x16xf32>,
    %cst_80 = arith.constant 1.000000e-03 : f32
    %135 = arith.mulf %cst_80, %118 : f32
    %136 = arith.addf %133, %135 : f32
    %cst_81 = arith.constant 1.144800e-01 : f32
    %137 = arith.mulf %cst_81, %136 : f32
    %138 = arith.addf %110, %137 : f32
    %139 = arith.addf %111, %118 : f32
    %cst_82 = arith.constant 0.000000e+00 : f32
    %140 = vector.broadcast %cst_82 : f32 to vector<1x80xf32>
    %c0_i32 = arith.constant 0 : i32
    %c8_i32 = arith.constant 8 : i32
    %141 = arith.muli %c0_i32, %c8_i32 : i32
    %142 = tpu.assume_multiple %141, 8 : i32
    %143 = arith.index_cast %142 : i32 to index
    %c0_83 = arith.constant 0 : index
    %144 = vector.load %arg5[%143, %c0_83] : memref<20x80xf32, #tpu.memory_space<vmem>>, vector<12x80xf32>
    %145 = arith.truncf %144 : vector<12x80xf32> to vector<12x80xbf16>
    %c0_84 = arith.constant 0 : index
    %c0_85 = arith.constant 0 : index
    %146 = vector.load %arg6[%c0_84, %c0_85] : memref<80x80xbf16, #tpu.memory_space<vmem>>, vector<12x80xbf16>
    tpu.vector_store %arg6[%c0_84, %c0_85], %145 {strides = array<i32>} : memref<80x80xbf16, #tpu.memory_space<vmem>>, vector<12x80xbf16>,
    %147 = vector.extract_strided_slice %145 {offsets = [0, 1], sizes = [12, 79], strides = [1, 1]} : vector<12x80xbf16> to vector<12x79xbf16>
    %c16_86 = arith.constant 16 : index
    %c0_87 = arith.constant 0 : index
    %148 = vector.load %arg6[%c16_86, %c0_87] : memref<80x80xbf16, #tpu.memory_space<vmem>>, vector<12x79xbf16>
    tpu.vector_store %arg6[%c16_86, %c0_87], %147 {strides = array<i32>} : memref<80x80xbf16, #tpu.memory_space<vmem>>, vector<12x79xbf16>,
    %149 = vector.extract_strided_slice %145 {offsets = [0, 2], sizes = [12, 78], strides = [1, 1]} : vector<12x80xbf16> to vector<12x78xbf16>
    %c32 = arith.constant 32 : index
    %c0_88 = arith.constant 0 : index
    %150 = vector.load %arg6[%c32, %c0_88] : memref<80x80xbf16, #tpu.memory_space<vmem>>, vector<12x78xbf16>
    tpu.vector_store %arg6[%c32, %c0_88], %149 {strides = array<i32>} : memref<80x80xbf16, #tpu.memory_space<vmem>>, vector<12x78xbf16>,
    %151 = vector.extract_strided_slice %145 {offsets = [0, 3], sizes = [12, 77], strides = [1, 1]} : vector<12x80xbf16> to vector<12x77xbf16>
    %c48 = arith.constant 48 : index
    %c0_89 = arith.constant 0 : index
    %152 = vector.load %arg6[%c48, %c0_89] : memref<80x80xbf16, #tpu.memory_space<vmem>>, vector<12x77xbf16>
    tpu.vector_store %arg6[%c48, %c0_89], %151 {strides = array<i32>} : memref<80x80xbf16, #tpu.memory_space<vmem>>, vector<12x77xbf16>,
    %153 = vector.extract_strided_slice %145 {offsets = [0, 4], sizes = [12, 76], strides = [1, 1]} : vector<12x80xbf16> to vector<12x76xbf16>
    %c64 = arith.constant 64 : index
    %c0_90 = arith.constant 0 : index
    %154 = vector.load %arg6[%c64, %c0_90] : memref<80x80xbf16, #tpu.memory_space<vmem>>, vector<12x76xbf16>
    tpu.vector_store %arg6[%c64, %c0_90], %153 {strides = array<i32>} : memref<80x80xbf16, #tpu.memory_space<vmem>>, vector<12x76xbf16>,
    %c0_91 = arith.constant 0 : index
    %c0_92 = arith.constant 0 : index
    %155 = vector.load %arg3[%c0_91, %c0_92] : memref<512x80xbf16, #tpu.memory_space<vmem>>, vector<512x80xbf16>
    %c0_93 = arith.constant 0 : index
    %c0_94 = arith.constant 0 : index
    %156 = vector.load %arg6[%c0_93, %c0_94] : memref<80x80xbf16, #tpu.memory_space<vmem>>, vector<80x80xbf16>
    %cst_95 = arith.constant dense<0.000000e+00> : vector<512x80xf32>
    %157 = tpu.matmul %155, %156, %cst_95 {dimension_numbers = #tpu.dot_dimension_numbers<[1], [0], [0], [1], [0, 0, 1, 1], [], []>} : vector<512x80xbf16>, vector<80x80xbf16>, vector<512x80xf32> -> vector<512x80xf32>
    %158 = arith.mulf %157, %157 : vector<512x80xf32>
    %cst_96 = arith.constant 9.99999997E-7 : f32
    %159 = vector.broadcast %cst_96 : f32 to vector<512x80xf32>
    %160 = arith.addf %158, %159 : vector<512x80xf32>
    %161 = math.sqrt %160 : vector<512x80xf32>
    %cst_97 = arith.constant dense<0.000000e+00> : vector<80xf32>
    %162 = vector.multi_reduction <add>, %161, %cst_97 [0] : vector<512x80xf32> to vector<80xf32>
    %163 = vector.shape_cast %162 : vector<80xf32> to vector<1x80xf32>
    %164 = arith.addf %140, %163 : vector<1x80xf32>
    %c1_i32 = arith.constant 1 : i32
    %c8 = arith.constant 8 : index
    %c0_98 = arith.constant 0 : index
    %165 = vector.load %arg5[%c8, %c0_98] : memref<20x80xf32, #tpu.memory_space<vmem>>, vector<12x80xf32>
    %166 = arith.truncf %165 : vector<12x80xf32> to vector<12x80xbf16>
    %c0_99 = arith.constant 0 : index
    %c0_100 = arith.constant 0 : index
    %167 = vector.load %arg6[%c0_99, %c0_100] : memref<80x80xbf16, #tpu.memory_space<vmem>>, vector<12x80xbf16>
    tpu.vector_store %arg6[%c0_99, %c0_100], %166 {strides = array<i32>} : memref<80x80xbf16, #tpu.memory_space<vmem>>, vector<12x80xbf16>,
    %168 = vector.extract_strided_slice %166 {offsets = [0, 1], sizes = [12, 79], strides = [1, 1]} : vector<12x80xbf16> to vector<12x79xbf16>
    %c16_101 = arith.constant 16 : index
    %c0_102 = arith.constant 0 : index
    %169 = vector.load %arg6[%c16_101, %c0_102] : memref<80x80xbf16, #tpu.memory_space<vmem>>, vector<12x79xbf16>
    tpu.vector_store %arg6[%c16_101, %c0_102], %168 {strides = array<i32>} : memref<80x80xbf16, #tpu.memory_space<vmem>>, vector<12x79xbf16>,
    %170 = vector.extract_strided_slice %166 {offsets = [0, 2], sizes = [12, 78], strides = [1, 1]} : vector<12x80xbf16> to vector<12x78xbf16>
    %c32_103 = arith.constant 32 : index
    %c0_104 = arith.constant 0 : index
    %171 = vector.load %arg6[%c32_103, %c0_104] : memref<80x80xbf16, #tpu.memory_space<vmem>>, vector<12x78xbf16>
    tpu.vector_store %arg6[%c32_103, %c0_104], %170 {strides = array<i32>} : memref<80x80xbf16, #tpu.memory_space<vmem>>, vector<12x78xbf16>,
    %172 = vector.extract_strided_slice %166 {offsets = [0, 3], sizes = [12, 77], strides = [1, 1]} : vector<12x80xbf16> to vector<12x77xbf16>
    %c48_105 = arith.constant 48 : index
    %c0_106 = arith.constant 0 : index
    %173 = vector.load %arg6[%c48_105, %c0_106] : memref<80x80xbf16, #tpu.memory_space<vmem>>, vector<12x77xbf16>
    tpu.vector_store %arg6[%c48_105, %c0_106], %172 {strides = array<i32>} : memref<80x80xbf16, #tpu.memory_space<vmem>>, vector<12x77xbf16>,
    %174 = vector.extract_strided_slice %166 {offsets = [0, 4], sizes = [12, 76], strides = [1, 1]} : vector<12x80xbf16> to vector<12x76xbf16>
    %c64_107 = arith.constant 64 : index
    %c0_108 = arith.constant 0 : index
    %175 = vector.load %arg6[%c64_107, %c0_108] : memref<80x80xbf16, #tpu.memory_space<vmem>>, vector<12x76xbf16>
    tpu.vector_store %arg6[%c64_107, %c0_108], %174 {strides = array<i32>} : memref<80x80xbf16, #tpu.memory_space<vmem>>, vector<12x76xbf16>,
    %c0_109 = arith.constant 0 : index
    %c0_110 = arith.constant 0 : index
    %176 = vector.load %arg3[%c0_109, %c0_110] : memref<512x80xbf16, #tpu.memory_space<vmem>>, vector<512x80xbf16>
    %c0_111 = arith.constant 0 : index
    %c0_112 = arith.constant 0 : index
    %177 = vector.load %arg6[%c0_111, %c0_112] : memref<80x80xbf16, #tpu.memory_space<vmem>>, vector<80x80xbf16>
    %cst_113 = arith.constant dense<0.000000e+00> : vector<512x80xf32>
    %178 = tpu.matmul %176, %177, %cst_113 {dimension_numbers = #tpu.dot_dimension_numbers<[1], [0], [0], [1], [0, 0, 1, 1], [], []>} : vector<512x80xbf16>, vector<80x80xbf16>, vector<512x80xf32> -> vector<512x80xf32>
    %179 = arith.mulf %178, %178 : vector<512x80xf32>
    %cst_114 = arith.constant 9.99999997E-7 : f32
    %180 = vector.broadcast %cst_114 : f32 to vector<512x80xf32>
    %181 = arith.addf %179, %180 : vector<512x80xf32>
    %182 = math.sqrt %181 : vector<512x80xf32>
    %183 = tpu.iota {dimensions = array<i32: 0>} : vector<512x80xi32>
    %c256_i32 = arith.constant 256 : i32
    %184 = vector.broadcast %c256_i32 : i32 to vector<512x80xi32>
    %185 = arith.cmpi slt, %183, %184 : vector<512x80xi32>
    %cst_115 = arith.constant 0.000000e+00 : f32
    %186 = vector.broadcast %cst_115 : f32 to vector<512x80xf32>
    %187 = arith.select %185, %182, %186 : vector<512x80xi1>, vector<512x80xf32>
    %cst_116 = arith.constant dense<0.000000e+00> : vector<80xf32>
    %188 = vector.multi_reduction <add>, %187, %cst_116 [0] : vector<512x80xf32> to vector<80xf32>
    %189 = vector.shape_cast %188 : vector<80xf32> to vector<1x80xf32>
    %190 = arith.addf %164, %189 : vector<1x80xf32>
    %191 = tpu.iota {dimensions = array<i32: 1>} : vector<1x80xi32>
    %c12_i32 = arith.constant 12 : i32
    %192 = vector.broadcast %c12_i32 : i32 to vector<1x80xi32>
    %193 = arith.cmpi slt, %191, %192 : vector<1x80xi32>
    %c20_i32 = arith.constant 20 : i32
    %194 = vector.broadcast %c20_i32 : i32 to vector<1x80xi32>
    %195 = arith.cmpi sge, %191, %194 : vector<1x80xi32>
    %c32_i32 = arith.constant 32 : i32
    %196 = vector.broadcast %c32_i32 : i32 to vector<1x80xi32>
    %197 = arith.cmpi slt, %191, %196 : vector<1x80xi32>
    %198 = arith.andi %195, %197 : vector<1x80xi1>
    %199 = arith.ori %193, %198 : vector<1x80xi1>
    %c40_i32 = arith.constant 40 : i32
    %200 = vector.broadcast %c40_i32 : i32 to vector<1x80xi32>
    %201 = arith.cmpi sge, %191, %200 : vector<1x80xi32>
    %c52_i32 = arith.constant 52 : i32
    %202 = vector.broadcast %c52_i32 : i32 to vector<1x80xi32>
    %203 = arith.cmpi slt, %191, %202 : vector<1x80xi32>
    %204 = arith.andi %201, %203 : vector<1x80xi1>
    %205 = arith.ori %199, %204 : vector<1x80xi1>
    %c60_i32 = arith.constant 60 : i32
    %206 = vector.broadcast %c60_i32 : i32 to vector<1x80xi32>
    %207 = arith.cmpi sge, %191, %206 : vector<1x80xi32>
    %c72_i32 = arith.constant 72 : i32
    %208 = vector.broadcast %c72_i32 : i32 to vector<1x80xi32>
    %209 = arith.cmpi slt, %191, %208 : vector<1x80xi32>
    %210 = arith.andi %207, %209 : vector<1x80xi1>
    %211 = arith.ori %205, %210 : vector<1x80xi1>
    %212 = arith.extui %211 : vector<1x80xi1> to vector<1x80xi32>
    %213 = arith.sitofp %212 : vector<1x80xi32> to vector<1x80xf32>
    %214 = arith.mulf %190, %213 : vector<1x80xf32>
    %215 = vector.shape_cast %214 : vector<1x80xf32> to vector<1x1x80xf32>
    %cst_117 = arith.constant dense<0.000000e+00> : vector<1xf32>
    %216 = vector.multi_reduction <add>, %215, %cst_117 [1, 2] : vector<1x1x80xf32> to vector<1xf32>
    %217 = vector.shape_cast %216 : vector<1xf32> to vector<1x1x1xf32>
    %218 = vector.extract %217[0, 0, 0] : f32 from vector<1x1x1xf32>
    %cst_118 = arith.constant 2.71267363E-5 : f32
    %219 = arith.mulf %218, %cst_118 : f32
    %cst_119 = arith.constant 2.500000e-04 : f32
    %220 = arith.mulf %cst_119, %139 : f32
    %221 = arith.addf %219, %220 : f32
    %cst_120 = arith.constant 4.000000e-01 : f32
    %222 = arith.mulf %cst_120, %221 : f32
    %223 = arith.addf %138, %222 : f32
    %224 = vector.broadcast %223 : f32 to vector<1x8x128xf32>
    %c0_121 = arith.constant 0 : index
    %c0_122 = arith.constant 0 : index
    %c0_123 = arith.constant 0 : index
    %225 = vector.load %arg4[%c0_121, %c0_122, %c0_123] : memref<1x8x128xf32, #tpu.memory_space<vmem>>, vector<1x8x128xf32>
    tpu.vector_store %arg4[%c0_121, %c0_122, %c0_123], %224 {strides = array<i32>} : memref<1x8x128xf32, #tpu.memory_space<vmem>>, vector<1x8x128xf32>,
    return
  }
  func.func @transform_0(%arg0: i32) -> (i32, i32, i32, i32) {
    %c0_i32 = arith.constant 0 : i32
    %c0_i32_0 = arith.constant 0 : i32
    %c0_i32_1 = arith.constant 0 : i32
    %c0_i32_2 = arith.constant 0 : i32
    return %arg0, %c0_i32, %c0_i32_0, %c0_i32_1 : i32, i32, i32, i32
  }
  func.func @transform_1(%arg0: i32) -> (i32, i32, i32, i32) {
    %c0_i32 = arith.constant 0 : i32
    %c0_i32_0 = arith.constant 0 : i32
    %c0_i32_1 = arith.constant 0 : i32
    %c0_i32_2 = arith.constant 0 : i32
    return %arg0, %c0_i32, %c0_i32_0, %c0_i32_1 : i32, i32, i32, i32
  }
  func.func @transform_2(%arg0: i32) -> (i32, i32) {
    %c0_i32 = arith.constant 0 : i32
    %c0_i32_0 = arith.constant 0 : i32
    %c0_i32_1 = arith.constant 0 : i32
    return %c0_i32, %c0_i32_0 : i32, i32
  }
  func.func @transform_3(%arg0: i32) -> (i32, i32, i32) {
    %c0_i32 = arith.constant 0 : i32
    %c0_i32_0 = arith.constant 0 : i32
    %c0_i32_1 = arith.constant 0 : i32
    return %arg0, %c0_i32, %c0_i32_0 : i32, i32, i32
  }
}

</mosaic_0001>

<bundles_post_ra>
// kernel: tpu_custom_call.1
= control target key start
LH: loop header
LB: loop body
LE: loop exit
PB: predicated region body
PF: predicated region fallthrough
CT: control target
= control target key end

     0   :  { %s6204_s0 = inlined_call_operand.vmem [shape: f32[2,3,16,16], index: 0, kind: input, shape index: {}]   ;;  %s6205_s1 = inlined_call_operand.vmem [shape: f32[2,3,16,16], index: 1, kind: input, shape index: {}]   ;;  %s6206_s2 = inlined_call_operand.vmem [shape: bf16[512,80], index: 2, kind: input, shape index: {}]   ;;  %s6207_s3 = inlined_call_operand.hbm [shape: f32[2,8,128], index: 3, kind: output, shape index: {}]  }
   0x1   :  { %6221 = sst [smem:[#allocation33_spill]] %s6204_s0 }
   0x2   :  { %6222 = sst [smem:[#allocation34_spill]] %s6205_s1 }
   0x3   :  { %6223 = sst [smem:[#allocation35_spill]] %s6206_s2 }
   0x4   :  { %8 = vsyncpa [#allocation5], 0 }
   0x5   :  { %10 = vsyncpa [#allocation5 + $0x1], 0  ;;  %s4254_s12 = smov 0   ;;  %s4256_s13 = smov 0  }
   0x6   :  { %s4258_s14 = smov 0   ;;  %s4260_s15 = smov 0  }
   0x7 LB: > { %6224 = sst [smem:[#allocation7_spill]] %s4210_s12  ;;  %s4275_s16 = sadd.s32 4294967295, %s4222_s15   ;;  %s4222_s15 = sphi %s4260_s15, %s6279_s15   ;;  %s4218_s14 = sphi %s4258_s14, %s6282_s14   ;;  %s4214_s13 = sphi %s4256_s13, %s6281_s13   ;;  %s4210_s12 = sphi %s4254_s12, %s6280_s12  }
   0x8   : > { %6225 = sst [smem:[#allocation8_spill]] %s4214_s13  ;;  %s3457_s17 = sadd.s32 4294967294, %s4222_s15  }
   0x9   : > { %6226 = sst [smem:[#allocation9_spill]] %s4218_s14  ;;  %s4279_s18 = sadd.s32 1, %s4222_s15  }
   0xa   : > { %6227 = sst [smem:[#allocation10_spill]] %s4279_s18  ;;  %s96_s19 = sadd.s32 1, %s4218_s14 }
   0xb   : > { %s93_s20 = ssub.s32 %s4222_s15, %s4279_s18  ;;  %p106_p0 = scmp.ne.s32.totalorder %s4218_s14, %s4214_s13 }
   0xc   : > { %p94_p1 = scmp.eq.s32.totalorder %s93_s20, 0  ;;  %p107_p2 = scmp.eq.s32.totalorder %s4275_s16, 1 }
   0xd   : > { %p112_p3 = scmp.ne.s32.totalorder %s4214_s13, %s4210_s12  ;;  %p113_p4 = scmp.eq.s32.totalorder %s3457_s17, 1 }
   0xe   : > { %s4290_s21 = scalar_select %p94_p1, %s4218_s14, %s96_s19  }
   0xf   : > { %p4292_p5 = por %p107_p2, %p106_p0  ;;  %p4296_p6 = por %p113_p4, %p112_p3 }
  0x10   : > { %6228 = sst [smem:[#allocation11_spill]] %s4290_s21  ;;  %p3460_p7 = scmp.ge.s32.totalorder %s4222_s15, 1 }
  0x11   : > { %s6230_s23 = scalar_select %p4296_p6, 1, 0 }
  0x12   : > { %p150_p8 = scmp.lt.s32.totalorder %s4222_s15, 3 }
  0x13   : > { %6231 = sst [smem:[#allocation12_spill]] %s6230_s23 }
  0x14   : > { %p151_p9 = pnand %p3460_p7, %p150_p8 }
  0x16   : > { %154 = sbr.rel (%p151_p9) target bundleno = 1060 (0x424), region = 32 }
  0x1d   : > { %p179_p10 = scmp.lt.s32.totalorder %s4275_s16, 1  ;;  %vm198_vm0 = vcmask 162944   ;;  %vm201_vm1 = vcmask 326944   ;;  %vm204_vm2 = vcmask 490944   ;;  %v6208_v0 = vmov 0.0   ;;  %s6232_s0 = sld [smem:[#allocation33_spill]] }
  0x1e   : > { %199 = vst.msk [vmem:[#allocation2] sm:$0xff] %vm198_vm0, %v6208_v0  ;;  %vm207_vm3 = vcmask 654944   ;;  %200 = vst.msk [vmem:[#allocation2 + $0x8] sm:$0xff] %vm198_vm0, %v6208_v0  ;;  %s6233_s1 = sld [smem:[#allocation34_spill]]  ;;  %s4225_s5 = smov 40   ;;  %vm196_vm4 = vcmask 650240  }
  0x1f   : > { %s180_s24 = scalar_select %p179_p10, %s4275_s16, 1  ;;  %202 = vst.msk [vmem:[#allocation2] sm:$0xff] %vm201_vm1, %v6208_v0  ;;  %203 = vst.msk [vmem:[#allocation2 + $0x8] sm:$0xff] %vm201_vm1, %v6208_v0  ;;  %vm190_vm5 = vcmask 654336   ;;  %vm258_vm6 = vcmask 130048   ;;  %vm324_vm7 = vcmask 294048  }
  0x20   : > { %205 = vst.msk [vmem:[#allocation2] sm:$0xff] %vm204_vm2, %v6208_v0  ;;  %206 = vst.msk [vmem:[#allocation2 + $0x8] sm:$0xff] %vm204_vm2, %v6208_v0  ;;  %s4226_s6 = smov 20   ;;  %s4227_s7 = smov 60   ;;  %vm382_vm8 = vcmask 458048   ;;  %vm440_vm9 = vcmask 622048  }
  0x21   : > { %s3827_s25 = smul.u32 48, %s180_s24  ;;  %208 = vst.msk [vmem:[#allocation2] sm:$0xff] %vm207_vm3, %v6208_v0  ;;  %209 = vst.msk [vmem:[#allocation2 + $0x8] sm:$0xff] %vm207_vm3, %v6208_v0  ;;  %vm451_vm10 = vcmask 652288   ;;  %s4229_s8 = smov 126   ;;  %vm462_vm11 = vcmask 635904  }
  0x22   : > { %197 = vst.msk [vmem:[#allocation2 + $0x10] sm:$0xf] %vm196_vm4, %v6208_v0  ;;  %s4230_s9 = smov 127   ;;  %s4231_s10 = smov 124   ;;  %vm457_vm12 = vcmask 644096   ;;  %vm472_vm13 = vcmask 619520  }
  0x23   : > { %s4315_s28 = scalar_lea.vmem %s6232_s0, %s3827_s25  ;;  %s4232_s11 = smov 125   ;;  %vm467_vm14 = vcmask 627712  }
  0x24   : > { %s4320_s4 = scalar_lea.vmem %s6233_s1, %s3827_s25  ;;  %v3464_v1 = vld [vmem:[%s4315_s28 + $0x10] sm:$0xff]  ;;  %v210_v3 = vld [vmem:[%s4315_s28] sm:$0xff]  ;;  %v3465_v11 = vld [vmem:[%s4315_s28 + $0x18] sm:$0xff]  ;;  %s6240_s2 = sld [smem:[#allocation35_spill]] }
  0x25   : > { %v3468_v2 = vld [vmem:[%s4320_s4 + $0x10] sm:$0xff]  ;;  %v349_v5 = vmax.f32 %v3464_v1, 0.0  ;;  %v228_v7 = vmul.f32 0.58661, %v3464_v1  ;;  %v218_v8 = vld [vmem:[%s4320_s4] sm:$0xff]  ;;  %v291_v9 = vmax.f32 %v210_v3, 0.0 }
  0x26   : > { %v242_v4 = vmul.f32 0.58661, %v3468_v2  ;;  %v353_v6 = vmax.f32 %v3468_v2, 0.0  ;;  %v226_v10 = vmul.f32 0.29891, %v210_v3  ;;  %v295_v14 = vmax.f32 %v218_v8, 0.0 }
  0x27   : > { %v351_v12 = vmin.f32 %v349_v5, 1.0  ;;  %v3469_v15 = vld [vmem:[%s4320_s4 + $0x18] sm:$0xff]  ;;  %v211_v16 = vld [vmem:[%s4315_s28 + $0x8] sm:$0xff]  ;;  %v240_v17 = vmul.f32 0.29891, %v218_v8  ;;  %v293_v18 = vmin.f32 %v291_v9, 1.0 }
  0x28   : > { %v355_v13 = vmin.f32 %v353_v6, 1.0  ;;  %v229_v19 = vmul.f32 0.58661, %v3465_v11  ;;  %v219_v20 = vld [vmem:[%s4320_s4 + $0x8] sm:$0xff]  ;;  %v297_v22 = vmin.f32 %v295_v14, 1.0  ;;  %v350_v24 = vmax.f32 %v3465_v11, 0.0 }
  0x29   : > { %v243_v23 = vmul.f32 0.58661, %v3469_v15  ;;  %v3467_v25 = vld [vmem:[%s4315_s28 + $0x28] sm:$0xff]  ;;  %v354_v26 = vmax.f32 %v3469_v15, 0.0  ;;  %v227_v27 = vmul.f32 0.29891, %v211_v16  ;;  %v230_v31 = vadd.f32 %v228_v7, %v226_v10 }
  0x2a   : > { %v4330_v21 = vsub.f32 %v351_v12, %v355_v13  ;;  %v241_v28 = vmul.f32 0.29891, %v219_v20  ;;  %v292_v29 = vmax.f32 %v211_v16, 0.0  ;;  %v4334_v30 = vsub.f32 %v293_v18, %v297_v22  ;;  %v3471_v34 = vld [vmem:[%s4320_s4 + $0x28] sm:$0xff]  ;;  %v3466_v35 = vld [vmem:[%s4315_s28 + $0x20] sm:$0xff] }
  0x2b   : > { %v352_v32 = vmin.f32 %v350_v24, 1.0  ;;  %v296_v33 = vmax.f32 %v219_v20, 0.0  ;;  %v244_v36 = vadd.f32 %v242_v4, %v240_v17  ;;  %v356_v37 = vmin.f32 %v354_v26, 1.0  ;;  %v3470_v44 = vld [vmem:[%s4320_s4 + $0x20] sm:$0xff]  ;;  %v1799_v22 = vld [vmem:[#allocation2 + $0x10] sm:$0xf] }
  0x2c   : > { %376 = vrot.lane.b32.xlu1 %v4330_v21, %s4225_s5  ;;  %v231_v38 = vadd.f32 %v229_v19, %v227_v27  ;;  %v294_v39 = vmin.f32 %v292_v29, 1.0  ;;  %318 = vrot.lane.b32.xlu0 %v4334_v30, %s4226_s6  ;;  %v245_v40 = vadd.f32 %v243_v23, %v241_v28  ;;  %v233_v42 = vmul.f32 0.11448, %v3467_v25  ;;  %v3902_v27 = vld [vmem:[%s6240_s2] sm:$0xff]  }
  0x2d   : > { %v298_v41 = vmin.f32 %v296_v33, 1.0  ;;  %v408_v43 = vmax.f32 %v3467_v25, 0.0  ;;  %v4340_v45 = vsub.f32 %v352_v32, %v356_v37  ;;  %v247_v46 = vmul.f32 0.11448, %v3471_v34  ;;  %v3892_v25 = vld [vmem:[%s6240_s2] sm:$0xff]   ;;  %3763 = vmatprep.mubr.msk.bf16.mxu1 %vm190_vm5, %v3902_v27 }
  0x2e   : > { %v412_v47 = vmax.f32 %v3471_v34, 0.0  ;;  %v232_v48 = vmul.f32 0.11448, %v3466_v35  ;;  %v246_v51 = vmul.f32 0.11448, %v3470_v44  ;;  %v407_v52 = vmax.f32 %v3466_v35, 0.0  ;;  %3689 = vmatprep.mubr.msk.bf16.mxu0 %vm190_vm5, %v3892_v25 }
  0x2f   : > { %6234 = vst [vmem:[#allocation13_spill] sm:$0xff] %v4340_v45  ;;  %v4342_v49 = vsub.f32 %v294_v39, %v298_v41  ;;  %v410_v50 = vmin.f32 %v408_v43, 1.0  ;;  %v411_v54 = vmax.f32 %v3470_v44, 0.0  ;;  %v235_v56 = vadd.f32 %v233_v42, %v231_v38  ;;  %v3893_v43 = vld [vmem:[%s6240_s2 + $0x8] sm:$0xff]   ;;  %v3928_v25 = vld [vmem:[%s6240_s2 + $0xb0] sm:$0xff]   ;;  %v3932_v27 = vld [vmem:[%s6240_s2 + $0xc0] sm:$0xff]  }
  0x30   : > { %378 = vrot.lane.b32.xlu1 %v4340_v45, %s4225_s5  ;;  %v414_v53 = vmin.f32 %v412_v47, 1.0  ;;  %v234_v55 = vadd.f32 %v232_v48, %v230_v31  ;;  %v409_v57 = vmin.f32 %v407_v52, 1.0  ;;  %v248_v58 = vadd.f32 %v246_v51, %v244_v36  ;;  %v3895_v48 = vld [vmem:[%s6240_s2 + $0x18] sm:$0xff]   ;;  %v3896_v51 = vld [vmem:[%s6240_s2 + $0x20] sm:$0xff]   ;;  %v3906_v52 = vld [vmem:[%s6240_s2 + $0x10] sm:$0xff]  }
  0x31   : > { %6235 = vst [vmem:[#allocation14_spill] sm:$0xff] %v4342_v49  ;;  %320 = vrot.lane.b32.xlu0 %v4342_v49, %s4226_s6  ;;  %v249_v59 = vadd.f32 %v247_v46, %v245_v40  ;;  %v413_v61 = vmin.f32 %v411_v54, 1.0  ;;  %v237_v63 = vmax.f32 %v235_v56, 0.0  ;;  %v4228_v6 = vmov 0   ;;  %v3894_v46 = vld [vmem:[%s6240_s2 + $0x10] sm:$0xff]   ;;  %v3907_v54 = vld [vmem:[%s6240_s2 + $0x18] sm:$0xff]  }
  0x32   : > { %v4346_v60 = vsub.f32 %v410_v50, %v414_v53  ;;  %v236_v62 = vmax.f32 %v234_v55, 0.0  ;;  %v250_v1 = vmax.f32 %v248_v58, 0.0  ;;  %191 = vst.msk [vmem:[#allocation3] sm:$0xff] %vm190_vm5, %v4228_v6  ;;  %192 = vst.msk [vmem:[#allocation3 + $0x8] sm:$0xff] %vm190_vm5, %v4228_v6  ;;  %v3903_v50 = vld [vmem:[%s6240_s2 + $0x8] sm:$0xff]   ;;  %v3898_v55 = vld [vmem:[%s6240_s2 + $0x30] sm:$0xff]  }
  0x33   : > { %v251_v2 = vmax.f32 %v249_v59, 0.0  ;;  %v4350_v3 = vsub.f32 %v409_v57, %v413_v61  ;;  %v239_v5 = vmin.f32 %v237_v63, 1.0  ;;  %193 = vst.msk [vmem:[#allocation3 + $0x10] sm:$0xff] %vm190_vm5, %v4228_v6  ;;  %194 = vst.msk [vmem:[#allocation3 + $0x18] sm:$0xff] %vm190_vm5, %v4228_v6  ;;  %v3897_v53 = vld [vmem:[%s6240_s2 + $0x28] sm:$0xff]   ;;  %v3910_v56 = vld [vmem:[%s6240_s2 + $0x20] sm:$0xff]  }
  0x34   : > { %6236 = vst [vmem:[#allocation15_spill] sm:$0xff] %v4346_v60  ;;  %436 = vrot.lane.b32.xlu1 %v4346_v60, %s4227_s7  ;;  %v238_v4 = vmin.f32 %v236_v62, 1.0  ;;  %195 = vst.msk [vmem:[#allocation3 + $0x20] sm:$0xff] %vm190_vm5, %v4228_v6  ;;  %v252_v7 = vmin.f32 %v250_v1, 1.0  ;;  %v3899_v57 = vld [vmem:[%s6240_s2 + $0x38] sm:$0xff]   ;;  %v3911_v58 = vld [vmem:[%s6240_s2 + $0x28] sm:$0xff]  }
  0x35   : > { %6237 = vst [vmem:[#allocation16_spill] sm:$0xff] %v4350_v3  ;;  %v253_v8 = vmin.f32 %v251_v2, 1.0  ;;  %434 = vrot.lane.b32.xlu0 %v4350_v3, %s4227_s7  ;;  %v3900_v59 = vld [vmem:[%s6240_s2 + $0x40] sm:$0xff]   ;;  %v3914_v61 = vld [vmem:[%s6240_s2 + $0x30] sm:$0xff]   ;;  %v3901_v62 = vld [vmem:[%s6240_s2 + $0x48] sm:$0xff]  }
  0x36   : > { %v4358_v9 = vsub.f32 %v238_v4, %v252_v7  ;;  %v3915_v63 = vld [vmem:[%s6240_s2 + $0x38] sm:$0xff]   ;;  %v3904_v1 = vld [vmem:[%s6240_s2 + $0x50] sm:$0xff]   ;;  %v3918_v2 = vld [vmem:[%s6240_s2 + $0x40] sm:$0xff]  }
  0x37   : > { %v4360_v10 = vsub.f32 %v239_v5, %v253_v8  ;;  %v3905_v4 = vld [vmem:[%s6240_s2 + $0x58] sm:$0xff]   ;;  %v3919_v5 = vld [vmem:[%s6240_s2 + $0x48] sm:$0xff]   ;;  %v3908_v6 = vld [vmem:[%s6240_s2 + $0x60] sm:$0xff]  }
  0x38   : > { %6238 = vst [vmem:[#allocation17_spill] sm:$0xff] %v4358_v9  ;;  %272 = vst.msk [vmem:[#allocation2] sm:$0xff] %vm258_vm6, %v4358_v9  ;;  %v3922_v7 = vld [vmem:[%s6240_s2 + $0x50] sm:$0xff]   ;;  %v3909_v8 = vld [vmem:[%s6240_s2 + $0x68] sm:$0xff]  }
  0x39   : > { %6239 = vst [vmem:[#allocation18_spill] sm:$0xff] %v4360_v10  ;;  %273 = vst.msk [vmem:[#allocation2 + $0x8] sm:$0xff] %vm258_vm6, %v4360_v10 }
  0x9e   : > { %v377_v11 = vpop.permute.xlu1 %376  ;;  %v319_v12 = vpop.permute.xlu0 %318 }
  0x9f   : > { %325 = vst.msk [vmem:[#allocation2] sm:$0xff] %vm324_vm7, %v319_v12  ;;  %v3912_v12 = vld [vmem:[%s6240_s2 + $0x70] sm:$0xff]  }
  0xa0   : > { %383 = vst.msk [vmem:[#allocation2] sm:$0xff] %vm382_vm8, %v377_v11  ;;  %v3923_v11 = vld [vmem:[%s6240_s2 + $0x58] sm:$0xff]  }
  0xa2   : > { %v379_v13 = vpop.permute.xlu1 %378 }
  0xa3   : > { %v321_v14 = vpop.permute.xlu0 %320 }
  0xa4   : > { %326 = vst.msk [vmem:[#allocation2 + $0x8] sm:$0xff] %vm324_vm7, %v321_v14  ;;  %v3913_v14 = vld [vmem:[%s6240_s2 + $0x78] sm:$0xff]  }
  0xa5   : > { %384 = vst.msk [vmem:[#allocation2 + $0x8] sm:$0xff] %vm382_vm8, %v379_v13  ;;  %v3926_v13 = vld [vmem:[%s6240_s2 + $0x60] sm:$0xff]  }
  0xa6   : > { %v437_v15 = vpop.permute.xlu1 %436 }
  0xa7   : > { %442 = vst.msk [vmem:[#allocation2 + $0x8] sm:$0xff] %vm440_vm9, %v437_v15  ;;  %v435_v16 = vpop.permute.xlu0 %434  ;;  %v3927_v15 = vld [vmem:[%s6240_s2 + $0x68] sm:$0xff]  }
  0xa8   : > { %441 = vst.msk [vmem:[#allocation2] sm:$0xff] %vm440_vm9, %v435_v16  ;;  %v3916_v16 = vld [vmem:[%s6240_s2 + $0x80] sm:$0xff]  }
  0xae   : > { %v449_v17 = vld [vmem:[#allocation2 + $0x8] sm:$0xf] }
  0xaf   : > { %v448_v18 = vld [vmem:[#allocation2] sm:$0xff]  ;;  %v1798_v20 = vld [vmem:[#allocation2 + $0x8] sm:$0xff] }
  0xb0   : > { %v450_v19 = vpack.c.bf16 %v449_v17, %v448_v18  ;;  %v1800_v23 = vpack.c.bf16 %v1799_v22, %v1798_v20  ;;  %v3930_v17 = vld [vmem:[%s6240_s2 + $0x70] sm:$0xff]   ;;  %v3917_v18 = vld [vmem:[%s6240_s2 + $0x88] sm:$0xff]   ;;  %v3921_v22 = vld [vmem:[%s6240_s2 + $0x98] sm:$0xff]  }
  0xb1   : > { %v3920_v20 = vld [vmem:[%s6240_s2 + $0x90] sm:$0xff]  }
  0xb2   : > { %459 = vrot.lane.b32.xlu1 %v450_v19, %s4229_s8  ;;  %454 = vrot.lane.b32.xlu0 %v450_v19, %s4230_s9  ;;  %452 = vst.msk [vmem:[#allocation3] sm:$0x3f] %vm451_vm10, %v450_v19 }
  0xb6   : > { %469 = vrot.lane.b32.xlu1 %v450_v19, %s4231_s10  ;;  %464 = vrot.lane.b32.xlu0 %v450_v19, %s4232_s11  ;;  %v3931_v19 = vld [vmem:[%s6240_s2 + $0x78] sm:$0xff]  }
  0xb9   : > { %v538_v24 = vld [vmem:[#allocation3] sm:$0xff] }
  0xba   : > { %1807 = vrot.lane.b32.xlu1 %v1800_v23, %s4229_s8  ;;  %1803 = vrot.lane.b32.xlu0 %v1800_v23, %s4230_s9  ;;  %1801 = vst.msk [vmem:[#allocation3] sm:$0x3f] %vm451_vm10, %v1800_v23 }
  0xbb   : > { %3679 = vmatprep.subr.bf16.mxu0 %v538_v24 }
  0xbc   : > { %3680 = vmatpush3.bf16.msra.mxu0 %v538_v24  ;;  %v3925_v24 = vld [vmem:[%s6240_s2 + $0xa8] sm:$0xff]  }
  0xbe   : > { %1815 = vrot.lane.b32.xlu1 %v1800_v23, %s4231_s10  ;;  %1811 = vrot.lane.b32.xlu0 %v1800_v23, %s4232_s11  ;;  %v3924_v23 = vld [vmem:[%s6240_s2 + $0xa0] sm:$0xff]   ;;  %s176_s10 = sand.u32 1, %s4214_s13  }
  0xc1   : > { %v1883_v26 = vld [vmem:[#allocation3] sm:$0xff] }
  0xc2   : > { %3753 = vmatprep.subr.bf16.mxu1 %v1883_v26 }
  0xc3   : > { %3754 = vmatpush3.bf16.msra.mxu1 %v1883_v26  ;;  %v3929_v26 = vld [vmem:[%s6240_s2 + $0xb8] sm:$0xff]  }
 0x124   : > { %v460_v28 = vpop.permute.xlu1 %459  ;;  %v455_v29 = vpop.permute.xlu0 %454 }
 0x125   : > { %463 = vst.msk [vmem:[#allocation3 + $0x10] sm:$0x3f] %vm462_vm11, %v460_v28  ;;  %v3933_v28 = vld [vmem:[%s6240_s2 + $0xc8] sm:$0xff]  }
 0x126   : > { %458 = vst.msk [vmem:[#allocation3 + $0x8] sm:$0x3f] %vm457_vm12, %v455_v29  ;;  %v3934_v29 = vld [vmem:[%s6240_s2 + $0xd0] sm:$0xff]  }
 0x128   : > { %v470_v31 = vpop.permute.xlu1 %469  ;;  %v465_v32 = vpop.permute.xlu0 %464 }
 0x129   : > { %473 = vst.msk [vmem:[#allocation3 + $0x20] sm:$0x3f] %vm472_vm13, %v470_v31  ;;  %v3935_v31 = vld [vmem:[%s6240_s2 + $0xd8] sm:$0xff]  }
 0x12a   : > { %468 = vst.msk [vmem:[#allocation3 + $0x18] sm:$0x3f] %vm467_vm14, %v465_v32  ;;  %v3936_v32 = vld [vmem:[%s6240_s2 + $0xe0] sm:$0xff]  }
 0x12c   : > { %v1808_v33 = vpop.permute.xlu1 %1807  ;;  %v1804_v34 = vpop.permute.xlu0 %1803  ;;  %v540_v36 = vld [vmem:[#allocation3 + $0x10] sm:$0xff] }
 0x12d   : > { %v539_v35 = vld [vmem:[#allocation3 + $0x8] sm:$0xff]  ;;  %1810 = vst.msk [vmem:[#allocation3 + $0x10] sm:$0x3f] %vm462_vm11, %v1808_v33  ;;  %v3937_v33 = vld [vmem:[%s6240_s2 + $0xe8] sm:$0xff]  }
 0x12e   : > { %3681 = vmatprep.subr.bf16.mxu0 %v539_v35  ;;  %1806 = vst.msk [vmem:[#allocation3 + $0x8] sm:$0x3f] %vm457_vm12, %v1804_v34  ;;  %v3938_v34 = vld [vmem:[%s6240_s2 + $0xf0] sm:$0xff]  }
 0x12f   : > { %3682 = vmatpush3.bf16.msra.mxu0 %v539_v35  ;;  %v3939_v35 = vld [vmem:[%s6240_s2 + $0xf8] sm:$0xff]  }
 0x130   : > { %3683 = vmatprep.subr.bf16.mxu0 %v540_v36  ;;  %v1816_v37 = vpop.permute.xlu1 %1815  ;;  %v1812_v38 = vpop.permute.xlu0 %1811  ;;  %v542_v40 = vld [vmem:[#allocation3 + $0x20] sm:$0xff] }
 0x131   : > { %v541_v39 = vld [vmem:[#allocation3 + $0x18] sm:$0xff]  ;;  %1818 = vst.msk [vmem:[#allocation3 + $0x20] sm:$0x3f] %vm472_vm13, %v1816_v37 }
 0x132   : > { %1814 = vst.msk [vmem:[#allocation3 + $0x18] sm:$0x3f] %vm467_vm14, %v1812_v38 }
 0x133   : > { %3684 = vmatpush3.bf16.msra.mxu0 %v540_v36 }
 0x134   : > { %3685 = vmatprep.subr.bf16.mxu0 %v541_v39  ;;  %v1885_v42 = vld [vmem:[#allocation3 + $0x10] sm:$0xff] }
 0x135   : > { %v1884_v41 = vld [vmem:[#allocation3 + $0x8] sm:$0xff] }
 0x136   : > { %3755 = vmatprep.subr.bf16.mxu1 %v1884_v41 }
 0x137   : > { %3686 = vmatpush3.bf16.msra.mxu0 %v541_v39  ;;  %3756 = vmatpush3.bf16.msra.mxu1 %v1884_v41 }
 0x138   : > { %3687 = vmatprep.subr.bf16.mxu0 %v542_v40  ;;  %3757 = vmatprep.subr.bf16.mxu1 %v1885_v42  ;;  %v1887_v47 = vld [vmem:[#allocation3 + $0x20] sm:$0xff] }
 0x139   : > { %v1886_v44 = vld [vmem:[#allocation3 + $0x18] sm:$0xff] }
 0x13b   : > { %3688 = vmatpush3.bf16.msra.mxu0 %v542_v40  ;;  %3758 = vmatpush3.bf16.msra.mxu1 %v1885_v42 }
 0x13c   : > { %3759 = vmatprep.subr.bf16.mxu1 %v1886_v44 }
 0x13e   : > { %3690 = vmatmul.mubr.msk.bf16.vlgmr.msra.gmra.mrb[0].mxu0 %vm190_vm5, %v3893_v43 }
 0x13f   : > { %3760 = vmatpush3.bf16.msra.mxu1 %v1886_v44  ;;  %3693 = vmatprep.mubr.msk.bf16.mxu0 %vm190_vm5, %v3894_v46 }
 0x140   : > { %3761 = vmatprep.subr.bf16.mxu1 %v1887_v47 }
 0x143   : > { %3762 = vmatpush3.bf16.msra.mxu1 %v1887_v47 }
 0x146   : > { %3694 = vmatmul.mubr.msk.bf16.gmra.mrb[4].mxu0 %vm190_vm5, %v3895_v48  ;;  %3764 = vmatmul.mubr.msk.bf16.vlgmr.msra.gmra.mrb[0].mxu1 %vm190_vm5, %v3903_v50 }
 0x147   : > { %3697 = vmatprep.mubr.msk.bf16.mxu0 %vm190_vm5, %v3896_v51  ;;  %3767 = vmatprep.mubr.msk.bf16.mxu1 %vm190_vm5, %v3906_v52 }
 0x14e   : > { %3698 = vmatmul.mubr.msk.bf16.gmra.mrb[8].mxu0 %vm190_vm5, %v3897_v53  ;;  %3768 = vmatmul.mubr.msk.bf16.gmra.mrb[4].mxu1 %vm190_vm5, %v3907_v54 }
 0x14f   : > { %3701 = vmatprep.mubr.msk.bf16.mxu0 %vm190_vm5, %v3898_v55  ;;  %3771 = vmatprep.mubr.msk.bf16.mxu1 %vm190_vm5, %v3910_v56 }
 0x156   : > { %3702 = vmatmul.mubr.msk.bf16.gmra.mrb[12].mxu0 %vm190_vm5, %v3899_v57  ;;  %3772 = vmatmul.mubr.msk.bf16.gmra.mrb[8].mxu1 %vm190_vm5, %v3911_v58 }
 0x157   : > { %3705 = vmatprep.mubr.msk.bf16.mxu0 %vm190_vm5, %v3900_v59  ;;  %3775 = vmatprep.mubr.msk.bf16.mxu1 %vm190_vm5, %v3914_v61 }
 0x15e   : > { %3706 = vmatmul.mubr.msk.bf16.gmra.mrb[16].mxu0 %vm190_vm5, %v3901_v62  ;;  %3776 = vmatmul.mubr.msk.bf16.gmra.mrb[12].mxu1 %vm190_vm5, %v3915_v63 }
 0x15f   : > { %3709 = vmatprep.mubr.msk.bf16.mxu0 %vm190_vm5, %v3904_v1  ;;  %3779 = vmatprep.mubr.msk.bf16.mxu1 %vm190_vm5, %v3918_v2 }
 0x166   : > { %3710 = vmatmul.mubr.msk.bf16.gmra.mrb[20].mxu0 %vm190_vm5, %v3905_v4  ;;  %3780 = vmatmul.mubr.msk.bf16.gmra.mrb[16].mxu1 %vm190_vm5, %v3919_v5 }
 0x167   : > { %3713 = vmatprep.mubr.msk.bf16.mxu0 %vm190_vm5, %v3908_v6  ;;  %3783 = vmatprep.mubr.msk.bf16.mxu1 %vm190_vm5, %v3922_v7 }
 0x16e   : > { %3714 = vmatmul.mubr.msk.bf16.gmra.mrb[24].mxu0 %vm190_vm5, %v3909_v8  ;;  %3784 = vmatmul.mubr.msk.bf16.gmra.mrb[20].mxu1 %vm190_vm5, %v3923_v11 }
 0x16f   : > { %3717 = vmatprep.mubr.msk.bf16.mxu0 %vm190_vm5, %v3912_v12  ;;  %3787 = vmatprep.mubr.msk.bf16.mxu1 %vm190_vm5, %v3926_v13 }
 0x176   : > { %3718 = vmatmul.mubr.msk.bf16.gmra.mrb[28].mxu0 %vm190_vm5, %v3913_v14  ;;  %3788 = vmatmul.mubr.msk.bf16.gmra.mrb[24].mxu1 %vm190_vm5, %v3927_v15 }
 0x177   : > { %3721 = vmatprep.mubr.msk.bf16.mxu0 %vm190_vm5, %v3916_v16  ;;  %3791 = vmatprep.mubr.msk.bf16.mxu1 %vm190_vm5, %v3930_v17 }
 0x17e   : > { %3722 = vmatmul.mubr.msk.bf16.gmra.mrb[32].mxu0 %vm190_vm5, %v3917_v18  ;;  %3792 = vmatmul.mubr.msk.bf16.gmra.mrb[28].mxu1 %vm190_vm5, %v3931_v19 }
 0x17f   : > { %3725 = vmatprep.mubr.msk.bf16.mxu0 %vm190_vm5, %v3920_v20 }
 0x186   : > { %3726 = vmatmul.mubr.msk.bf16.gmra.mrb[36].mxu0 %vm190_vm5, %v3921_v22 }
 0x187   : > { %3729 = vmatprep.mubr.msk.bf16.mxu0 %vm190_vm5, %v3924_v23 }
 0x18e   : > { %3730 = vmatmul.mubr.msk.bf16.gmra.mrb[40].mxu0 %vm190_vm5, %v3925_v24 }
 0x18f   : > { %3733 = vmatprep.mubr.msk.bf16.mxu0 %vm190_vm5, %v3928_v25 }
 0x196   : > { %3734 = vmatmul.mubr.msk.bf16.gmra.mrb[44].mxu0 %vm190_vm5, %v3929_v26 }
 0x197   : > { %3737 = vmatprep.mubr.msk.bf16.mxu0 %vm190_vm5, %v3932_v27 }
 0x19e   : > { %3738 = vmatmul.mubr.msk.bf16.gmra.mrb[48].mxu0 %vm190_vm5, %v3933_v28 }
 0x19f   : > { %3741 = vmatprep.mubr.msk.bf16.mxu0 %vm190_vm5, %v3934_v29 }
 0x1a6   : > { %3742 = vmatmul.mubr.msk.bf16.gmra.mrb[52].mxu0 %vm190_vm5, %v3935_v31 }
 0x1a7   : > { %3745 = vmatprep.mubr.msk.bf16.mxu0 %vm190_vm5, %v3936_v32 }
 0x1ae   : > { %3746 = vmatmul.mubr.msk.bf16.gmra.mrb[56].mxu0 %vm190_vm5, %v3937_v33 }
 0x1af   : > { %3749 = vmatprep.mubr.msk.bf16.mxu0 %vm190_vm5, %v3938_v34 }
 0x1b6   : > { %3750 = vmatmul.mubr.msk.bf16.gmra.mrb[60].mxu0 %vm190_vm5, %v3939_v35 }
 0x211   : > { %v3691_v36 = vpop.f32.mrb[0].mxu0 }
 0x212   : > { %v1090_v37 = vmul.f32 %v3691_v36, %v3691_v36  ;;  %v833_v38 = vpop.f32.mrb[1].mxu0 }
 0x213   : > { %v1088_v39 = vmul.f32 %v833_v38, %v833_v38  ;;  %v3692_v40 = vpop.f32.mrb[2].mxu0 }
 0x214   : > { %v4568_v41 = vadd.f32 1e-06, %v1090_v37  ;;  %v1091_v42 = vmul.f32 %v3692_v40, %v3692_v40  ;;  %v836_v43 = vpop.f32.mrb[3].mxu0 }
 0x215   : > { %v1152_v44 = vadd.f32 1e-06, %v1088_v39  ;;  %v1089_v46 = vmul.f32 %v836_v43, %v836_v43 }
 0x216   : > { %3956 = vrsqrt.f32 %v4568_v41  ;;  %v4571_v47 = vadd.f32 1e-06, %v1091_v42  ;;  %vm1232_vm15 = vcmp.eq.f32.partialorder %v4568_v41, inf  ;;  %vm1234_vm0 = vcmp.eq.f32.partialorder %v4568_v41, 0.0 }
 0x217   : > { %3958 = vrsqrt.f32 %v1152_v44  ;;  %v4573_v48 = vadd.f32 1e-06, %v1089_v46  ;;  %v1235_v8 = vand.u32 2147483648, %v4568_v41  ;;  %vm1218_vm1 = vcmp.eq.f32.partialorder %v1152_v44, inf }
 0x218   : > { %3960 = vrsqrt.f32 %v4571_v47  ;;  %vm1220_vm2 = vcmp.eq.f32.partialorder %v1152_v44, 0.0  ;;  %v1221_v16 = vand.u32 2147483648, %v1152_v44  ;;  %vm1239_vm3 = vcmp.eq.f32.partialorder %v4571_v47, inf }
 0x219   : > { %v3695_v50 = vpop.f32.mrb[4].mxu0  ;;  %v3765_v51 = vpop.f32.mrb[0].mxu1  ;;  %3962 = vrsqrt.f32 %v4573_v48  ;;  %vm1241_vm4 = vcmp.eq.f32.partialorder %v4571_v47, 0.0  ;;  %v1242_v22 = vand.u32 2147483648, %v4571_v47  ;;  %vm1225_vm7 = vcmp.eq.f32.partialorder %v4573_v48, inf }
 0x21a   : > { %v849_v52 = vpop.f32.mrb[5].mxu0  ;;  %v4576_v53 = vpop.f32.mrb[1].mxu1  ;;  %v1094_v56 = vmul.f32 %v3695_v50, %v3695_v50  ;;  %vm1227_vm8 = vcmp.eq.f32.partialorder %v4573_v48, 0.0  ;;  %v1228_v28 = vand.u32 2147483648, %v4573_v48  ;;  %v4617_v29 = vmul.f32 %v3765_v51, %v3765_v51 }
 0x21b   : > { %v3696_v54 = vpop.f32.mrb[6].mxu0  ;;  %v4579_v55 = vpop.f32.mrb[2].mxu1  ;;  %v1092_v57 = vmul.f32 %v849_v52, %v849_v52 }
 0x21c   : > { %v1095_v58 = vmul.f32 %v3696_v54, %v3696_v54  ;;  %v852_v59 = vpop.f32.mrb[7].mxu0  ;;  %v4581_v61 = vpop.f32.mrb[3].mxu1  ;;  %v4583_v63 = vadd.f32 1e-06, %v1094_v56 }
 0x21d   : > { %v1093_v62 = vmul.f32 %v852_v59, %v852_v59  ;;  %v4585_v1 = vadd.f32 1e-06, %v1092_v57 }
 0x21e   : > { %v4587_v2 = vadd.f32 1e-06, %v1095_v58  ;;  %3964 = vrsqrt.f32 %v4583_v63  ;;  %vm1260_vm9 = vcmp.eq.f32.partialorder %v4583_v63, inf  ;;  %v1263_v36 = vand.u32 2147483648, %v4583_v63 }
 0x21f   : > { %v4589_v4 = vadd.f32 1e-06, %v1093_v62  ;;  %3966 = vrsqrt.f32 %v4585_v1  ;;  %vm1262_vm10 = vcmp.eq.f32.partialorder %v4583_v63, 0.0  ;;  %vm1246_vm11 = vcmp.eq.f32.partialorder %v4585_v1, inf }
 0x220   : > { %v3957_v5 = vpop.eup %3956  ;;  %3968 = vrsqrt.f32 %v4587_v2  ;;  %vm1248_vm12 = vcmp.eq.f32.partialorder %v4585_v1, 0.0  ;;  %vm1267_vm13 = vcmp.eq.f32.partialorder %v4587_v2, inf }
 0x221   : > { %v3959_v6 = vpop.eup %3958  ;;  %v1231_v7 = vmul.f32 %v3957_v5, %v4568_v41  ;;  %v3699_v11 = vpop.f32.mrb[8].mxu0  ;;  %3970 = vrsqrt.f32 %v4589_v4  ;;  %vm1253_vm14 = vcmp.eq.f32.partialorder %v4589_v4, inf }
 0x222   : > { %v4597_v12 = vpop.f32.mrb[4].mxu1  ;;  %v1217_v13 = vmul.f32 %v3959_v6, %v1152_v44  ;;  %v865_v14 = vpop.f32.mrb[9].mxu0  ;;  %v1098_v33 = vmul.f32 %v3699_v11, %v3699_v11 }
 0x223   : > { %v4600_v15 = vpop.f32.mrb[5].mxu1  ;;  %v3700_v17 = vpop.f32.mrb[10].mxu0  ;;  %v1233_v26 = vsel %vm1232_vm15, %v4568_v41, %v1231_v7  ;;  %v1096_v34 = vmul.f32 %v865_v14, %v865_v14  ;;  %vm1255_vm15 = vcmp.eq.f32.partialorder %v4589_v4, 0.0 }
 0x224   : > { %v4605_v18 = vpop.f32.mrb[6].mxu1  ;;  %v3961_v19 = vpop.eup %3960  ;;  %v1219_v20 = vsel %vm1218_vm1, %v1152_v44, %v1217_v13  ;;  %v1099_v37 = vmul.f32 %v3700_v17, %v3700_v17  ;;  %v4631_v39 = vadd.f32 1e-06, %v1098_v33  ;;  %v1236_v42 = vsel %vm1234_vm0, %v1235_v8, %v1233_v26 }
 0x225   : > { %v868_v23 = vpop.f32.mrb[11].mxu0  ;;  %v4610_v24 = vpop.f32.mrb[7].mxu1  ;;  %v1238_v27 = vmul.f32 %v3961_v19, %v4571_v47  ;;  %v1222_v31 = vsel %vm1220_vm2, %v1221_v16, %v1219_v20  ;;  %v4633_v40 = vadd.f32 1e-06, %v1096_v34  ;;  %v1667_v6 = vsel %vm190_vm5, %v1236_v42, 0.0 }
 0x226   : > { %v3963_v25 = vpop.eup %3962  ;;  %v1664_v43 = vsel %vm190_vm5, %v1222_v31, 0.0  ;;  %v1097_v46 = vmul.f32 %v868_v23, %v868_v23  ;;  %3972 = vrsqrt.f32 %v4631_v39  ;;  %v4644_v56 = vadd.f32 1e-06, %v1099_v37 }
 0x227   : > { %v1224_v32 = vmul.f32 %v3963_v25, %v4573_v48  ;;  %v1240_v35 = vsel %vm1239_vm3, %v4571_v47, %v1238_v27  ;;  %3974 = vrsqrt.f32 %v4633_v40  ;;  %v1249_v8 = vand.u32 2147483648, %v4585_v1 }
 0x228   : > { %v3965_v51 = vpop.eup %3964  ;;  %v1243_v52 = vsel %vm1241_vm4, %v1242_v22, %v1240_v35  ;;  %v4661_v20 = vadd.f32 1e-06, %v1097_v46  ;;  %3976 = vrsqrt.f32 %v4644_v56  ;;  %v1256_v31 = vand.u32 2147483648, %v4589_v4 }
 0x229   : > { %v1226_v38 = vsel %vm1225_vm7, %v4573_v48, %v1224_v32  ;;  %v3703_v50 = vpop.f32.mrb[12].mxu0  ;;  %v4646_v41 = vpop.f32.mrb[8].mxu1  ;;  %v1259_v48 = vmul.f32 %v3965_v51, %v4583_v63  ;;  %v1669_v16 = vsel %vm190_vm5, %v1243_v52, 0.0  ;;  %v1270_v37 = vand.u32 2147483648, %v4587_v2 }
 0x22a   : > { %v1229_v44 = vsel %vm1227_vm8, %v1228_v28, %v1226_v38  ;;  %v881_v57 = vpop.f32.mrb[13].mxu0  ;;  %v3967_v58 = vpop.eup %3966  ;;  %vm1269_vm0 = vcmp.eq.f32.partialorder %v4587_v2, 0.0  ;;  %3978 = vrsqrt.f32 %v4661_v20  ;;  %vm1274_vm1 = vcmp.eq.f32.partialorder %v4633_v40, inf }
 0x22b   : > { %v1665_v54 = vsel %vm190_vm5, %v1229_v44, 0.0  ;;  %v3704_v62 = vpop.f32.mrb[14].mxu0  ;;  %v4651_v47 = vpop.f32.mrb[9].mxu1  ;;  %v1245_v7 = vmul.f32 %v3967_v58, %v4585_v1  ;;  %v1261_v23 = vsel %vm1260_vm9, %v4583_v63, %v1259_v48  ;;  %v1102_v63 = vmul.f32 %v3703_v50, %v3703_v50 }
 0x22c   : > { %v1666_v59 = vadd.f32 %v1665_v54, %v1664_v43  ;;  %v3969_v5 = vpop.eup %3968  ;;  %v884_v11 = vpop.f32.mrb[15].mxu0  ;;  %v1264_v35 = vsel %vm1262_vm10, %v1263_v36, %v1261_v23  ;;  %v1100_v36 = vmul.f32 %v881_v57, %v881_v57  ;;  %vm1276_vm2 = vcmp.eq.f32.partialorder %v4633_v40, 0.0 }
 0x22d   : > { %v4657_v13 = vpop.f32.mrb[10].mxu1  ;;  %v3971_v14 = vpop.eup %3970  ;;  %v1266_v19 = vmul.f32 %v3969_v5, %v4587_v2  ;;  %v1247_v25 = vsel %vm1246_vm11, %v4585_v1, %v1245_v7  ;;  %v1675_v48 = vsel %vm190_vm5, %v1264_v35, 0.0  ;;  %v1103_v5 = vmul.f32 %v3704_v62, %v3704_v62 }
 0x22e   : > { %v1668_v17 = vadd.f32 %v1667_v6, %v1666_v59  ;;  %v4663_v22 = vpop.f32.mrb[11].mxu1  ;;  %v1252_v26 = vmul.f32 %v3971_v14, %v4589_v4  ;;  %v1250_v27 = vsel %vm1248_vm12, %v1249_v8, %v1247_v25  ;;  %v4699_v6 = vadd.f32 1e-06, %v4617_v29 }
 0x22f   : > { %v1671_v32 = vsel %vm190_vm5, %v1250_v27, 0.0  ;;  %v1268_v33 = vsel %vm1267_vm13, %v4587_v2, %v1266_v19  ;;  %v2433_v7 = vmul.f32 %v4576_v53, %v4576_v53  ;;  %v4705_v57 = vadd.f32 1e-06, %v1102_v63 }
 0x230   : > { %v1670_v28 = vadd.f32 %v1669_v16, %v1668_v17  ;;  %v1254_v34 = vsel %vm1253_vm14, %v4589_v4, %v1252_v26  ;;  %v1271_v4 = vsel %vm1269_vm0, %v1270_v37, %v1268_v33  ;;  %v3973_v59 = vpop.eup %3972  ;;  %v4707_v16 = vadd.f32 1e-06, %v1100_v36 }
 0x231   : > { %v1257_v38 = vsel %vm1255_vm15, %v1256_v31, %v1254_v34  ;;  %v3707_v42 = vpop.f32.mrb[16].mxu0  ;;  %v4686_v43 = vpop.f32.mrb[12].mxu1  ;;  %v1101_v17 = vmul.f32 %v884_v11, %v884_v11  ;;  %v1677_v19 = vsel %vm190_vm5, %v1271_v4, 0.0  ;;  %v1277_v29 = vand.u32 2147483648, %v4633_v40 }
 0x232   : > { %v1672_v1 = vadd.f32 %v1671_v32, %v1670_v28  ;;  %v1673_v44 = vsel %vm190_vm5, %v1257_v38, 0.0  ;;  %v897_v46 = vpop.f32.mrb[17].mxu0  ;;  %v4691_v51 = vpop.f32.mrb[13].mxu1  ;;  %v1287_v23 = vmul.f32 %v3973_v59, %v4631_v39  ;;  %3980 = vrsqrt.f32 %v4705_v57 }
 0x233   : > { %v4693_v54 = vpop.f32.mrb[18].mxu0  ;;  %v4695_v58 = vpop.f32.mrb[14].mxu1  ;;  %v4715_v25 = vadd.f32 1e-06, %v1103_v5  ;;  %v1106_v11 = vmul.f32 %v3707_v42, %v3707_v42  ;;  %3982 = vrsqrt.f32 %v4699_v6  ;;  %v4721_v31 = vadd.f32 1e-06, %v1101_v17 }
 0x234   : > { %v1674_v52 = vadd.f32 %v1673_v44, %v1672_v1  ;;  %v900_v2 = vpop.f32.mrb[19].mxu0  ;;  %v4703_v8 = vpop.f32.mrb[15].mxu1  ;;  %3984 = vrsqrt.f32 %v4707_v16  ;;  %v4723_v32 = vadd.f32 1e-06, %v2433_v7  ;;  %vm1288_vm3 = vcmp.eq.f32.partialorder %v4631_v39, inf }
 0x235   : > { %v3975_v14 = vpop.eup %3974  ;;  %vm1290_vm4 = vcmp.eq.f32.partialorder %v4631_v39, 0.0  ;;  %v1104_v35 = vmul.f32 %v897_v46, %v897_v46  ;;  %v1289_v38 = vsel %vm1288_vm3, %v4631_v39, %v1287_v23  ;;  %3986 = vrsqrt.f32 %v4715_v25 }
 0x236   : > { %v1676_v50 = vadd.f32 %v1675_v48, %v1674_v52  ;;  %v1273_v62 = vmul.f32 %v3975_v14, %v4633_v40  ;;  %v3977_v26 = vpop.eup %3976  ;;  %v1291_v36 = vand.u32 2147483648, %v4631_v39  ;;  %vm1295_vm7 = vcmp.eq.f32.partialorder %v4644_v56, inf }
 0x237   : > { %v1294_v44 = vmul.f32 %v3977_v26, %v4644_v56  ;;  %v3979_v63 = vpop.eup %3978  ;;  %v4745_v46 = vadd.f32 1e-06, %v1106_v11  ;;  %v4749_v59 = vmul.f32 %v4579_v55, %v4579_v55  ;;  %vm1297_vm8 = vcmp.eq.f32.partialorder %v4644_v56, 0.0 }
 0x238   : > { %v1678_v53 = vadd.f32 %v1677_v19, %v1676_v50  ;;  %v1275_v27 = vsel %vm1274_vm1, %v4633_v40, %v1273_v62  ;;  %v1298_v7 = vand.u32 2147483648, %v4644_v56  ;;  %v1280_v14 = vmul.f32 %v3979_v63, %v4661_v20 }
 0x239   : > { %v1278_v28 = vsel %vm1276_vm2, %v1277_v29, %v1275_v27  ;;  %v4725_v33 = vpop.f32.mrb[20].mxu0  ;;  %v4727_v34 = vpop.f32.mrb[16].mxu1  ;;  %3988 = vrsqrt.f32 %v4721_v31  ;;  %v1292_v50 = vsel %vm1290_vm4, %v1291_v36, %v1289_v38  ;;  %vm1281_vm9 = vcmp.eq.f32.partialorder %v4661_v20, inf }
 0x23a   : > { %v1679_v40 = vsel %vm190_vm5, %v1278_v28, 0.0  ;;  %v4732_v1 = vpop.f32.mrb[21].mxu0  ;;  %v4734_v37 = vpop.f32.mrb[17].mxu1  ;;  %vm1283_vm10 = vcmp.eq.f32.partialorder %v4661_v20, 0.0  ;;  %v1284_v55 = vand.u32 2147483648, %v4661_v20  ;;  %v1296_v17 = vsel %vm1295_vm7, %v4644_v56, %v1294_v44 }
 0x23b   : > { %v1680_v42 = vadd.f32 %v1679_v40, %v1678_v53  ;;  %v4739_v4 = vpop.f32.mrb[22].mxu0  ;;  %v4741_v52 = vpop.f32.mrb[18].mxu1  ;;  %v1282_v19 = vsel %vm1281_vm9, %v4661_v20, %v1280_v14  ;;  %v4766_v62 = vadd.f32 1e-06, %v1104_v35  ;;  %v1107_v29 = vmul.f32 %v4693_v54, %v4693_v54 }
 0x23c   : > { %v4751_v48 = vpop.f32.mrb[23].mxu0  ;;  %v4753_v5 = vpop.f32.mrb[19].mxu1  ;;  %v1285_v23 = vsel %vm1283_vm10, %v1284_v55, %v1282_v19  ;;  %vm1316_vm11 = vcmp.eq.f32.partialorder %v4705_v57, inf  ;;  %3990 = vrsqrt.f32 %v4745_v46  ;;  %v1105_v39 = vmul.f32 %v900_v2, %v900_v2 }
 0x23d   : > { %v3981_v53 = vpop.eup %3980  ;;  %v1683_v26 = vsel %vm190_vm5, %v1292_v50, 0.0  ;;  %v1681_v27 = vsel %vm190_vm5, %v1285_v23, 0.0  ;;  %v1319_v11 = vand.u32 2147483648, %v4705_v57  ;;  %3992 = vrsqrt.f32 %v4766_v62 }
 0x23e   : > { %v3983_v54 = vpop.eup %3982  ;;  %v1299_v40 = vsel %vm1297_vm8, %v1298_v7, %v1296_v17  ;;  %v1682_v35 = vadd.f32 %v1681_v27, %v1680_v42  ;;  %vm1318_vm12 = vcmp.eq.f32.partialorder %v4705_v57, 0.0  ;;  %vm1302_vm13 = vcmp.eq.f32.partialorder %v4707_v16, inf }
 0x23f   : > { %v4784_v2 = vadd.f32 1e-06, %v1107_v29  ;;  %v3985_v63 = vpop.eup %3984  ;;  %vm1304_vm14 = vcmp.eq.f32.partialorder %v4707_v16, 0.0  ;;  %v1305_v36 = vand.u32 2147483648, %v4707_v16  ;;  %v4792_v14 = vadd.f32 1e-06, %v1105_v39 }
 0x240   : > { %v4796_v56 = vmul.f32 %v4581_v61, %v4581_v61  ;;  %v1684_v50 = vadd.f32 %v1683_v26, %v1682_v35  ;;  %v1315_v55 = vmul.f32 %v3981_v53, %v4705_v57  ;;  %v1301_v17 = vmul.f32 %v3985_v63, %v4707_v16  ;;  %v3987_v23 = vpop.eup %3986 }
 0x241   : > { %v4776_v20 = vpop.f32.mrb[24].mxu0  ;;  %v4778_v28 = vpop.f32.mrb[20].mxu1  ;;  %3994 = vrsqrt.f32 %v4784_v2  ;;  %v1685_v39 = vsel %vm190_vm5, %v1299_v40, 0.0  ;;  %vm1323_vm15 = vcmp.eq.f32.partialorder %v4715_v25, inf  ;;  %vm1325_vm0 = vcmp.eq.f32.partialorder %v4715_v25, 0.0 }
 0x242   : > { %v4786_v38 = vpop.f32.mrb[25].mxu0  ;;  %v4788_v44 = vpop.f32.mrb[21].mxu1  ;;  %v1326_v61 = vand.u32 2147483648, %v4715_v25  ;;  %v1303_v53 = vsel %vm1302_vm13, %v4707_v16, %v1301_v17  ;;  %v1686_v26 = vadd.f32 %v1685_v39, %v1684_v50  ;;  %v1322_v27 = vmul.f32 %v3987_v23, %v4715_v25 }
 0x243   : > { %v4798_v42 = vpop.f32.mrb[26].mxu0  ;;  %v4800_v7 = vpop.f32.mrb[22].mxu1  ;;  %vm1309_vm1 = vcmp.eq.f32.partialorder %v4721_v31, inf  ;;  %v1306_v63 = vsel %vm1304_vm14, %v1305_v36, %v1303_v53  ;;  %vm1311_vm2 = vcmp.eq.f32.partialorder %v4721_v31, 0.0  ;;  %v1312_v40 = vand.u32 2147483648, %v4721_v31 }
 0x244   : > { %v4805_v19 = vpop.f32.mrb[27].mxu0  ;;  %v4807_v29 = vpop.f32.mrb[23].mxu1  ;;  %3996 = vrsqrt.f32 %v4792_v14  ;;  %v1317_v0 = vsel %vm1316_vm11, %v4705_v57, %v1315_v55  ;;  %v1687_v50 = vsel %vm190_vm5, %v1306_v63, 0.0  ;;  %v2576_v23 = vmul.f32 %v3983_v54, %v4699_v6 }
 0x245   : > { %v3989_v35 = vpop.eup %3988  ;;  %v1688_v39 = vadd.f32 %v1687_v50, %v1686_v26  ;;  %vm1344_vm3 = vcmp.eq.f32.partialorder %v4745_v46, inf  ;;  %vm2577_vm4 = vcmp.eq.f32.partialorder %v4699_v6, inf  ;;  %v1324_v55 = vsel %vm1323_vm15, %v4715_v25, %v1322_v27 }
 0x246   : > { %v1308_v17 = vmul.f32 %v3989_v35, %v4721_v31  ;;  %v3991_v53 = vpop.eup %3990  ;;  %vm1330_vm7 = vcmp.eq.f32.partialorder %v4766_v62, inf  ;;  %3998 = vrsqrt.f32 %v4723_v32  ;;  %v1320_v50 = vsel %vm1318_vm12, %v1319_v11, %v1317_v0 }
 0x247   : > { %v3993_v63 = vpop.eup %3992  ;;  %vm1332_vm8 = vcmp.eq.f32.partialorder %v4766_v62, 0.0  ;;  %v1333_v27 = vand.u32 2147483648, %v4766_v62  ;;  %vm1346_vm9 = vcmp.eq.f32.partialorder %v4745_v46, 0.0  ;;  %v2578_v0 = vsel %vm2577_vm4, %v4699_v6, %v2576_v23 }
 0x248   : > { %v1310_v35 = vsel %vm1309_vm1, %v4721_v31, %v1308_v17  ;;  %v1329_v45 = vmul.f32 %v3993_v63, %v4766_v62  ;;  %vm2579_vm10 = vcmp.eq.f32.partialorder %v4699_v6, 0.0  ;;  %v1327_v31 = vsel %vm1325_vm0, %v1326_v61, %v1324_v55 }
 0x249   : > { %v4832_v36 = vpop.f32.mrb[28].mxu0  ;;  %v4844_v26 = vpop.f32.mrb[24].mxu1  ;;  %v1313_v16 = vsel %vm1311_vm2, %v1312_v40, %v1310_v35  ;;  %v1110_v40 = vmul.f32 %v4725_v33, %v4725_v33  ;;  %v1691_v63 = vsel %vm190_vm5, %v1320_v50, 0.0  ;;  %v1343_v49 = vmul.f32 %v3991_v53, %v4745_v46 }
 0x24a   : > { %v4842_v54 = vpop.f32.mrb[29].mxu0  ;;  %6241 = vst [vmem:[#allocation19_spill] sm:$0xff] %v4844_v26  ;;  %v4854_v60 = vpop.f32.mrb[25].mxu1  ;;  %v1689_v3 = vsel %vm190_vm5, %v1313_v16, 0.0  ;;  %v4870_v16 = vadd.f32 1e-06, %v4749_v59  ;;  %v1331_v23 = vsel %vm1330_vm7, %v4766_v62, %v1329_v45  ;;  %v1108_v25 = vmul.f32 %v4732_v1, %v4732_v1 }
 0x24b   : > { %v4852_v17 = vpop.f32.mrb[30].mxu0  ;;  %6242 = vst [vmem:[#allocation20_spill] sm:$0xff] %v4854_v60  ;;  %v1690_v11 = vadd.f32 %v1689_v3, %v1688_v39  ;;  %v3995_v35 = vpop.eup %3994  ;;  %v1334_v33 = vsel %vm1332_vm8, %v1333_v27, %v1331_v23  ;;  %v4884_v39 = vadd.f32 1e-06, %v1110_v40  ;;  %v1693_v55 = vsel %vm190_vm5, %v1327_v31, 0.0 }
 0x24c   : > { %v4863_v57 = vpop.f32.mrb[31].mxu0  ;;  %v4879_v61 = vpop.f32.mrb[26].mxu1  ;;  %v1350_v59 = vmul.f32 %v3995_v35, %v4784_v2  ;;  %v1695_v53 = vsel %vm190_vm5, %v1334_v33, 0.0  ;;  %4000 = vrsqrt.f32 %v4870_v16  ;;  %v4890_v45 = vadd.f32 1e-06, %v4796_v56 }
 0x24d   : > { %6243 = vst [vmem:[#allocation21_spill] sm:$0xff] %v4879_v61  ;;  %v1692_v3 = vadd.f32 %v1691_v63, %v1690_v11  ;;  %vm1351_vm11 = vcmp.eq.f32.partialorder %v4784_v2, inf  ;;  %v2580_v62 = vand.u32 2147483648, %v4699_v6  ;;  %4002 = vrsqrt.f32 %v4884_v39  ;;  %v4897_v11 = vpop.f32.mrb[27].mxu1 }
 0x24e   : > { %v3997_v1 = vpop.eup %3996  ;;  %6244 = vst [vmem:[#allocation22_spill] sm:$0xff] %v4897_v11  ;;  %v1345_v31 = vsel %vm1344_vm3, %v4745_v46, %v1343_v49  ;;  %vm1337_vm12 = vcmp.eq.f32.partialorder %v4792_v14, inf  ;;  %v1340_v56 = vand.u32 2147483648, %v4792_v14  ;;  %v1352_v23 = vsel %vm1351_vm11, %v4784_v2, %v1350_v59 }
 0x24f   : > { %v1694_v50 = vadd.f32 %v1693_v55, %v1692_v3  ;;  %v1336_v40 = vmul.f32 %v3997_v1, %v4792_v14  ;;  %v4908_v3 = vadd.f32 1e-06, %v1108_v25  ;;  %v1111_v33 = vmul.f32 %v4739_v4, %v4739_v4 }
 0x250   : > { %v3999_v10 = vpop.eup %3998  ;;  %v1354_v49 = vand.u32 2147483648, %v4784_v2  ;;  %vm1339_vm13 = vcmp.eq.f32.partialorder %v4792_v14, 0.0  ;;  %4004 = vrsqrt.f32 %v4890_v45  ;;  %v6245_v59 = vand.u32 2147483648, %v4745_v46 }
 0x251   : > { %v4895_v27 = vpop.f32.mrb[32].mxu0  ;;  %v1696_v63 = vadd.f32 %v1695_v53, %v1694_v50  ;;  %v1338_v1 = vsel %vm1337_vm12, %v4792_v14, %v1336_v40  ;;  %vm1353_vm14 = vcmp.eq.f32.partialorder %v4784_v2, 0.0  ;;  %4006 = vrsqrt.f32 %v4908_v3 }
 0x252   : > { %v4905_v35 = vpop.f32.mrb[33].mxu0  ;;  %v1348_v25 = vsel %vm1346_vm9, %v6245_v59, %v1345_v31  ;;  %v1341_v4 = vsel %vm1339_vm13, %v1340_v56, %v1338_v1  ;;  %v1355_v53 = vsel %vm1353_vm14, %v1354_v49, %v1352_v23  ;;  %v2581_v14 = vsel %vm2579_vm10, %v2580_v62, %v2578_v0 }
 0x253   : > { %v4912_v55 = vpop.f32.mrb[34].mxu0  ;;  %v1697_v50 = vsel %vm190_vm5, %v1341_v4, 0.0  ;;  %vm2563_vm15 = vcmp.eq.f32.partialorder %v4723_v32, inf  ;;  %v2562_v11 = vmul.f32 %v3999_v10, %v4723_v32  ;;  %v4931_v61 = vadd.f32 1e-06, %v1111_v33 }
 0x254   : > { %v4918_v9 = vpop.f32.mrb[35].mxu0  ;;  %v1698_v40 = vadd.f32 %v1697_v50, %v1696_v63  ;;  %v1109_v46 = vmul.f32 %v4751_v48, %v4751_v48  ;;  %v1699_v2 = vsel %vm190_vm5, %v1348_v25, 0.0  ;;  %vm2565_vm0 = vcmp.eq.f32.partialorder %v4723_v32, 0.0 }
 0x255   : > { %v2439_v31 = vmul.f32 %v4597_v12, %v4597_v12  ;;  %v2437_v6 = vmul.f32 %v4600_v15, %v4600_v15  ;;  %v2566_v62 = vand.u32 2147483648, %v4723_v32  ;;  %vm2584_vm1 = vcmp.eq.f32.partialorder %v4870_v16, inf }
 0x256   : > { %v1700_v0 = vadd.f32 %v1699_v2, %v1698_v40  ;;  %4008 = vrsqrt.f32 %v4931_v61  ;;  %v4001_v48 = vpop.eup %4000  ;;  %v1701_v56 = vsel %vm190_vm5, %v1355_v53, 0.0  ;;  %v2587_v63 = vand.u32 2147483648, %v4870_v16 }
 0x257   : > { %v4948_v23 = vadd.f32 1e-06, %v1109_v46  ;;  %v4950_v12 = vadd.f32 1e-06, %v2439_v31  ;;  %v4003_v33 = vpop.eup %4002  ;;  %v2564_v15 = vsel %vm2563_vm15, %v4723_v32, %v2562_v11  ;;  %v2583_v49 = vmul.f32 %v4001_v48, %v4870_v16  ;;  %v4986_v32 = vpop.f32.mrb[28].mxu1 }
 0x258   : > { %v1702_v1 = vadd.f32 %v1701_v56, %v1700_v0  ;;  %v4956_v59 = vadd.f32 1e-06, %v2437_v6  ;;  %v3205_v4 = vsel %vm190_vm5, %v2581_v14, 0.0  ;;  %vm2586_vm2 = vcmp.eq.f32.partialorder %v4870_v16, 0.0  ;;  %6246 = vst [vmem:[#allocation23_spill] sm:$0xff] %v4986_v32 }
 0x259   : > { %v4944_v10 = vpop.f32.mrb[36].mxu0  ;;  %4010 = vrsqrt.f32 %v4948_v23  ;;  %v1114_v53 = vmul.f32 %v4776_v20, %v4776_v20  ;;  %vm1372_vm3 = vcmp.eq.f32.partialorder %v4884_v39, inf  ;;  %v1375_v11 = vand.u32 2147483648, %v4884_v39 }
 0x25a   : > { %v4958_v25 = vpop.f32.mrb[37].mxu0  ;;  %v2585_v40 = vsel %vm2584_vm1, %v4870_v16, %v2583_v49  ;;  %vm2570_vm4 = vcmp.eq.f32.partialorder %v4890_v45, inf  ;;  %v4005_v46 = vpop.eup %4004  ;;  %v2567_v2 = vsel %vm2565_vm0, %v2566_v62, %v2564_v15  ;;  %v1371_v20 = vmul.f32 %v4003_v33, %v4884_v39 }
 0x25b   : > { %v4965_v50 = vpop.f32.mrb[38].mxu0  ;;  %v2573_v31 = vand.u32 2147483648, %v4890_v45  ;;  %4012 = vrsqrt.f32 %v4950_v12  ;;  %v4007_v6 = vpop.eup %4006  ;;  %vm1374_vm7 = vcmp.eq.f32.partialorder %v4884_v39, 0.0  ;;  %v2588_v0 = vsel %vm2586_vm2, %v2587_v63, %v2585_v40 }
 0x25c   : > { %v4973_v14 = vpop.f32.mrb[39].mxu0  ;;  %v2569_v48 = vmul.f32 %v4005_v46, %v4890_v45  ;;  %vm2572_vm8 = vcmp.eq.f32.partialorder %v4890_v45, 0.0  ;;  %4014 = vrsqrt.f32 %v4956_v59  ;;  %v1357_v62 = vmul.f32 %v4007_v6, %v4908_v3  ;;  %v4993_v33 = vpop.f32.mrb[29].mxu1 }
 0x25d   : > { %vm1358_vm9 = vcmp.eq.f32.partialorder %v4908_v3, inf  ;;  %vm1360_vm10 = vcmp.eq.f32.partialorder %v4908_v3, 0.0  ;;  %v4991_v56 = vadd.f32 1e-06, %v1114_v53  ;;  %6247 = vst [vmem:[#allocation24_spill] sm:$0xff] %v4993_v33  ;;  %v3202_v16 = vsel %vm190_vm5, %v2567_v2, 0.0 }
 0x25e   : > { %v1361_v63 = vand.u32 2147483648, %v4908_v3  ;;  %v2571_v15 = vsel %vm2570_vm4, %v4890_v45, %v2569_v48  ;;  %vm1379_vm11 = vcmp.eq.f32.partialorder %v4931_v61, inf  ;;  %v1373_v40 = vsel %vm1372_vm3, %v4884_v39, %v1371_v20 }
 0x25f   : > { %v3207_v53 = vsel %vm190_vm5, %v2588_v0, 0.0  ;;  %v1359_v46 = vsel %vm1358_vm9, %v4908_v3, %v1357_v62  ;;  %v2574_v2 = vsel %vm2572_vm8, %v2573_v31, %v2571_v15  ;;  %v2440_v60 = vmul.f32 %v4605_v18, %v4605_v18 }
 0x260   : > { %v4009_v32 = vpop.eup %4008  ;;  %v1362_v33 = vsel %vm1360_vm10, %v1361_v63, %v1359_v46  ;;  %v3203_v48 = vsel %vm190_vm5, %v2574_v2, 0.0  ;;  %v1112_v26 = vmul.f32 %v4786_v38, %v4786_v38  ;;  %4016 = vrsqrt.f32 %v4991_v56  ;;  %v5030_v38 = vpop.f32.mrb[30].mxu1 }
 0x261   : > { %v5001_v49 = vpop.f32.mrb[40].mxu0  ;;  %v1703_v0 = vsel %vm190_vm5, %v1362_v33, 0.0  ;;  %v3204_v3 = vadd.f32 %v3203_v48, %v3202_v16  ;;  %v2438_v45 = vmul.f32 %v4610_v24, %v4610_v24  ;;  %v1378_v63 = vmul.f32 %v4009_v32, %v4931_v61  ;;  %6248 = vst [vmem:[#allocation25_spill] sm:$0xff] %v5030_v38 }
 0x262   : > { %v5010_v6 = vpop.f32.mrb[41].mxu0  ;;  %v1704_v62 = vadd.f32 %v1703_v0, %v1702_v1  ;;  %v5026_v15 = vadd.f32 1e-06, %v2440_v60  ;;  %v5028_v18 = vadd.f32 1e-06, %v1112_v26  ;;  %vm1381_vm12 = vcmp.eq.f32.partialorder %v4931_v61, 0.0 }
 0x263   : > { %v5017_v20 = vpop.f32.mrb[42].mxu0  ;;  %v4011_v46 = vpop.eup %4010  ;;  %v3206_v2 = vadd.f32 %v3205_v4, %v3204_v3  ;;  %v1382_v33 = vand.u32 2147483648, %v4931_v61  ;;  %vm1365_vm13 = vcmp.eq.f32.partialorder %v4948_v23, inf  ;;  %vm1367_vm14 = vcmp.eq.f32.partialorder %v4948_v23, 0.0 }
 0x264   : > { %v5023_v31 = vpop.f32.mrb[43].mxu0  ;;  %v1364_v24 = vmul.f32 %v4011_v46, %v4948_v23  ;;  %4018 = vrsqrt.f32 %v5026_v15  ;;  %v5038_v60 = vadd.f32 1e-06, %v2438_v45  ;;  %v5040_v26 = vpop.f32.mrb[31].mxu1  ;;  %v1376_v4 = vsel %vm1374_vm7, %v1375_v11, %v1373_v40 }
 0x265   : > { %6249 = vst [vmem:[#allocation26_spill] sm:$0xff] %v5040_v26  ;;  %v4013_v1 = vpop.eup %4012  ;;  %v1368_v32 = vand.u32 2147483648, %v4948_v23  ;;  %vm2591_vm15 = vcmp.eq.f32.partialorder %v4956_v59, inf  ;;  %v3208_v16 = vadd.f32 %v3207_v53, %v3206_v2  ;;  %v1380_v0 = vsel %vm1379_vm11, %v4931_v61, %v1378_v63 }
 0x266   : > { %v4015_v48 = vpop.eup %4014  ;;  %v1366_v3 = vsel %vm1365_vm13, %v4948_v23, %v1364_v24  ;;  %v2594_v45 = vand.u32 2147483648, %v4956_v59  ;;  %4020 = vrsqrt.f32 %v5028_v18  ;;  %vm2593_vm0 = vcmp.eq.f32.partialorder %v4956_v59, 0.0 }
 0x267   : > { %v1369_v39 = vsel %vm1367_vm14, %v1368_v32, %v1366_v3  ;;  %v2590_v11 = vmul.f32 %v4015_v48, %v4956_v59  ;;  %v1115_v40 = vmul.f32 %v4798_v42, %v4798_v42  ;;  %vm2605_vm1 = vcmp.eq.f32.partialorder %v4950_v12, inf }
 0x268   : > { %v1705_v63 = vsel %vm190_vm5, %v1369_v39, 0.0  ;;  %4022 = vrsqrt.f32 %v5038_v60  ;;  %v1113_v23 = vmul.f32 %v4805_v19, %v4805_v19  ;;  %v1383_v24 = vsel %vm1381_vm12, %v1382_v33, %v1380_v0 }
 0x269   : > { %v5052_v46 = vpop.f32.mrb[44].mxu0  ;;  %v1706_v32 = vadd.f32 %v1705_v63, %v1704_v62  ;;  %v2604_v48 = vmul.f32 %v4013_v1, %v4950_v12  ;;  %v2592_v42 = vsel %vm2591_vm15, %v4956_v59, %v2590_v11  ;;  %v1707_v39 = vsel %vm190_vm5, %v1376_v4, 0.0 }
 0x26a   : > { %v5058_v53 = vpop.f32.mrb[45].mxu0  ;;  %vm2607_vm2 = vcmp.eq.f32.partialorder %v4950_v12, 0.0  ;;  %v2608_v19 = vand.u32 2147483648, %v4950_v12  ;;  %v2595_v38 = vsel %vm2593_vm0, %v2594_v45, %v2592_v42  ;;  %v4017_v61 = vpop.eup %4016  ;;  %vm1400_vm3 = vcmp.eq.f32.partialorder %v4991_v56, inf }
 0x26b   : > { %v5065_v2 = vpop.f32.mrb[46].mxu0  ;;  %v1708_v33 = vadd.f32 %v1707_v39, %v1706_v32  ;;  %v3209_v62 = vsel %vm190_vm5, %v2595_v38, 0.0  ;;  %v5082_v1 = vadd.f32 1e-06, %v1115_v40  ;;  %v1709_v0 = vsel %vm190_vm5, %v1383_v24, 0.0 }
 0x26c   : > { %v5073_v3 = vpop.f32.mrb[47].mxu0  ;;  %v3210_v11 = vadd.f32 %v3209_v62, %v3208_v16  ;;  %v5085_v63 = vadd.f32 1e-06, %v1113_v23  ;;  %v2443_v4 = vmul.f32 %v4646_v41, %v4646_v41  ;;  %v2606_v59 = vsel %vm2605_vm1, %v4950_v12, %v2604_v48 }
 0x26d   : > { %vm2612_vm4 = vcmp.eq.f32.partialorder %v5026_v15, inf  ;;  %v1710_v45 = vadd.f32 %v1709_v0, %v1708_v33  ;;  %4024 = vrsqrt.f32 %v5082_v1  ;;  %v1399_v40 = vmul.f32 %v4017_v61, %v4991_v56 }
 0x26e   : > { %v4019_v38 = vpop.eup %4018  ;;  %vm2614_vm7 = vcmp.eq.f32.partialorder %v5026_v15, 0.0  ;;  %v2615_v16 = vand.u32 2147483648, %v5026_v15  ;;  %4026 = vrsqrt.f32 %v5085_v63  ;;  %vm1386_vm8 = vcmp.eq.f32.partialorder %v5028_v18, inf }
 0x26f   : > { %v2611_v41 = vmul.f32 %v4019_v38, %v5026_v15  ;;  %vm1388_vm9 = vcmp.eq.f32.partialorder %v5028_v18, 0.0  ;;  %v5103_v24 = vadd.f32 1e-06, %v2443_v4  ;;  %v2609_v42 = vsel %vm2607_vm2, %v2608_v19, %v2606_v59  ;;  %v3940_v19 = vld [vmem:[%s6240_s2 + $0x80] sm:$0xff]  }
 0x270   : > { %v4021_v48 = vpop.eup %4020  ;;  %v1389_v39 = vand.u32 2147483648, %v5028_v18  ;;  %v2441_v61 = vmul.f32 %v4651_v47, %v4651_v47  ;;  %v1118_v33 = vmul.f32 %v4832_v36, %v4832_v36  ;;  %vm2598_vm10 = vcmp.eq.f32.partialorder %v5038_v60, inf  ;;  %3795 = vmatprep.mubr.msk.bf16.mxu1 %vm190_vm5, %v3940_v19 }
 0x271   : > { %v5098_v23 = vpop.f32.mrb[48].mxu0  ;;  %v1385_v0 = vmul.f32 %v4021_v48, %v5028_v18  ;;  %vm2600_vm11 = vcmp.eq.f32.partialorder %v5038_v60, 0.0  ;;  %v2601_v4 = vand.u32 2147483648, %v5038_v60  ;;  %v1401_v36 = vsel %vm1400_vm3, %v4991_v56, %v1399_v40  ;;  %v3941_v48 = vld [vmem:[%s6240_s2 + $0x88] sm:$0xff]  }
 0x272   : > { %v5105_v32 = vpop.f32.mrb[49].mxu0  ;;  %v4023_v47 = vpop.eup %4022  ;;  %v2613_v59 = vsel %vm2612_vm4, %v5026_v15, %v2611_v41  ;;  %4028 = vrsqrt.f32 %v5103_v24  ;;  %v5132_v38 = vadd.f32 1e-06, %v2441_v61  ;;  %v2444_v40 = vmul.f32 %v4657_v13, %v4657_v13  ;;  %3796 = vmatmul.mubr.msk.bf16.gmra.mrb[32].mxu1 %vm190_vm5, %v3941_v48 }
 0x273   : > { %6250 = vst [vmem:[#allocation27_spill] sm:$0xff] %v5105_v32  ;;  %v5114_v62 = vpop.f32.mrb[50].mxu0  ;;  %v1116_v41 = vmul.f32 %v4842_v54, %v4842_v54  ;;  %v1403_v61 = vand.u32 2147483648, %v4991_v56  ;;  %v5150_v32 = vadd.f32 1e-06, %v1118_v33  ;;  %vm1402_vm12 = vcmp.eq.f32.partialorder %v4991_v56, 0.0 }
 0x274   : > { %6251 = vst [vmem:[#allocation28_spill] sm:$0xff] %v5114_v62  ;;  %v5120_v12 = vpop.f32.mrb[51].mxu0  ;;  %v2597_v62 = vmul.f32 %v4023_v47, %v5038_v60  ;;  %4030 = vrsqrt.f32 %v5132_v38  ;;  %v2616_v13 = vsel %vm2614_vm7, %v2615_v16, %v2613_v59  ;;  %vm1407_vm13 = vcmp.eq.f32.partialorder %v5082_v1, inf }
 0x275   : > { %6252 = vst [vmem:[#allocation29_spill] sm:$0xff] %v5120_v12  ;;  %v1387_v12 = vsel %vm1386_vm8, %v5028_v18, %v1385_v0  ;;  %v3213_v18 = vsel %vm190_vm5, %v2609_v42, 0.0  ;;  %v5167_v15 = vadd.f32 1e-06, %v2444_v40  ;;  %4032 = vrsqrt.f32 %v5150_v32 }
 0x276   : > { %v1390_v26 = vsel %vm1388_vm9, %v1389_v39, %v1387_v12  ;;  %v2599_v0 = vsel %vm2598_vm10, %v5038_v60, %v2597_v62  ;;  %v1404_v39 = vsel %vm1402_vm12, %v1403_v61, %v1401_v36  ;;  %v3215_v62 = vsel %vm190_vm5, %v2616_v13, 0.0 }
 0x277   : > { %v1711_v54 = vsel %vm190_vm5, %v1390_v26, 0.0  ;;  %v2602_v33 = vsel %vm2600_vm11, %v2601_v4, %v2599_v0  ;;  %v4025_v47 = vpop.eup %4024  ;;  %v5169_v26 = vadd.f32 1e-06, %v1116_v41  ;;  %4034 = vrsqrt.f32 %v5167_v15 }
 0x278   : > { %v1712_v12 = vadd.f32 %v1711_v54, %v1710_v45  ;;  %v3211_v56 = vsel %vm190_vm5, %v2602_v33, 0.0  ;;  %v4027_v16 = vpop.eup %4026  ;;  %v1406_v45 = vmul.f32 %v4025_v47, %v5082_v1  ;;  %v2442_v36 = vmul.f32 %v4663_v22, %v4663_v22 }
 0x279   : > { %v5163_v19 = vpop.f32.mrb[52].mxu0  ;;  %v3212_v42 = vadd.f32 %v3211_v56, %v3210_v11  ;;  %v1392_v4 = vmul.f32 %v4027_v16, %v5085_v63  ;;  %v1119_v59 = vmul.f32 %v4852_v17, %v4852_v17  ;;  %vm1393_vm14 = vcmp.eq.f32.partialorder %v5085_v63, inf }
 0x27a   : > { %v5174_v60 = vpop.f32.mrb[53].mxu0  ;;  %v1396_v11 = vand.u32 2147483648, %v5085_v63  ;;  %4036 = vrsqrt.f32 %v5169_v26  ;;  %v1715_v61 = vsel %vm190_vm5, %v1404_v39, 0.0  ;;  %v1408_v22 = vsel %vm1407_vm13, %v5082_v1, %v1406_v45 }
 0x27b   : > { %v5182_v48 = vpop.f32.mrb[54].mxu0  ;;  %v3214_v40 = vadd.f32 %v3213_v18, %v3212_v42  ;;  %v1394_v13 = vsel %vm1393_vm14, %v5085_v63, %v1392_v4  ;;  %vm1395_vm15 = vcmp.eq.f32.partialorder %v5085_v63, 0.0  ;;  %vm1409_vm0 = vcmp.eq.f32.partialorder %v5082_v1, 0.0 }
 0x27c   : > { %v5187_v41 = vpop.f32.mrb[55].mxu0  ;;  %v4029_v17 = vpop.eup %4028  ;;  %v1410_v54 = vand.u32 2147483648, %v5082_v1  ;;  %v1397_v0 = vsel %vm1395_vm15, %v1396_v11, %v1394_v13  ;;  %vm2619_vm1 = vcmp.eq.f32.partialorder %v5132_v38, inf  ;;  %v5199_v39 = vadd.f32 1e-06, %v2442_v36  ;;  %v3942_v1 = vld [vmem:[%s6240_s2 + $0x90] sm:$0xff]  }
 0x27d   : > { %v3216_v18 = vadd.f32 %v3215_v62, %v3214_v40  ;;  %v1713_v33 = vsel %vm190_vm5, %v1397_v0, 0.0  ;;  %v5201_v47 = vadd.f32 1e-06, %v1119_v59  ;;  %vm2621_vm2 = vcmp.eq.f32.partialorder %v5132_v38, 0.0  ;;  %v3943_v59 = vld [vmem:[%s6240_s2 + $0x98] sm:$0xff]   ;;  %3799 = vmatprep.mubr.msk.bf16.mxu1 %vm190_vm5, %v3942_v1 }
 0x27e   : > { %v4031_v56 = vpop.eup %4030  ;;  %v1411_v16 = vsel %vm1409_vm0, %v1410_v54, %v1408_v22  ;;  %v1714_v42 = vadd.f32 %v1713_v33, %v1712_v12  ;;  %v2622_v63 = vand.u32 2147483648, %v5132_v38  ;;  %v2632_v62 = vmul.f32 %v4029_v17, %v5103_v24  ;;  %3800 = vmatmul.mubr.msk.bf16.gmra.mrb[36].mxu1 %vm190_vm5, %v3943_v59 }
 0x27f   : > { %v2618_v4 = vmul.f32 %v4031_v56, %v5132_v38  ;;  %4038 = vrsqrt.f32 %v5199_v39  ;;  %v1117_v36 = vmul.f32 %v4863_v57, %v4863_v57  ;;  %vm2633_vm3 = vcmp.eq.f32.partialorder %v5103_v24, inf }
 0x280   : > { %v1716_v40 = vadd.f32 %v1715_v61, %v1714_v42  ;;  %v2447_v11 = vmul.f32 %v4686_v43, %v4686_v43  ;;  %v1717_v13 = vsel %vm190_vm5, %v1411_v16, 0.0  ;;  %4040 = vrsqrt.f32 %v5201_v47  ;;  %v4033_v61 = vpop.eup %4032 }
 0x281   : > { %v5205_v45 = vpop.f32.mrb[56].mxu0  ;;  %v2620_v57 = vsel %vm2619_vm1, %v5132_v38, %v2618_v4  ;;  %vm2635_vm4 = vcmp.eq.f32.partialorder %v5103_v24, 0.0  ;;  %v2636_v43 = vand.u32 2147483648, %v5103_v24  ;;  %v4035_v33 = vpop.eup %4034  ;;  %v2634_v56 = vsel %vm2633_vm3, %v5103_v24, %v2632_v62 }
 0x282   : > { %v5215_v12 = vpop.f32.mrb[57].mxu0  ;;  %v2623_v54 = vsel %vm2621_vm2, %v2622_v63, %v2620_v57  ;;  %v1718_v0 = vadd.f32 %v1717_v13, %v1716_v40  ;;  %vm1428_vm7 = vcmp.eq.f32.partialorder %v5150_v32, inf  ;;  %v5241_v42 = vadd.f32 1e-06, %v1117_v36 }
 0x283   : > { %v5223_v22 = vpop.f32.mrb[58].mxu0  ;;  %v3217_v16 = vsel %vm190_vm5, %v2623_v54, 0.0  ;;  %vm2640_vm8 = vcmp.eq.f32.partialorder %v5167_v15, inf  ;;  %vm2642_vm9 = vcmp.eq.f32.partialorder %v5167_v15, 0.0  ;;  %v5245_v59 = vadd.f32 1e-06, %v2447_v11 }
 0x284   : > { %v5231_v17 = vpop.f32.mrb[59].mxu0  ;;  %v4037_v1 = vpop.eup %4036  ;;  %v3218_v4 = vadd.f32 %v3217_v16, %v3216_v18  ;;  %v2639_v38 = vmul.f32 %v4035_v33, %v5167_v15  ;;  %v2643_v63 = vand.u32 2147483648, %v5167_v15  ;;  %4042 = vrsqrt.f32 %v5241_v42 }
 0x285   : > { %v1413_v62 = vmul.f32 %v4037_v1, %v5169_v26  ;;  %v2637_v36 = vsel %vm2635_vm4, %v2636_v43, %v2634_v56  ;;  %vm1414_vm10 = vcmp.eq.f32.partialorder %v5169_v26, inf  ;;  %vm1416_vm11 = vcmp.eq.f32.partialorder %v5169_v26, 0.0 }
 0x286   : > { %v1417_v18 = vand.u32 2147483648, %v5169_v26  ;;  %v1427_v11 = vmul.f32 %v4033_v61, %v5150_v32  ;;  %vm2626_vm12 = vcmp.eq.f32.partialorder %v5199_v39, inf  ;;  %vm2628_vm13 = vcmp.eq.f32.partialorder %v5199_v39, 0.0 }
 0x287   : > { %v1415_v13 = vsel %vm1414_vm10, %v5169_v26, %v1413_v62  ;;  %v2629_v43 = vand.u32 2147483648, %v5199_v39  ;;  %4044 = vrsqrt.f32 %v5245_v59  ;;  %v2445_v54 = vmul.f32 %v4691_v51, %v4691_v51  ;;  %v3944_v26 = vld [vmem:[%s6240_s2 + $0xa0] sm:$0xff]  }
 0x288   : > { %v1418_v24 = vsel %vm1416_vm11, %v1417_v18, %v1415_v13  ;;  %v2641_v56 = vsel %vm2640_vm8, %v5167_v15, %v2639_v38  ;;  %v2448_v1 = vmul.f32 %v4695_v58, %v4695_v58  ;;  %v1120_v62 = vmul.f32 %v4905_v35, %v4905_v35  ;;  %v3945_v18 = vld [vmem:[%s6240_s2 + $0xa8] sm:$0xff]   ;;  %3803 = vmatprep.mubr.msk.bf16.mxu1 %vm190_vm5, %v3944_v26 }
 0x289   : > { %v5256_v40 = vpop.f32.mrb[60].mxu0  ;;  %v4039_v61 = vpop.eup %4038  ;;  %v1719_v16 = vsel %vm190_vm5, %v1418_v24, 0.0  ;;  %v1122_v38 = vmul.f32 %v4895_v27, %v4895_v27  ;;  %vm1430_vm14 = vcmp.eq.f32.partialorder %v5150_v32, 0.0  ;;  %v1431_v35 = vand.u32 2147483648, %v5150_v32  ;;  %3804 = vmatmul.mubr.msk.bf16.gmra.mrb[40].mxu1 %vm190_vm5, %v3945_v18 }
 0x28a   : > { %v5262_v57 = vpop.f32.mrb[61].mxu0  ;;  %v1720_v13 = vadd.f32 %v1719_v16, %v1718_v0  ;;  %v4041_v58 = vpop.eup %4040  ;;  %v5294_v24 = vadd.f32 1e-06, %v2448_v1  ;;  %v3221_v0 = vsel %vm190_vm5, %v2637_v36, 0.0  ;;  %v1429_v27 = vsel %vm1428_vm7, %v5150_v32, %v1427_v11 }
 0x28b   : > { %6253 = vst [vmem:[#allocation30_spill] sm:$0xff] %v5262_v57  ;;  %v5268_v33 = vpop.f32.mrb[62].mxu0  ;;  %v5287_v57 = vadd.f32 1e-06, %v2445_v54  ;;  %v2644_v26 = vsel %vm2642_vm9, %v2643_v63, %v2641_v56  ;;  %vm1435_vm15 = vcmp.eq.f32.partialorder %v5201_v47, inf  ;;  %v1434_v11 = vmul.f32 %v4041_v58, %v5201_v47 }
 0x28c   : > { %6254 = vst [vmem:[#allocation31_spill] sm:$0xff] %v5268_v33  ;;  %v5281_v51 = vpop.f32.mrb[63].mxu0  ;;  %v2625_v33 = vmul.f32 %v4039_v61, %v5199_v39  ;;  %v5312_v61 = vadd.f32 1e-06, %v1120_v62  ;;  %vm1437_vm0 = vcmp.eq.f32.partialorder %v5201_v47, 0.0  ;;  %v1432_v15 = vsel %vm1430_vm14, %v1431_v35, %v1429_v27  ;;  %v3946_v62 = vld [vmem:[%s6240_s2 + $0xb0] sm:$0xff]  }
 0x28d   : > { %6255 = vst [vmem:[#allocation32_spill] sm:$0xff] %v5281_v51  ;;  %v2446_v51 = vmul.f32 %v4703_v8, %v4703_v8  ;;  %4046 = vrsqrt.f32 %v5287_v57  ;;  %v5317_v16 = vadd.f32 1e-06, %v1122_v38  ;;  %v1438_v56 = vand.u32 2147483648, %v5201_v47  ;;  %3807 = vmatprep.mubr.msk.bf16.mxu1 %vm190_vm5, %v3946_v62 }
 0x28e   : > { %v2627_v54 = vsel %vm2626_vm12, %v5199_v39, %v2625_v33  ;;  %v4043_v33 = vpop.eup %4042  ;;  %4048 = vrsqrt.f32 %v5294_v24  ;;  %vm1421_vm1 = vcmp.eq.f32.partialorder %v5241_v42, inf  ;;  %v1424_v32 = vand.u32 2147483648, %v5241_v42 }
 0x28f   : > { %v2630_v8 = vsel %vm2628_vm13, %v2629_v43, %v2627_v54  ;;  %v5322_v39 = vadd.f32 1e-06, %v2446_v51  ;;  %v3223_v43 = vsel %vm190_vm5, %v2644_v26, 0.0  ;;  %v1420_v1 = vmul.f32 %v4043_v33, %v5241_v42  ;;  %v3947_v51 = vld [vmem:[%s6240_s2 + $0xb8] sm:$0xff]  }
 0x290   : > { %v3219_v36 = vsel %vm190_vm5, %v2630_v8, 0.0  ;;  %4050 = vrsqrt.f32 %v5312_v61  ;;  %v1436_v58 = vsel %vm1435_vm15, %v5201_v47, %v1434_v11  ;;  %vm1423_vm2 = vcmp.eq.f32.partialorder %v5241_v42, 0.0 }
 0x291   : > { %v3220_v63 = vadd.f32 %v3219_v36, %v3218_v4  ;;  %v1123_v4 = vmul.f32 %v4912_v55, %v4912_v55  ;;  %v4045_v38 = vpop.eup %4044  ;;  %v1422_v35 = vsel %vm1421_vm1, %v5241_v42, %v1420_v1  ;;  %4052 = vrsqrt.f32 %v5317_v16  ;;  %3808 = vmatmul.mubr.msk.bf16.gmra.mrb[44].mxu1 %vm190_vm5, %v3947_v51 }
 0x292   : > { %v1425_v55 = vsel %vm1423_vm2, %v1424_v32, %v1422_v35  ;;  %4054 = vrsqrt.f32 %v5322_v39  ;;  %vm2661_vm3 = vcmp.eq.f32.partialorder %v5245_v59, inf  ;;  %vm2663_vm4 = vcmp.eq.f32.partialorder %v5245_v59, 0.0 }
 0x293   : > { %v3222_v18 = vadd.f32 %v3221_v0, %v3220_v63  ;;  %v1723_v0 = vsel %vm190_vm5, %v1432_v15, 0.0  ;;  %v1721_v54 = vsel %vm190_vm5, %v1425_v55, 0.0  ;;  %v2664_v42 = vand.u32 2147483648, %v5245_v59 }
 0x294   : > { %v1439_v26 = vsel %vm1437_vm0, %v1438_v56, %v1436_v58  ;;  %v1722_v8 = vadd.f32 %v1721_v54, %v1720_v13  ;;  %v2660_v36 = vmul.f32 %v4045_v38, %v5245_v59  ;;  %v5355_v11 = vadd.f32 1e-06, %v1123_v4  ;;  %v3949_v38 = vld [vmem:[%s6240_s2 + $0xc8] sm:$0xff]  }
 0x295   : > { %v3224_v27 = vadd.f32 %v3223_v43, %v3222_v18  ;;  %vm2647_vm7 = vcmp.eq.f32.partialorder %v5287_v57, inf  ;;  %vm2649_vm8 = vcmp.eq.f32.partialorder %v5287_v57, 0.0  ;;  %v2650_v15 = vand.u32 2147483648, %v5287_v57 }
 0x296   : > { %v1121_v63 = vmul.f32 %v4918_v9, %v4918_v9  ;;  %v1724_v43 = vadd.f32 %v1723_v0, %v1722_v8  ;;  %4056 = vrsqrt.f32 %v5355_v11  ;;  %v2449_v47 = vmul.f32 %v4734_v37, %v4734_v37  ;;  %v3948_v9 = vld [vmem:[%s6240_s2 + $0xc0] sm:$0xff]  }
 0x297   : > { %v4047_v33 = vpop.eup %4046  ;;  %v1725_v13 = vsel %vm190_vm5, %v1439_v26, 0.0  ;;  %v1459_v56 = vand.u32 2147483648, %v5317_v16  ;;  %vm2668_vm9 = vcmp.eq.f32.partialorder %v5294_v24, inf  ;;  %v2662_v32 = vsel %vm2661_vm3, %v5245_v59, %v2660_v36  ;;  %3811 = vmatprep.mubr.msk.bf16.mxu1 %vm190_vm5, %v3948_v9 }
 0x298   : > { %v2646_v1 = vmul.f32 %v4047_v33, %v5287_v57  ;;  %v5369_v62 = vadd.f32 1e-06, %v1121_v63  ;;  %v4049_v18 = vpop.eup %4048  ;;  %v1726_v37 = vadd.f32 %v1725_v13, %v1724_v43  ;;  %v2451_v51 = vmul.f32 %v4727_v34, %v4727_v34 }
 0x299   : > { %v2667_v35 = vmul.f32 %v4049_v18, %v5294_v24  ;;  %vm2670_vm10 = vcmp.eq.f32.partialorder %v5294_v24, 0.0  ;;  %v2671_v34 = vand.u32 2147483648, %v5294_v24  ;;  %vm1442_vm11 = vcmp.eq.f32.partialorder %v5312_v61, inf  ;;  %3812 = vmatmul.mubr.msk.bf16.gmra.mrb[48].mxu1 %vm190_vm5, %v3949_v38  ;;  %v3951_v18 = vld [vmem:[%s6240_s2 + $0xd8] sm:$0xff]   ;;  %v3952_v38 = vld [vmem:[%s6240_s2 + $0xe0] sm:$0xff]  }
 0x29a   : > { %v2648_v4 = vsel %vm2647_vm7, %v5287_v57, %v2646_v1  ;;  %4058 = vrsqrt.f32 %v5369_v62  ;;  %v4051_v0 = vpop.eup %4050  ;;  %v5392_v54 = vadd.f32 1e-06, %v2449_v47  ;;  %v3950_v57 = vld [vmem:[%s6240_s2 + $0xd0] sm:$0xff]   ;;  %v2665_v8 = vsel %vm2663_vm4, %v2664_v42, %v2662_v32 }
 0x29b   : > { %v2651_v58 = vsel %vm2649_vm8, %v2650_v15, %v2648_v4  ;;  %v4053_v26 = vpop.eup %4052  ;;  %vm1456_vm12 = vcmp.eq.f32.partialorder %v5317_v16, inf  ;;  %v1441_v33 = vmul.f32 %v4051_v0, %v5312_v61  ;;  %v1445_v15 = vand.u32 2147483648, %v5312_v61  ;;  %3815 = vmatprep.mubr.msk.bf16.mxu1 %vm190_vm5, %v3950_v57 }
 0x29c   : > { %v3225_v55 = vsel %vm190_vm5, %v2651_v58, 0.0  ;;  %v4055_v63 = vpop.eup %4054  ;;  %v2669_v43 = vsel %vm2668_vm9, %v5294_v24, %v2667_v35  ;;  %vm2654_vm13 = vcmp.eq.f32.partialorder %v5322_v39, inf  ;;  %v2657_v1 = vand.u32 2147483648, %v5322_v39 }
 0x29d   : > { %v3226_v36 = vadd.f32 %v3225_v55, %v3224_v27  ;;  %v5408_v47 = vadd.f32 1e-06, %v2451_v51  ;;  %v1443_v59 = vsel %vm1442_vm11, %v5312_v61, %v1441_v33  ;;  %vm1444_vm14 = vcmp.eq.f32.partialorder %v5312_v61, 0.0 }
 0x29e   : > { %v2653_v27 = vmul.f32 %v4055_v63, %v5322_v39  ;;  %vm2656_vm15 = vcmp.eq.f32.partialorder %v5322_v39, 0.0  ;;  %v3229_v42 = vsel %vm190_vm5, %v2665_v8, 0.0  ;;  %vm1458_vm0 = vcmp.eq.f32.partialorder %v5317_v16, 0.0 }
 0x29f   : > { %v1446_v13 = vsel %vm1444_vm14, %v1445_v15, %v1443_v59  ;;  %4060 = vrsqrt.f32 %v5392_v54  ;;  %v1126_v9 = vmul.f32 %v4944_v10, %v4944_v10  ;;  %v1455_v61 = vmul.f32 %v4053_v26, %v5317_v16 }
 0x2a0   : > { %v2672_v32 = vsel %vm2670_vm10, %v2671_v34, %v2669_v43  ;;  %v1727_v4 = vsel %vm190_vm5, %v1446_v13, 0.0  ;;  %v2655_v51 = vsel %vm2654_vm13, %v5322_v39, %v2653_v27  ;;  %v4057_v10 = vpop.eup %4056  ;;  %4062 = vrsqrt.f32 %v5408_v47  ;;  %v3953_v27 = vld [vmem:[%s6240_s2 + $0xe8] sm:$0xff]  }
 0x2a1   : > { %v1728_v58 = vadd.f32 %v1727_v4, %v1726_v37  ;;  %v2658_v35 = vsel %vm2656_vm15, %v2657_v1, %v2655_v51  ;;  %v2452_v0 = vmul.f32 %v4741_v52, %v4741_v52  ;;  %vm1463_vm1 = vcmp.eq.f32.partialorder %v5355_v11, inf  ;;  %3816 = vmatmul.mubr.msk.bf16.gmra.mrb[52].mxu1 %vm190_vm5, %v3951_v18 }
 0x2a2   : > { %v3227_v24 = vsel %vm190_vm5, %v2658_v35, 0.0  ;;  %v1124_v55 = vmul.f32 %v4958_v25, %v4958_v25  ;;  %v2450_v39 = vmul.f32 %v4753_v5, %v4753_v5  ;;  %v3231_v34 = vsel %vm190_vm5, %v2672_v32, 0.0  ;;  %3819 = vmatprep.mubr.msk.bf16.mxu1 %vm190_vm5, %v3952_v38 }
 0x2a3   : > { %v3228_v57 = vadd.f32 %v3227_v24, %v3226_v36  ;;  %v1462_v37 = vmul.f32 %v4057_v10, %v5355_v11  ;;  %vm1465_vm2 = vcmp.eq.f32.partialorder %v5355_v11, 0.0  ;;  %v5448_v26 = vadd.f32 1e-06, %v1126_v9 }
 0x2a4   : > { %v4059_v52 = vpop.eup %4058  ;;  %v5450_v8 = vadd.f32 1e-06, %v2452_v0  ;;  %v5452_v33 = vadd.f32 1e-06, %v1124_v55  ;;  %v1457_v5 = vsel %vm1456_vm12, %v5317_v16, %v1455_v61  ;;  %v5459_v15 = vadd.f32 1e-06, %v2450_v39 }
 0x2a5   : > { %v3230_v25 = vadd.f32 %v3229_v42, %v3228_v57  ;;  %v1448_v36 = vmul.f32 %v4059_v52, %v5369_v62  ;;  %vm1449_vm3 = vcmp.eq.f32.partialorder %v5369_v62, inf  ;;  %vm1451_vm4 = vcmp.eq.f32.partialorder %v5369_v62, 0.0 }
 0x2a6   : > { %v1452_v63 = vand.u32 2147483648, %v5369_v62  ;;  %4064 = vrsqrt.f32 %v5450_v8  ;;  %v1464_v43 = vsel %vm1463_vm1, %v5355_v11, %v1462_v37  ;;  %v1460_v42 = vsel %vm1458_vm0, %v1459_v56, %v1457_v5  ;;  %v3955_v5 = vld [vmem:[%s6240_s2 + $0xf8] sm:$0xff]  }
 0x2a7   : > { %v1450_v1 = vsel %vm1449_vm3, %v5369_v62, %v1448_v36  ;;  %v3232_v59 = vadd.f32 %v3231_v34, %v3230_v25  ;;  %4066 = vrsqrt.f32 %v5452_v33  ;;  %v1466_v13 = vand.u32 2147483648, %v5355_v11  ;;  %v3954_v62 = vld [vmem:[%s6240_s2 + $0xf0] sm:$0xff]  }
 0x2a8   : > { %v1453_v9 = vsel %vm1451_vm4, %v1452_v63, %v1450_v1  ;;  %4068 = vrsqrt.f32 %v5448_v26  ;;  %vm2675_vm7 = vcmp.eq.f32.partialorder %v5392_v54, inf  ;;  %v2678_v32 = vand.u32 2147483648, %v5392_v54 }
 0x2a9   : > { %v4061_v18 = vpop.eup %4060  ;;  %v1729_v61 = vsel %vm190_vm5, %v1453_v9, 0.0  ;;  %4070 = vrsqrt.f32 %v5459_v15  ;;  %v1467_v16 = vsel %vm1465_vm2, %v1466_v13, %v1464_v43  ;;  %vm2677_vm8 = vcmp.eq.f32.partialorder %v5392_v54, 0.0  ;;  %3820 = vmatmul.mubr.msk.bf16.gmra.mrb[56].mxu1 %vm190_vm5, %v3953_v27 }
 0x2aa   : > { %v1730_v56 = vadd.f32 %v1729_v61, %v1728_v58  ;;  %v2674_v4 = vmul.f32 %v4061_v18, %v5392_v54  ;;  %v4063_v51 = vpop.eup %4062  ;;  %v359_v38 = vand.u32 2147483647, %v4330_v21  ;;  %v1731_v10 = vsel %vm190_vm5, %v1460_v42, 0.0  ;;  %3823 = vmatprep.mubr.msk.bf16.mxu1 %vm190_vm5, %v3954_v62 }
 0x2ab   : > { %v1127_v35 = vmul.f32 %v4965_v50, %v4965_v50  ;;  %v1125_v0 = vmul.f32 %v4973_v14, %v4973_v14  ;;  %vm2689_vm9 = vcmp.eq.f32.partialorder %v5408_v47, inf  ;;  %v2455_v24 = vmul.f32 %v4778_v28, %v4778_v28 }
 0x2ac   : > { %v1732_v11 = vadd.f32 %v1731_v10, %v1730_v56  ;;  %v2676_v58 = vsel %vm2675_vm7, %v5392_v54, %v2674_v4  ;;  %v1733_v55 = vsel %vm190_vm5, %v1467_v16, 0.0  ;;  %v2688_v14 = vmul.f32 %v4063_v51, %v5408_v47 }
 0x2ad   : > { %v2679_v39 = vsel %vm2677_vm8, %v2678_v32, %v2676_v58  ;;  %v5503_v34 = vadd.f32 1e-06, %v1127_v35  ;;  %v5505_v50 = vadd.f32 1e-06, %v1125_v0  ;;  %vm2691_vm10 = vcmp.eq.f32.partialorder %v5408_v47, 0.0 }
 0x2ae   : > { %v3233_v57 = vsel %vm190_vm5, %v2679_v39, 0.0  ;;  %v1734_v37 = vadd.f32 %v1733_v55, %v1732_v11  ;;  %v2692_v54 = vand.u32 2147483648, %v5408_v47  ;;  %v2453_v28 = vmul.f32 %v4788_v44, %v4788_v44 }
 0x2af   : > { %v3234_v52 = vadd.f32 %v3233_v57, %v3232_v59  ;;  %4072 = vrsqrt.f32 %v5503_v34  ;;  %vm2696_vm11 = vcmp.eq.f32.partialorder %v5450_v8, inf  ;;  %vm2698_vm12 = vcmp.eq.f32.partialorder %v5450_v8, 0.0 }
 0x2b0   : > { %v4065_v25 = vpop.eup %4064  ;;  %4074 = vrsqrt.f32 %v5505_v50  ;;  %v5520_v36 = vadd.f32 1e-06, %v2455_v24  ;;  %v2699_v1 = vand.u32 2147483648, %v5450_v8  ;;  %vm1470_vm13 = vcmp.eq.f32.partialorder %v5452_v33, inf }
 0x2b1   : > { %v4067_v63 = vpop.eup %4066  ;;  %v2695_v43 = vmul.f32 %v4065_v25, %v5450_v8  ;;  %vm1472_vm14 = vcmp.eq.f32.partialorder %v5452_v33, 0.0  ;;  %v2690_v59 = vsel %vm2689_vm9, %v5408_v47, %v2688_v14  ;;  %vm1484_vm15 = vcmp.eq.f32.partialorder %v5448_v26, inf  ;;  %3824 = vmatmul.mubr.msk.bf16.gmra.mrb[60].mxu1 %vm190_vm5, %v3955_v5 }
 0x2b2   : > { %v4069_v44 = vpop.eup %4068  ;;  %v1469_v27 = vmul.f32 %v4067_v63, %v5452_v33  ;;  %v1473_v42 = vand.u32 2147483648, %v5452_v33  ;;  %vm2682_vm0 = vcmp.eq.f32.partialorder %v5459_v15, inf  ;;  %vm2684_vm1 = vcmp.eq.f32.partialorder %v5459_v15, 0.0 }
 0x2b3   : > { %v4071_v13 = vpop.eup %4070  ;;  %v2697_v9 = vsel %vm2696_vm11, %v5450_v8, %v2695_v43  ;;  %v2685_v62 = vand.u32 2147483648, %v5459_v15  ;;  %v5538_v18 = vadd.f32 1e-06, %v2453_v28  ;;  %4076 = vrsqrt.f32 %v5520_v36 }
 0x2b4   : > { %v1471_v61 = vsel %vm1470_vm13, %v5452_v33, %v1469_v27  ;;  %v2681_v32 = vmul.f32 %v4071_v13, %v5459_v15  ;;  %v1130_v16 = vmul.f32 %v5001_v49, %v5001_v49  ;;  %v2693_v56 = vsel %vm2691_vm10, %v2692_v54, %v2690_v59 }
 0x2b5   : > { %vm1486_vm2 = vcmp.eq.f32.partialorder %v5448_v26, 0.0  ;;  %v1487_v4 = vand.u32 2147483648, %v5448_v26  ;;  %v1474_v51 = vsel %vm1472_vm14, %v1473_v42, %v1471_v61  ;;  %4078 = vrsqrt.f32 %v5538_v18 }
 0x2b6   : > { %v1483_v10 = vmul.f32 %v4069_v44, %v5448_v26  ;;  %v2700_v35 = vsel %vm2698_vm12, %v2699_v1, %v2697_v9  ;;  %v1735_v0 = vsel %vm190_vm5, %v1474_v51, 0.0  ;;  %v2683_v49 = vsel %vm2682_vm0, %v5459_v15, %v2681_v32 }
 0x2b7   : > { %v1736_v47 = vadd.f32 %v1735_v0, %v1734_v37  ;;  %v2686_v11 = vsel %vm2684_vm1, %v2685_v62, %v2683_v49  ;;  %v5562_v58 = vadd.f32 1e-06, %v1130_v16  ;;  %v2456_v33 = vmul.f32 %v4800_v7, %v4800_v7 }
 0x2b8   : > { %v3237_v24 = vsel %vm190_vm5, %v2693_v56, 0.0  ;;  %v3235_v8 = vsel %vm190_vm5, %v2686_v11, 0.0  ;;  %vm1491_vm3 = vcmp.eq.f32.partialorder %v5503_v34, inf  ;;  %v1128_v55 = vmul.f32 %v5010_v6, %v5010_v6 }
 0x2b9   : > { %v4073_v39 = vpop.eup %4072  ;;  %v3239_v14 = vsel %vm190_vm5, %v2700_v35, 0.0  ;;  %v3236_v57 = vadd.f32 %v3235_v8, %v3234_v52  ;;  %vm1493_vm4 = vcmp.eq.f32.partialorder %v5503_v34, 0.0  ;;  %v2454_v15 = vmul.f32 %v4807_v29, %v4807_v29  ;;  %v6256_v8 = vld [vmem:[#allocation19_spill] sm:$0xff] }
 0x2ba   : > { %v4075_v37 = vpop.eup %4074  ;;  %v1490_v7 = vmul.f32 %v4073_v39, %v5503_v34  ;;  %4080 = vrsqrt.f32 %v5562_v58  ;;  %v5577_v54 = vadd.f32 1e-06, %v2456_v33  ;;  %v5579_v28 = vadd.f32 1e-06, %v1128_v55  ;;  %v6257_v39 = vld [vmem:[#allocation20_spill] sm:$0xff] }
 0x2bb   : > { %v1485_v6 = vsel %vm1484_vm15, %v5448_v26, %v1483_v10  ;;  %v3238_v5 = vadd.f32 %v3237_v24, %v3236_v57  ;;  %v1476_v52 = vmul.f32 %v4075_v37, %v5505_v50  ;;  %v1131_v25 = vmul.f32 %v5017_v20, %v5017_v20 }
 0x2bc   : > { %vm1477_vm7 = vcmp.eq.f32.partialorder %v5505_v50, inf  ;;  %vm1479_vm8 = vcmp.eq.f32.partialorder %v5505_v50, 0.0  ;;  %v1480_v29 = vand.u32 2147483648, %v5505_v50  ;;  %4082 = vrsqrt.f32 %v5577_v54 }
 0x2bd   : > { %v1492_v63 = vsel %vm1491_vm3, %v5503_v34, %v1490_v7  ;;  %v1478_v43 = vsel %vm1477_vm7, %v5505_v50, %v1476_v52  ;;  %v3240_v1 = vadd.f32 %v3239_v14, %v3238_v5  ;;  %v5595_v44 = vadd.f32 1e-06, %v2454_v15  ;;  %v4077_v59 = vpop.eup %4076 }
 0x2be   : > { %v1488_v20 = vsel %vm1486_vm2, %v1487_v4, %v1485_v6  ;;  %v1494_v27 = vand.u32 2147483648, %v5503_v34  ;;  %v1481_v42 = vsel %vm1479_vm8, %v1480_v29, %v1478_v43  ;;  %4084 = vrsqrt.f32 %v5579_v28 }
 0x2bf   : > { %v4079_v13 = vpop.eup %4078  ;;  %v1737_v9 = vsel %vm190_vm5, %v1481_v42, 0.0  ;;  %vm2703_vm9 = vcmp.eq.f32.partialorder %v5538_v18, inf  ;;  %v2706_v62 = vand.u32 2147483648, %v5538_v18  ;;  %v5604_v50 = vadd.f32 1e-06, %v1131_v25 }
 0x2c0   : > { %v1495_v61 = vsel %vm1493_vm4, %v1494_v27, %v1492_v63  ;;  %v1738_v32 = vadd.f32 %v1737_v9, %v1736_v47  ;;  %v2702_v26 = vmul.f32 %v4079_v13, %v5538_v18  ;;  %vm2705_vm10 = vcmp.eq.f32.partialorder %v5538_v18, 0.0  ;;  %v6258_v9 = vld [vmem:[#allocation21_spill] sm:$0xff] }
 0x2c1   : > { %v301_v16 = vand.u32 2147483647, %v4334_v30  ;;  %v1739_v56 = vsel %vm190_vm5, %v1488_v20, 0.0  ;;  %vm2717_vm11 = vcmp.eq.f32.partialorder %v5520_v36, inf  ;;  %4086 = vrsqrt.f32 %v5595_v44 }
 0x2c2   : > { %v1740_v4 = vadd.f32 %v1739_v56, %v1738_v32  ;;  %v2716_v51 = vmul.f32 %v4077_v59, %v5520_v36  ;;  %vm2719_vm12 = vcmp.eq.f32.partialorder %v5520_v36, 0.0  ;;  %v2704_v34 = vsel %vm2703_vm9, %v5538_v18, %v2702_v26 }
 0x2c3   : > { %v1741_v10 = vsel %vm190_vm5, %v1495_v61, 0.0  ;;  %v2720_v35 = vand.u32 2147483648, %v5520_v36  ;;  %v2707_v0 = vsel %vm2705_vm10, %v2706_v62, %v2704_v34  ;;  %4088 = vrsqrt.f32 %v5604_v50 }
 0x2c4   : > { %v4081_v49 = vpop.eup %4080  ;;  %v3241_v47 = vsel %vm190_vm5, %v2707_v0, 0.0  ;;  %vm1512_vm13 = vcmp.eq.f32.partialorder %v5562_v58, inf  ;;  %v1742_v11 = vadd.f32 %v1741_v10, %v1740_v4  ;;  %v1129_v33 = vmul.f32 %v5023_v31, %v5023_v31 }
 0x2c5   : > { %v3242_v24 = vadd.f32 %v3241_v47, %v3240_v1  ;;  %vm1514_vm14 = vcmp.eq.f32.partialorder %v5562_v58, 0.0  ;;  %v1515_v18 = vand.u32 2147483648, %v5562_v58  ;;  %v2459_v55 = vmul.f32 %v6256_v8, %v6256_v8  ;;  %v6259_v47 = vld [vmem:[#allocation22_spill] sm:$0xff] }
 0x2c6   : > { %v2457_v14 = vmul.f32 %v6257_v39, %v6257_v39  ;;  %v4083_v57 = vpop.eup %4082  ;;  %v2718_v15 = vsel %vm2717_vm11, %v5520_v36, %v2716_v51  ;;  %vm2724_vm15 = vcmp.eq.f32.partialorder %v5577_v54, inf  ;;  %vm2726_vm0 = vcmp.eq.f32.partialorder %v5577_v54, 0.0 }
 0x2c7   : > { %v5635_v31 = vadd.f32 1e-06, %v1129_v33  ;;  %v1511_v37 = vmul.f32 %v4081_v49, %v5562_v58  ;;  %v2727_v7 = vand.u32 2147483648, %v5577_v54  ;;  %v5639_v6 = vadd.f32 1e-06, %v2459_v55 }
 0x2c8   : > { %v5641_v5 = vadd.f32 1e-06, %v2457_v14  ;;  %v4085_v52 = vpop.eup %4084  ;;  %v2723_v25 = vmul.f32 %v4083_v57, %v5577_v54  ;;  %vm1498_vm1 = vcmp.eq.f32.partialorder %v5579_v28, inf  ;;  %vm1500_vm2 = vcmp.eq.f32.partialorder %v5579_v28, 0.0 }
 0x2c9   : > { %4090 = vrsqrt.f32 %v5635_v31  ;;  %v2721_v29 = vsel %vm2719_vm12, %v2720_v35, %v2718_v15  ;;  %v1497_v63 = vmul.f32 %v4085_v52, %v5579_v28  ;;  %v1134_v43 = vmul.f32 %v5052_v46, %v5052_v46 }
 0x2ca   : > { %4092 = vrsqrt.f32 %v5639_v6  ;;  %v1501_v1 = vand.u32 2147483648, %v5579_v28  ;;  %vm2710_vm3 = vcmp.eq.f32.partialorder %v5595_v44, inf  ;;  %vm2712_vm4 = vcmp.eq.f32.partialorder %v5595_v44, 0.0 }
 0x2cb   : > { %v1132_v59 = vmul.f32 %v5058_v53, %v5058_v53  ;;  %v4087_v20 = vpop.eup %4086  ;;  %v1513_v36 = vsel %vm1512_vm13, %v5562_v58, %v1511_v37  ;;  %v1499_v27 = vsel %vm1498_vm1, %v5579_v28, %v1497_v63  ;;  %v2713_v42 = vand.u32 2147483648, %v5595_v44 }
 0x2cc   : > { %4094 = vrsqrt.f32 %v5641_v5  ;;  %v2725_v46 = vsel %vm2724_vm15, %v5577_v54, %v2723_v25  ;;  %v1502_v13 = vsel %vm1500_vm2, %v1501_v1, %v1499_v27  ;;  %v2709_v53 = vmul.f32 %v4087_v20, %v5595_v44 }
 0x2cd   : > { %v2460_v62 = vmul.f32 %v6258_v9, %v6258_v9  ;;  %v4089_v61 = vpop.eup %4088  ;;  %v3245_v32 = vsel %vm190_vm5, %v2721_v29, 0.0  ;;  %v1743_v26 = vsel %vm190_vm5, %v1502_v13, 0.0  ;;  %vm1519_vm7 = vcmp.eq.f32.partialorder %v5604_v50, inf }
 0x2ce   : > { %v5675_v56 = vadd.f32 1e-06, %v1134_v43  ;;  %v1516_v4 = vsel %vm1514_vm14, %v1515_v18, %v1513_v36  ;;  %v1744_v51 = vadd.f32 %v1743_v26, %v1742_v11  ;;  %v2711_v28 = vsel %vm2710_vm3, %v5595_v44, %v2709_v53 }
 0x2cf   : > { %v5682_v34 = vadd.f32 1e-06, %v1132_v59  ;;  %v2728_v10 = vsel %vm2726_vm0, %v2727_v7, %v2725_v46  ;;  %v2714_v35 = vsel %vm2712_vm4, %v2713_v42, %v2711_v28  ;;  %vm1521_vm8 = vcmp.eq.f32.partialorder %v5604_v50, 0.0 }
 0x2d0   : > { %4096 = vrsqrt.f32 %v5675_v56  ;;  %v3243_v58 = vsel %vm190_vm5, %v2714_v35, 0.0  ;;  %v1518_v0 = vmul.f32 %v4089_v61, %v5604_v50  ;;  %v5692_v49 = vadd.f32 1e-06, %v2460_v62 }
 0x2d1   : > { %v2458_v11 = vmul.f32 %v6259_v47, %v6259_v47  ;;  %v1747_v33 = vsel %vm190_vm5, %v1516_v4, 0.0  ;;  %v3244_v54 = vadd.f32 %v3243_v58, %v3242_v24  ;;  %v1522_v18 = vand.u32 2147483648, %v5604_v50 }
 0x2d2   : > { %vm1505_vm9 = vcmp.eq.f32.partialorder %v5635_v31, inf  ;;  %v3247_v8 = vsel %vm190_vm5, %v2728_v10, 0.0  ;;  %vm1507_vm10 = vcmp.eq.f32.partialorder %v5635_v31, 0.0  ;;  %v1508_v55 = vand.u32 2147483648, %v5635_v31  ;;  %v6261_v10 = vld [vmem:[#allocation23_spill] sm:$0xff] }
 0x2d3   : > { %v4091_v44 = vpop.eup %4090  ;;  %4098 = vrsqrt.f32 %v5682_v34  ;;  %v3246_v14 = vadd.f32 %v3245_v32, %v3244_v54  ;;  %vm2731_vm11 = vcmp.eq.f32.partialorder %v5641_v5, inf  ;;  %vm2733_vm12 = vcmp.eq.f32.partialorder %v5641_v5, 0.0 }
 0x2d4   : > { %v4093_v39 = vpop.eup %4092  ;;  %v1504_v57 = vmul.f32 %v4091_v44, %v5635_v31  ;;  %v1520_v24 = vsel %vm1519_vm7, %v5604_v50, %v1518_v0  ;;  %v2734_v15 = vand.u32 2147483648, %v5641_v5  ;;  %4100 = vrsqrt.f32 %v5692_v49 }
 0x2d5   : > { %v5711_v37 = vadd.f32 1e-06, %v2458_v11  ;;  %v3248_v25 = vadd.f32 %v3247_v8, %v3246_v14  ;;  %v1135_v29 = vmul.f32 %v5065_v2, %v5065_v2  ;;  %v1133_v63 = vmul.f32 %v5073_v3, %v5073_v3 }
 0x2d6   : > { %v4095_v7 = vpop.eup %4094  ;;  %v1506_v52 = vsel %vm1505_vm9, %v5635_v31, %v1504_v57  ;;  %v2744_v1 = vmul.f32 %v4093_v39, %v5639_v6  ;;  %v1523_v20 = vsel %vm1521_vm8, %v1522_v18, %v1520_v24  ;;  %vm2745_vm13 = vcmp.eq.f32.partialorder %v5639_v6, inf }
 0x2d7   : > { %v1509_v43 = vsel %vm1507_vm10, %v1508_v55, %v1506_v52  ;;  %v2730_v59 = vmul.f32 %v4095_v7, %v5641_v5  ;;  %4102 = vrsqrt.f32 %v5711_v37  ;;  %vm2747_vm14 = vcmp.eq.f32.partialorder %v5639_v6, 0.0 }
 0x2d8   : > { %v1745_v36 = vsel %vm190_vm5, %v1509_v43, 0.0  ;;  %v2748_v3 = vand.u32 2147483648, %v5639_v6  ;;  %vm1540_vm15 = vcmp.eq.f32.partialorder %v5675_v56, inf  ;;  %vm1542_vm0 = vcmp.eq.f32.partialorder %v5675_v56, 0.0  ;;  %v6263_v43 = vld [vmem:[#allocation26_spill] sm:$0xff] }
 0x2d9   : > { %v1746_v2 = vadd.f32 %v1745_v36, %v1744_v51  ;;  %v2732_v31 = vsel %vm2731_vm11, %v5641_v5, %v2730_v59  ;;  %v5738_v42 = vadd.f32 1e-06, %v1135_v29  ;;  %v5740_v46 = vadd.f32 1e-06, %v1133_v63  ;;  %v6260_v5 = vld [vmem:[#allocation24_spill] sm:$0xff] }
 0x2da   : > { %v4097_v27 = vpop.eup %4096  ;;  %v2735_v50 = vsel %vm2733_vm12, %v2734_v15, %v2732_v31  ;;  %v1749_v13 = vsel %vm190_vm5, %v1523_v20, 0.0  ;;  %v2746_v9 = vsel %vm2745_vm13, %v5639_v6, %v2744_v1  ;;  %v2461_v26 = vmul.f32 %v6260_v5, %v6260_v5  ;;  %v6264_v59 = vld [vmem:[#allocation28_spill] sm:$0xff] }
 0x2db   : > { %v1748_v53 = vadd.f32 %v1747_v33, %v1746_v2  ;;  %v3249_v62 = vsel %vm190_vm5, %v2735_v50, 0.0  ;;  %v1539_v32 = vmul.f32 %v4097_v27, %v5675_v56  ;;  %4104 = vrsqrt.f32 %v5738_v42 }
 0x2dc   : > { %v3250_v61 = vadd.f32 %v3249_v62, %v3248_v25  ;;  %v1543_v51 = vand.u32 2147483648, %v5675_v56  ;;  %vm2752_vm1 = vcmp.eq.f32.partialorder %v5692_v49, inf  ;;  %v2463_v35 = vmul.f32 %v6261_v10, %v6261_v10  ;;  %v6262_v25 = vld [vmem:[#allocation27_spill] sm:$0xff] }
 0x2dd   : > { %v4099_v4 = vpop.eup %4098  ;;  %v1750_v28 = vadd.f32 %v1749_v13, %v1748_v53  ;;  %v2749_v58 = vsel %vm2747_vm14, %v2748_v3, %v2746_v9  ;;  %v2755_v0 = vand.u32 2147483648, %v5692_v49  ;;  %4106 = vrsqrt.f32 %v5740_v46 }
 0x2de   : > { %v1525_v47 = vmul.f32 %v4099_v4, %v5682_v34  ;;  %v4101_v11 = vpop.eup %4100  ;;  %vm1526_vm2 = vcmp.eq.f32.partialorder %v5682_v34, inf  ;;  %vm1528_vm3 = vcmp.eq.f32.partialorder %v5682_v34, 0.0  ;;  %v1529_v33 = vand.u32 2147483648, %v5682_v34 }
 0x2df   : > { %vm2738_vm4 = vcmp.eq.f32.partialorder %v5711_v37, inf  ;;  %v1541_v6 = vsel %vm1540_vm15, %v5675_v56, %v1539_v32  ;;  %vm2754_vm7 = vcmp.eq.f32.partialorder %v5692_v49, 0.0  ;;  %vm2740_vm8 = vcmp.eq.f32.partialorder %v5711_v37, 0.0 }
 0x2e0   : > { %v1527_v54 = vsel %vm1526_vm2, %v5682_v34, %v1525_v47  ;;  %v5768_v18 = vadd.f32 1e-06, %v2461_v26  ;;  %v5771_v8 = vsel %vm190_vm5, %v2749_v58, 0.0  ;;  %v2741_v39 = vand.u32 2147483648, %v5711_v37 }
 0x2e1   : > { %v4103_v44 = vpop.eup %4102  ;;  %v1530_v55 = vsel %vm1528_vm3, %v1529_v33, %v1527_v54  ;;  %v5774_v14 = vadd.f32 1e-06, %v2463_v35  ;;  %v2751_v57 = vmul.f32 %v4101_v11, %v5692_v49  ;;  %vm1547_vm9 = vcmp.eq.f32.partialorder %v5738_v42, inf }
 0x2e2   : > { %v1751_v24 = vsel %vm190_vm5, %v1530_v55, 0.0  ;;  %v2737_v15 = vmul.f32 %v4103_v44, %v5711_v37  ;;  %v1544_v34 = vsel %vm1542_vm0, %v1543_v51, %v1541_v6  ;;  %v1138_v52 = vmul.f32 %v5098_v23, %v5098_v23  ;;  %v6265_v23 = vld [vmem:[#allocation25_spill] sm:$0xff] }
 0x2e3   : > { %v1752_v7 = vadd.f32 %v1751_v24, %v1750_v28  ;;  %v1136_v29 = vmul.f32 %v6262_v25, %v6262_v25  ;;  %4108 = vrsqrt.f32 %v5768_v18  ;;  %v2462_v1 = vmul.f32 %v6263_v43, %v6263_v43  ;;  %v6266_v51 = vld [vmem:[#allocation29_spill] sm:$0xff] }
 0x2e4   : > { %v2739_v63 = vsel %vm2738_vm4, %v5711_v37, %v2737_v15  ;;  %v1139_v56 = vmul.f32 %v6264_v59, %v6264_v59  ;;  %v5796_v36 = vadd.f32 1e-06, %v1138_v52  ;;  %v2464_v2 = vmul.f32 %v6265_v23, %v6265_v23 }
 0x2e5   : > { %v2742_v20 = vsel %vm2740_vm8, %v2741_v39, %v2739_v63  ;;  %v5800_v3 = vadd.f32 1e-06, %v1136_v29  ;;  %v4105_v31 = vpop.eup %4104  ;;  %vm1549_vm10 = vcmp.eq.f32.partialorder %v5738_v42, 0.0  ;;  %4110 = vrsqrt.f32 %v5774_v14 }
 0x2e6   : > { %v3251_v27 = vsel %vm190_vm5, %v2742_v20, 0.0  ;;  %v5805_v50 = vadd.f32 1e-06, %v2462_v1  ;;  %v1546_v37 = vmul.f32 %v4105_v31, %v5738_v42  ;;  %v1550_v53 = vand.u32 2147483648, %v5738_v42 }
 0x2e7   : > { %v5807_v13 = vadd.f32 %v3251_v27, %v3250_v61  ;;  %4112 = vrsqrt.f32 %v5796_v36  ;;  %v4107_v9 = vpop.eup %4106  ;;  %v1755_v62 = vsel %vm190_vm5, %v1544_v34, 0.0  ;;  %v2753_v32 = vsel %vm2752_vm1, %v5692_v49, %v2751_v57 }
 0x2e8   : > { %vm1533_vm11 = vcmp.eq.f32.partialorder %v5740_v46, inf  ;;  %v5817_v5 = vadd.f32 1e-06, %v1139_v56  ;;  %v1532_v61 = vmul.f32 %v4107_v9, %v5740_v46  ;;  %vm1535_vm12 = vcmp.eq.f32.partialorder %v5740_v46, 0.0 }
 0x2e9   : > { %v5821_v26 = vadd.f32 1e-06, %v2464_v2  ;;  %4114 = vrsqrt.f32 %v5800_v3  ;;  %v1536_v4 = vand.u32 2147483648, %v5740_v46  ;;  %v1137_v28 = vmul.f32 %v6266_v51, %v6266_v51 }
 0x2ea   : > { %4116 = vrsqrt.f32 %v5805_v50  ;;  %v1142_v10 = vmul.f32 %v5163_v19, %v5163_v19  ;;  %v5832_v35 = vsel %vm2754_vm7, %v2755_v0, %v2753_v32  ;;  %v1548_v58 = vsel %vm1547_vm9, %v5738_v42, %v1546_v37 }
 0x2eb   : > { %v1534_v47 = vsel %vm1533_vm11, %v5740_v46, %v1532_v61  ;;  %v2776_v11 = vand.u32 2147483648, %v5774_v14  ;;  %vm2759_vm13 = vcmp.eq.f32.partialorder %v5768_v18, inf  ;;  %v2762_v6 = vand.u32 2147483648, %v5768_v18 }
 0x2ec   : > { %v1537_v33 = vsel %vm1535_vm12, %v1536_v4, %v1534_v47  ;;  %4118 = vrsqrt.f32 %v5817_v5  ;;  %vm1568_vm14 = vcmp.eq.f32.partialorder %v5796_v36, inf  ;;  %v1571_v49 = vand.u32 2147483648, %v5796_v36 }
 0x2ed   : > { %v1753_v19 = vsel %vm190_vm5, %v1537_v33, 0.0  ;;  %4120 = vrsqrt.f32 %v5821_v26  ;;  %v4109_v0 = vpop.eup %4108  ;;  %v1551_v46 = vsel %vm1549_vm10, %v1550_v53, %v1548_v58  ;;  %vm1570_vm15 = vcmp.eq.f32.partialorder %v5796_v36, 0.0 }
 0x2ee   : > { %v1754_v54 = vadd.f32 %v1753_v19, %v1752_v7  ;;  %v5849_v44 = vadd.f32 1e-06, %v1137_v28  ;;  %v5851_v55 = vadd.f32 1e-06, %v1142_v10  ;;  %vm1554_vm0 = vcmp.eq.f32.partialorder %v5800_v3, inf }
 0x2ef   : > { %vm1556_vm1 = vcmp.eq.f32.partialorder %v5800_v3, 0.0  ;;  %v1140_v39 = vmul.f32 %v5174_v60, %v5174_v60  ;;  %v1143_v57 = vmul.f32 %v5182_v48, %v5182_v48  ;;  %v4111_v24 = vpop.eup %4110  ;;  %v1557_v15 = vand.u32 2147483648, %v5800_v3 }
 0x2f0   : > { %v1756_v42 = vadd.f32 %v1755_v62, %v1754_v54  ;;  %4122 = vrsqrt.f32 %v5849_v44  ;;  %v1141_v34 = vmul.f32 %v5187_v41, %v5187_v41  ;;  %v1757_v52 = vsel %vm190_vm5, %v1551_v46, 0.0 }
 0x2f1   : > { %v4113_v7 = vpop.eup %4112  ;;  %v2758_v25 = vmul.f32 %v4109_v0, %v5768_v18  ;;  %vm2766_vm2 = vcmp.eq.f32.partialorder %v5805_v50, inf  ;;  %4124 = vrsqrt.f32 %v5851_v55  ;;  %v5868_v29 = vadd.f32 1e-06, %v1140_v39 }
 0x2f2   : > { %v1567_v60 = vmul.f32 %v4113_v7, %v5796_v36  ;;  %v1758_v48 = vadd.f32 %v1757_v52, %v1756_v42  ;;  %v1146_v63 = vmul.f32 %v5205_v45, %v5205_v45  ;;  %v5873_v41 = vmul.f32 %v4111_v24, %v5774_v14 }
 0x2f3   : > { %v4115_v43 = vpop.eup %4114  ;;  %v2769_v1 = vand.u32 2147483648, %v5805_v50  ;;  %vm1575_vm3 = vcmp.eq.f32.partialorder %v5817_v5, inf  ;;  %v5877_v59 = vadd.f32 1e-06, %v1143_v57  ;;  %vm1577_vm4 = vcmp.eq.f32.partialorder %v5817_v5, 0.0 }
 0x2f4   : > { %v4117_v56 = vpop.eup %4116  ;;  %v1569_v20 = vsel %vm1568_vm14, %v5796_v36, %v1567_v60  ;;  %v1553_v23 = vmul.f32 %v4115_v43, %v5800_v3  ;;  %4126 = vrsqrt.f32 %v5868_v29  ;;  %v5885_v45 = vadd.f32 1e-06, %v1141_v34 }
 0x2f5   : > { %v5890_v2 = vsel %vm2759_vm13, %v5768_v18, %v2758_v25  ;;  %v1578_v31 = vand.u32 2147483648, %v5817_v5  ;;  %vm1561_vm7 = vcmp.eq.f32.partialorder %v5849_v44, inf  ;;  %vm1563_vm8 = vcmp.eq.f32.partialorder %v5849_v44, 0.0 }
 0x2f6   : > { %v4119_v27 = vpop.eup %4118  ;;  %v1555_v37 = vsel %vm1554_vm0, %v5800_v3, %v1553_v23  ;;  %v1564_v53 = vand.u32 2147483648, %v5849_v44  ;;  %4128 = vrsqrt.f32 %v5877_v59  ;;  %v5900_v9 = vadd.f32 1e-06, %v1146_v63 }
 0x2f7   : > { %v5902_v62 = vpop.eup %4120  ;;  %v1572_v32 = vsel %vm1570_vm15, %v1571_v49, %v1569_v20  ;;  %v1558_v61 = vsel %vm1556_vm1, %v1557_v15, %v1555_v37  ;;  %v2765_v4 = vmul.f32 %v4117_v56, %v5805_v50  ;;  %v1574_v51 = vmul.f32 %v4119_v27, %v5817_v5 }
 0x2f8   : > { %v1759_v28 = vsel %vm190_vm5, %v1558_v61, 0.0  ;;  %vm1596_vm9 = vcmp.eq.f32.partialorder %v5851_v55, inf  ;;  %vm1598_vm10 = vcmp.eq.f32.partialorder %v5851_v55, 0.0  ;;  %4130 = vrsqrt.f32 %v5885_v45 }
 0x2f9   : > { %v1760_v10 = vadd.f32 %v1759_v28, %v1758_v48  ;;  %v1599_v58 = vand.u32 2147483648, %v5851_v55  ;;  %vm1582_vm11 = vcmp.eq.f32.partialorder %v5868_v29, inf  ;;  %vm1584_vm12 = vcmp.eq.f32.partialorder %v5868_v29, 0.0 }
 0x2fa   : > { %v4123_v36 = vpop.eup %4122  ;;  %v1763_v3 = vsel %vm190_vm5, %v1572_v32, 0.0  ;;  %v1576_v47 = vsel %vm1575_vm3, %v5817_v5, %v1574_v51  ;;  %v1585_v33 = vand.u32 2147483648, %v5868_v29  ;;  %4132 = vrsqrt.f32 %v5900_v9  ;;  %v6268_v51 = vld [vmem:[#allocation31_spill] sm:$0xff] }
 0x2fb   : > { %v4125_v19 = vpop.eup %4124  ;;  %v5926_v49 = vsel %vm2766_vm2, %v5805_v50, %v2765_v4  ;;  %v1560_v0 = vmul.f32 %v4123_v36, %v5849_v44  ;;  %vm1603_vm13 = vcmp.eq.f32.partialorder %v5877_v59, inf  ;;  %v1144_v46 = vmul.f32 %v5215_v12, %v5215_v12 }
 0x2fc   : > { %v1595_v54 = vmul.f32 %v4125_v19, %v5851_v55  ;;  %v1606_v39 = vand.u32 2147483648, %v5877_v59  ;;  %v1147_v57 = vmul.f32 %v5223_v22, %v5223_v22  ;;  %v1145_v24 = vmul.f32 %v5231_v17, %v5231_v17 }
 0x2fd   : > { %v1579_v42 = vsel %vm1577_vm4, %v1578_v31, %v1576_v47  ;;  %v1562_v15 = vsel %vm1561_vm7, %v5849_v44, %v1560_v0  ;;  %vm1605_vm14 = vcmp.eq.f32.partialorder %v5877_v59, 0.0  ;;  %vm1589_vm15 = vcmp.eq.f32.partialorder %v5885_v45, inf }
 0x2fe   : > { %v5945_v12 = vadd.f32 1e-06, %v1144_v46  ;;  %v4127_v34 = vpop.eup %4126  ;;  %v1565_v22 = vsel %vm1563_vm8, %v1564_v53, %v1562_v15  ;;  %v1597_v17 = vsel %vm1596_vm9, %v5851_v55, %v1595_v54  ;;  %vm1591_vm0 = vcmp.eq.f32.partialorder %v5885_v45, 0.0  ;;  %v6267_v55 = vld [vmem:[#allocation30_spill] sm:$0xff] }
 0x2ff   : > { %v5953_v5 = vadd.f32 1e-06, %v1147_v57  ;;  %v1761_v7 = vsel %vm190_vm5, %v1565_v22, 0.0  ;;  %v1581_v52 = vmul.f32 %v4127_v34, %v5868_v29  ;;  %v1592_v25 = vand.u32 2147483648, %v5885_v45 }
 0x300   : > { %4134 = vrsqrt.f32 %v5945_v12  ;;  %v4129_v60 = vpop.eup %4128  ;;  %v1765_v44 = vsel %vm190_vm5, %v1579_v42, 0.0  ;;  %v1762_v48 = vadd.f32 %v1761_v7, %v1760_v10  ;;  %vm1624_vm1 = vcmp.eq.f32.partialorder %v5900_v9, inf }
 0x301   : > { %v5961_v63 = vadd.f32 1e-06, %v1145_v24  ;;  %v1600_v43 = vsel %vm1598_vm10, %v1599_v58, %v1597_v17  ;;  %v1583_v56 = vsel %vm1582_vm11, %v5868_v29, %v1581_v52  ;;  %v1602_v20 = vmul.f32 %v4129_v60, %v5877_v59  ;;  %v6269_v52 = vld [vmem:[#allocation32_spill] sm:$0xff]  ;;  %v6270_v60 = vld [vmem:[#allocation17_spill] sm:$0xff] }
 0x302   : > { %vm1626_vm2 = vcmp.eq.f32.partialorder %v5900_v9, 0.0  ;;  %4136 = vrsqrt.f32 %v5953_v5  ;;  %v4131_v23 = vpop.eup %4130  ;;  %v1764_v31 = vadd.f32 %v1763_v3, %v1762_v48  ;;  %v1586_v27 = vsel %vm1584_vm12, %v1585_v33, %v1583_v56  ;;  %v6271_v48 = vld [vmem:[#allocation18_spill] sm:$0xff] }
 0x303   : > { %v1150_v37 = vmul.f32 %v5256_v40, %v5256_v40  ;;  %v1148_v53 = vmul.f32 %v6267_v55, %v6267_v55  ;;  %v1767_v32 = vsel %vm190_vm5, %v1586_v27, 0.0  ;;  %v1604_v61 = vsel %vm1603_vm13, %v5877_v59, %v1602_v20 }
 0x304   : > { %v1588_v4 = vmul.f32 %v4131_v23, %v5885_v45  ;;  %v1151_v28 = vmul.f32 %v6268_v51, %v6268_v51  ;;  %v4133_v10 = vpop.eup %4132  ;;  %v1771_v29 = vsel %vm190_vm5, %v1600_v43, 0.0  ;;  %v1766_v58 = vadd.f32 %v1765_v44, %v1764_v31  ;;  %v6272_v23 = vld [vmem:[#allocation14_spill] sm:$0xff] }
 0x305   : > { %v1627_v40 = vand.u32 2147483648, %v5900_v9  ;;  %4138 = vrsqrt.f32 %v5961_v63  ;;  %v1623_v3 = vmul.f32 %v4133_v10, %v5900_v9  ;;  %vm1610_vm3 = vcmp.eq.f32.partialorder %v5945_v12, inf }
 0x306   : > { %v1590_v36 = vsel %vm1589_vm15, %v5885_v45, %v1588_v4  ;;  %vm1612_vm4 = vcmp.eq.f32.partialorder %v5945_v12, 0.0  ;;  %v1768_v47 = vadd.f32 %v1767_v32, %v1766_v58  ;;  %v1607_v33 = vsel %vm1605_vm14, %v1606_v39, %v1604_v61 }
 0x307   : > { %v1593_v19 = vsel %vm1591_vm0, %v1592_v25, %v1590_v36  ;;  %v5997_v0 = vadd.f32 1e-06, %v1150_v37  ;;  %v1625_v54 = vsel %vm1624_vm1, %v5900_v9, %v1623_v3  ;;  %v6003_v57 = vadd.f32 1e-06, %v1148_v53  ;;  %v4148_v3 = vld [vmem:[%s4315_s28] sm:$0xff] }
 0x308   : > { %v1769_v46 = vsel %vm190_vm5, %v1593_v19, 0.0  ;;  %v6005_v24 = vadd.f32 1e-06, %v1151_v28  ;;  %v1613_v15 = vand.u32 2147483648, %v5945_v12  ;;  %vm1631_vm7 = vcmp.eq.f32.partialorder %v5953_v5, inf  ;;  %v4150_v19 = vld [vmem:[%s4315_s28 + $0x8] sm:$0xff] }
 0x309   : > { %v1770_v42 = vadd.f32 %v1769_v46, %v1768_v47  ;;  %4140 = vrsqrt.f32 %v5997_v0  ;;  %v1773_v45 = vsel %vm190_vm5, %v1607_v33, 0.0  ;;  %v1634_v39 = vand.u32 2147483648, %v5953_v5  ;;  %v4149_v47 = vld [vmem:[%s4320_s4] sm:$0xff]  ;;  %v4151_v46 = vld [vmem:[%s4320_s4 + $0x8] sm:$0xff] }
 0x30a   : > { %v4135_v59 = vpop.eup %4134  ;;  %vm1617_vm8 = vcmp.eq.f32.partialorder %v5961_v63, inf  ;;  %4142 = vrsqrt.f32 %v6003_v57  ;;  %v1628_v22 = vsel %vm1626_vm2, %v1627_v40, %v1625_v54  ;;  %vm1633_vm9 = vcmp.eq.f32.partialorder %v5953_v5, 0.0 }
 0x30b   : > { %v1772_v34 = vadd.f32 %v1771_v29, %v1770_v42  ;;  %v1609_v17 = vmul.f32 %v4135_v59, %v5945_v12  ;;  %vm1619_vm10 = vcmp.eq.f32.partialorder %v5961_v63, 0.0  ;;  %4144 = vrsqrt.f32 %v6005_v24  ;;  %v4152_v59 = vld [vmem:[%s4315_s28 + $0x10] sm:$0xff] }
 0x30c   : > { %v4137_v7 = vpop.eup %4136  ;;  %v1149_v25 = vmul.f32 %v6269_v52, %v6269_v52  ;;  %v256_v44 = vand.u32 2147483647, %v6270_v60  ;;  %v257_v43 = vand.u32 2147483647, %v6271_v48  ;;  %v302_v31 = vand.u32 2147483647, %v6272_v23 }
 0x30d   : > { %v1611_v9 = vsel %vm1610_vm3, %v5945_v12, %v1609_v17  ;;  %v1774_v56 = vadd.f32 %v1773_v45, %v1772_v34  ;;  %v1630_v20 = vmul.f32 %v4137_v7, %v5953_v5  ;;  %v1620_v4 = vand.u32 2147483648, %v5961_v63  ;;  %v4153_v45 = vld [vmem:[%s4320_s4 + $0x10] sm:$0xff]  ;;  %v4155_v17 = vld [vmem:[%s4320_s4 + $0x18] sm:$0xff] }
 0x30e   : > { %v1614_v27 = vsel %vm1612_vm4, %v1613_v15, %v1611_v9  ;;  %v6031_v37 = vadd.f32 1e-06, %v1149_v25  ;;  %v259_v55 = vsel %vm258_vm6, %v256_v44, 0.0  ;;  %v260_v53 = vsel %vm258_vm6, %v257_v43, 0.0  ;;  %v6273_v52 = vld [vmem:[#allocation13_spill] sm:$0xff] }
 0x30f   : > { %v4139_v32 = vpop.eup %4138  ;;  %v1775_v61 = vsel %vm190_vm5, %v1614_v27, 0.0  ;;  %v261_v51 = vadd.f32 %v260_v53, %v259_v55  ;;  %v303_v12 = vsel %vm258_vm6, %v301_v16, 0.0  ;;  %v6041_v28 = vsel %vm190_vm5, %v1628_v22, 0.0  ;;  %v4154_v22 = vld [vmem:[%s4315_s28 + $0x18] sm:$0xff] }
 0x310   : > { %v1776_v10 = vadd.f32 %v1775_v61, %v1774_v56  ;;  %v1616_v29 = vmul.f32 %v4139_v32, %v5961_v63  ;;  %4146 = vrsqrt.f32 %v6031_v37  ;;  %v1632_v58 = vsel %vm1631_vm7, %v5953_v5, %v1630_v20 }
 0x311   : > { %vm1638_vm11 = vcmp.eq.f32.partialorder %v6003_v57, inf  ;;  %v1641_v30 = vand.u32 2147483648, %v6003_v57  ;;  %262 = vadd.xlane.f32.xlu0 %v261_v51  ;;  %v304_v16 = vsel %vm258_vm6, %v302_v31, 0.0  ;;  %v274_v33 = vsub.f32 %v4148_v3, %v4149_v47  ;;  %v4157_v51 = vld [vmem:[%s4320_s4 + $0x20] sm:$0xff] }
 0x312   : > { %v1618_v40 = vsel %vm1617_vm8, %v5961_v63, %v1616_v29  ;;  %v305_v36 = vadd.f32 %v304_v16, %v303_v12  ;;  %v275_v54 = vsub.f32 %v4150_v19, %v4151_v46  ;;  %vm1652_vm12 = vcmp.eq.f32.partialorder %v5997_v0, inf  ;;  %v4159_v29 = vld [vmem:[%s4320_s4 + $0x28] sm:$0xff]  ;;  %v6275_v47 = vld [vmem:[#allocation15_spill] sm:$0xff] }
 0x313   : > { %v4141_v42 = vpop.eup %4140  ;;  %v1621_v15 = vsel %vm1619_vm10, %v1620_v4, %v1618_v40  ;;  %vm1640_vm13 = vcmp.eq.f32.partialorder %v6003_v57, 0.0  ;;  %v332_v34 = vsub.f32 %v4152_v59, %v4153_v45  ;;  %v333_v7 = vsub.f32 %v4154_v22, %v4155_v17 }
 0x314   : > { %v360_v25 = vand.u32 2147483647, %v6273_v52  ;;  %v4143_v60 = vpop.eup %4142  ;;  %v1635_v44 = vsel %vm1633_vm9, %v1634_v39, %v1632_v58  ;;  %v1777_v48 = vsel %vm190_vm5, %v1621_v15, 0.0  ;;  %v276_v63 = vand.u32 2147483647, %v274_v33 }
 0x315   : > { %v277_v43 = vand.u32 2147483647, %v275_v54  ;;  %v1778_v9 = vadd.f32 %v1777_v48, %v1776_v10  ;;  %v1637_v56 = vmul.f32 %v4143_v60, %v6003_v57  ;;  %306 = vadd.xlane.f32.xlu0 %v305_v36  ;;  %v334_v20 = vand.u32 2147483647, %v332_v34  ;;  %v4145_v31 = vpop.eup %4144  ;;  %v4158_v10 = vld [vmem:[%s4315_s28 + $0x28] sm:$0xff] }
 0x316   : > { %v335_v23 = vand.u32 2147483647, %v333_v7  ;;  %vm2761_vm14 = vcmp.eq.f32.partialorder %v5768_v18, 0.0  ;;  %v278_v27 = vsel %vm258_vm6, %v276_v63, 0.0  ;;  %v361_v39 = vsel %vm258_vm6, %v359_v38, 0.0  ;;  %v4156_v38 = vld [vmem:[%s4315_s28 + $0x20] sm:$0xff] }
 0x317   : > { %v279_v5 = vsel %vm258_vm6, %v277_v43, 0.0  ;;  %v362_v55 = vsel %vm258_vm6, %v360_v25, 0.0  ;;  %vm2773_vm15 = vcmp.eq.f32.partialorder %v5774_v14, inf  ;;  %vm2768_vm0 = vcmp.eq.f32.partialorder %v5805_v50, 0.0  ;;  %v6274_v36 = vld [vmem:[#allocation16_spill] sm:$0xff] }
 0x318   : > { %v1651_v53 = vmul.f32 %v4141_v42, %v5997_v0  ;;  %vm1645_vm1 = vcmp.eq.f32.partialorder %v6031_v37, inf  ;;  %v280_v32 = vadd.f32 %v279_v5, %v278_v27  ;;  %v336_v61 = vsel %vm258_vm6, %v334_v20, 0.0 }
 0x319   : > { %v1639_v4 = vsel %vm1638_vm11, %v6003_v57, %v1637_v56  ;;  %v337_v21 = vsel %vm258_vm6, %v335_v23, 0.0  ;;  %v390_v12 = vsub.f32 %v4156_v38, %v4157_v51  ;;  %v391_v58 = vsub.f32 %v4158_v10, %v4159_v29 }
 0x31a   : > { %281 = vadd.xlane.f32.xlu1 %v280_v32  ;;  %v338_v16 = vadd.f32 %v337_v21, %v336_v61  ;;  %v363_v40 = vadd.f32 %v362_v55, %v361_v39  ;;  %v417_v3 = vand.u32 2147483647, %v6274_v36  ;;  %v418_v33 = vand.u32 2147483647, %v6275_v47  ;;  %v4147_v19 = vpop.eup %4146 }
 0x31b   : > { %v1658_v46 = vmul.f32 %v4145_v31, %v6005_v24  ;;  %vm1647_vm2 = vcmp.eq.f32.partialorder %v6031_v37, 0.0  ;;  %v392_v54 = vand.u32 2147483647, %v390_v12  ;;  %v393_v42 = vand.u32 2147483647, %v391_v58 }
 0x31c   : > { %v1644_v15 = vmul.f32 %v4147_v19, %v6031_v37  ;;  %v1648_v59 = vand.u32 2147483648, %v6031_v37  ;;  %339 = vadd.xlane.f32.xlu0 %v338_v16  ;;  %v419_v45 = vsel %vm258_vm6, %v417_v3, 0.0  ;;  %v420_v34 = vsel %vm258_vm6, %v418_v33, 0.0 }
 0x31d   : > { %v394_v22 = vsel %vm258_vm6, %v392_v54, 0.0  ;;  %v395_v17 = vsel %vm258_vm6, %v393_v42, 0.0  ;;  %v1642_v7 = vsel %vm1640_vm13, %v1641_v30, %v1639_v4  ;;  %v1653_v52 = vsel %vm1652_vm12, %v5997_v0, %v1651_v53 }
 0x31e   : > { %v1646_v25 = vsel %vm1645_vm1, %v6031_v37, %v1644_v15  ;;  %364 = vadd.xlane.f32.xlu1 %v363_v40  ;;  %v396_v60 = vadd.f32 %v395_v17, %v394_v22  ;;  %v421_v48 = vadd.f32 %v420_v34, %v419_v45  ;;  %vm1659_vm3 = vcmp.eq.f32.partialorder %v6005_v24, inf }
 0x31f   : > { %v1655_v63 = vand.u32 2147483648, %v5997_v0  ;;  %v1649_v43 = vsel %vm1647_vm2, %v1648_v59, %v1646_v25  ;;  %v1660_v57 = vsel %vm1659_vm3, %v6005_v24, %v1658_v46  ;;  %v1780_v30 = vadd.f32 %v6041_v28, %v1778_v9 }
 0x320   : > { %397 = vadd.xlane.f32.xlu0 %v396_v60  ;;  %vm1654_vm6 = vcmp.eq.f32.partialorder %v5997_v0, 0.0  ;;  %v1662_v56 = vand.u32 2147483648, %v6005_v24  ;;  %v1781_v20 = vsel %vm190_vm5, %v1635_v44, 0.0  ;;  %v1783_v23 = vsel %vm190_vm5, %v1642_v7, 0.0 }
 0x321   : > { %v2779_v31 = vmul.f32 %v5902_v62, %v5821_v26  ;;  %v1656_v27 = vsel %vm1654_vm6, %v1655_v63, %v1653_v52  ;;  %vm1661_vm4 = vcmp.eq.f32.partialorder %v6005_v24, 0.0  ;;  %v1782_v37 = vadd.f32 %v1781_v20, %v1780_v30 }
 0x322   : > { %422 = vadd.xlane.f32.xlu1 %v421_v48  ;;  %v1663_v5 = vsel %vm1661_vm4, %v1662_v56, %v1660_v57  ;;  %v1785_v28 = vsel %vm190_vm5, %v1649_v43, 0.0  ;;  %v2763_v0 = vsel %vm2761_vm14, %v2762_v6, %v5890_v2  ;;  %vm2780_vm7 = vcmp.eq.f32.partialorder %v5821_v26, inf }
 0x323   : > { %v1784_v44 = vadd.f32 %v1783_v23, %v1782_v37  ;;  %v2770_v62 = vsel %vm2768_vm0, %v2769_v1, %v5926_v49  ;;  %v2774_v24 = vsel %vm2773_vm15, %v5774_v14, %v5873_v41  ;;  %vm2775_vm8 = vcmp.eq.f32.partialorder %v5774_v14, 0.0 }
 0x324   : > { %vm2782_vm9 = vcmp.eq.f32.partialorder %v5821_v26, 0.0  ;;  %v2783_v18 = vand.u32 2147483648, %v5821_v26  ;;  %v3254_v6 = vadd.f32 %v5771_v8, %v5807_v13  ;;  %v3255_v2 = vsel %vm190_vm5, %v5832_v35, 0.0 }
 0x325   : > { %v1786_v9 = vadd.f32 %v1785_v28, %v1784_v44  ;;  %v2781_v50 = vsel %vm2780_vm7, %v5821_v26, %v2779_v31  ;;  %v3257_v1 = vsel %vm190_vm5, %v2763_v0, 0.0  ;;  %v3336_v49 = vlaneseq }
 0x326   : > { %v1787_v41 = vsel %vm190_vm5, %v1656_v27, 0.0  ;;  %v2777_v39 = vsel %vm2775_vm8, %v2776_v11, %v2774_v24  ;;  %v3256_v55 = vadd.f32 %v3255_v2, %v3254_v6  ;;  %v3259_v32 = vsel %vm190_vm5, %v2770_v62, 0.0 }
 0x327   : > { %v1788_v53 = vadd.f32 %v1787_v41, %v1786_v9  ;;  %v3337_v61 = vand.u32 127, %v3336_v49  ;;  %v1789_v8 = vsel %vm190_vm5, %v1663_v5, 0.0  ;;  %v2784_v13 = vsel %vm2782_vm9, %v2783_v18, %v2781_v50 }
 0x328   : > { %v3258_v35 = vadd.f32 %v3257_v1, %v3256_v55  ;;  %v3261_v26 = vsel %vm190_vm5, %v2777_v39, 0.0  ;;  %v3263_v51 = vsel %vm190_vm5, %v2784_v13, 0.0  ;;  %v6276_v46 = vmov 0.0  }
 0x329   : > { %v1790_v4 = vadd.f32 %v1789_v8, %v1788_v53  ;;  %vm3339_vm10 = vcmp.ge.s32.totalorder %v3337_v61, 20  ;;  %vm3340_vm11 = vcmp.lt.s32.totalorder %v3337_v61, 32  ;;  %vm3338_vm12 = vcmp.lt.s32.totalorder %v3337_v61, 12 }
 0x32a   : > { %v3260_v21 = vadd.f32 %v3259_v32, %v3258_v35  ;;  %vm3341_vm13 = vmand %vm3339_vm10, %vm3340_vm11  ;;  %vm3343_vm14 = vcmp.ge.s32.totalorder %v3337_v61, 40  ;;  %vm3344_vm15 = vcmp.lt.s32.totalorder %v3337_v61, 52  ;;  %vm3347_vm2 = vcmp.ge.s32.totalorder %v3337_v61, 60 }
 0x32b   : > { %v1791_v38 = vrot.slane %v1790_v4, 4  ;;  %vm3342_vm0 = vmor %vm3338_vm12, %vm3341_vm13  ;;  %vm3348_vm3 = vcmp.lt.s32.totalorder %v3337_v61, 72  ;;  %vm3354_vm7 = vcmask 647168  }
 0x32c   : > { %v3262_v14 = vadd.f32 %v3261_v26, %v3260_v21  ;;  %vm3345_vm1 = vmand %vm3343_vm14, %vm3344_vm15 }
 0x32d   : > { %v1792_v11 = vadd.f32 %v1791_v38, %v1790_v4  ;;  %vm3346_vm6 = vmor %vm3342_vm0, %vm3345_vm1 }
 0x32e   : > { %v3264_v12 = vadd.f32 %v3263_v51, %v3262_v14  ;;  %vm3349_vm4 = vmand %vm3347_vm2, %vm3348_vm3 }
 0x32f   : > { %v1793_v10 = vrot.slane %v1792_v11, 2  ;;  %vm3350_vm5 = vmor %vm3346_vm6, %vm3349_vm4 }
 0x330   : > { %v3329_v29 = vrot.slane %v3264_v12, 4  ;;  %v3600_v54 = vsel %vm3350_vm5, 1.0, %v6276_v46 }
 0x331   : > { %v1794_v58 = vadd.f32 %v1793_v10, %v1792_v11 }
 0x332   : > { %v3330_v16 = vadd.f32 %v3329_v29, %v3264_v12 }
 0x333   : > { %v1795_v40 = vrot.slane %v1794_v58, 1 }
 0x334   : > { %v3331_v36 = vrot.slane %v3330_v16, 2 }
 0x335   : > { %v1796_v47 = vadd.f32 %v1795_v40, %v1794_v58 }
 0x336   : > { %v3332_v3 = vadd.f32 %v3331_v36, %v3330_v16 }
 0x338   : > { %v3333_v33 = vrot.slane %v3332_v3, 1 }
 0x33a   : > { %v3334_v19 = vadd.f32 %v3333_v33, %v3332_v3 }
 0x33c   : > { %v3335_v42 = vadd.f32 %v3334_v19, %v1796_v47 }
 0x33e   : > { %v3353_v15 = vmul.f32 %v3600_v54, %v3335_v42 }
 0x340   : > { %v3355_v59 = vsel %vm3354_vm7, %v3353_v15, 0.0 }
 0x341   : > { %3356 = vadd.xlane.f32.xlu0 %v3355_v59 }
 0x345   : > { %v3797_v45 = vpop.f32.mrb[32].mxu1 }
 0x346   : > { %v2306_v34 = vpop.f32.mrb[33].mxu1 }
 0x347   : > { %v3798_v22 = vpop.f32.mrb[34].mxu1 }
 0x348   : > { %v2309_v17 = vpop.f32.mrb[35].mxu1 }
 0x351   : > { %v3801_v7 = vpop.f32.mrb[36].mxu1 }
 0x352   : > { %v2322_v52 = vpop.f32.mrb[37].mxu1 }
 0x353   : > { %v3802_v25 = vpop.f32.mrb[38].mxu1 }
 0x354   : > { %v2325_v60 = vpop.f32.mrb[39].mxu1 }
 0x35c   : > { %v3805_v48 = vpop.f32.mrb[40].mxu1 }
 0x35d   : > { %v2338_v63 = vpop.f32.mrb[41].mxu1 }
 0x35e   : > { %v3806_v43 = vpop.f32.mrb[42].mxu1 }
 0x35f   : > { %v2341_v57 = vpop.f32.mrb[43].mxu1 }
 0x364   : > { %v3809_v30 = vpop.f32.mrb[44].mxu1 }
 0x365   : > { %v2354_v56 = vpop.f32.mrb[45].mxu1 }
 0x366   : > { %v3810_v20 = vpop.f32.mrb[46].mxu1 }
 0x367   : > { %v2357_v23 = vpop.f32.mrb[47].mxu1 }
 0x36c   : > { %v3813_v31 = vpop.f32.mrb[48].mxu1 }
 0x36d   : > { %v2370_v27 = vpop.f32.mrb[49].mxu1 }
 0x36e   : > { %v3814_v37 = vpop.f32.mrb[50].mxu1 }
 0x36f   : > { %v2373_v5 = vpop.f32.mrb[51].mxu1 }
 0x374   : > { %v3817_v28 = vpop.f32.mrb[52].mxu1 }
 0x375   : > { %v2386_v0 = vpop.f32.mrb[53].mxu1 }
 0x376   : > { %v3818_v44 = vpop.f32.mrb[54].mxu1 }
 0x377   : > { %v2389_v62 = vpop.f32.mrb[55].mxu1 }
 0x37c   : > { %v3821_v24 = vpop.f32.mrb[56].mxu1 }
 0x37d   : > { %v2402_v18 = vpop.f32.mrb[57].mxu1 }
 0x37e   : > { %v3822_v6 = vpop.f32.mrb[58].mxu1 }
 0x37f   : > { %v2405_v2 = vpop.f32.mrb[59].mxu1 }
 0x384   : > { %v3825_v9 = vpop.f32.mrb[60].mxu1 }
 0x385   : > { %v2418_v50 = vpop.f32.mrb[61].mxu1 }
 0x386   : > { %v3826_v1 = vpop.f32.mrb[62].mxu1 }
 0x387   : > { %v2421_v49 = vpop.f32.mrb[63].mxu1 }
 0x39e   : > { %v263_v41 = vpop.xlane.xlu0 %262 }
 0x39f   : > { %v264_v39 = vrot.slane %v263_v41, 4 }
 0x3a1   : > { %v265_v55 = vadd.f32 %v264_v39, %v263_v41 }
 0x3a2   : > { %v307_v53 = vpop.xlane.xlu0 %306 }
 0x3a3   : > { %v266_v32 = vrot.slane %v265_v55, 2  ;;  %v308_v61 = vrot.slane %v307_v53, 4 }
 0x3a5   : > { %v309_v8 = vadd.f32 %v308_v61, %v307_v53  ;;  %v267_v13 = vadd.f32 %v266_v32, %v265_v55 }
 0x3a7   : > { %v282_v35 = vpop.xlane.xlu1 %281  ;;  %v310_v4 = vrot.slane %v309_v8, 2  ;;  %v268_v21 = vrot.slane %v267_v13, 1 }
 0x3a8   : > { %v283_v26 = vrot.slane %v282_v35, 4 }
 0x3a9   : > { %v340_v38 = vpop.xlane.xlu0 %339  ;;  %v269_v11 = vadd.f32 %v268_v21, %v267_v13  ;;  %v311_v12 = vadd.f32 %v310_v4, %v309_v8 }
 0x3aa   : > { %v284_v51 = vadd.f32 %v283_v26, %v282_v35  ;;  %v341_v14 = vrot.slane %v340_v38, 4 }
 0x3ab   : > { %v365_v10 = vpop.xlane.xlu1 %364  ;;  %3828 = vpush %v269_v11  ;;  %v312_v36 = vrot.slane %v311_v12, 1 }
 0x3ac   : > { %v285_v29 = vrot.slane %v284_v51, 2  ;;  %v342_v58 = vadd.f32 %v341_v14, %v340_v38  ;;  %v366_v16 = vrot.slane %v365_v10, 4 }
 0x3ad   : > { %v398_v40 = vpop.xlane.xlu0 %397  ;;  %v313_v45 = vadd.f32 %v312_v36, %v311_v12 }
 0x3ae   : > { %v343_v3 = vrot.slane %v342_v58, 2  ;;  %v367_v47 = vadd.f32 %v366_v16, %v365_v10  ;;  %v399_v33 = vrot.slane %v398_v40, 4  ;;  %v286_v19 = vadd.f32 %v285_v29, %v284_v51 }
 0x3af   : > { %v423_v46 = vpop.xlane.xlu1 %422 }
 0x3b0   : > { %v368_v54 = vrot.slane %v367_v47, 2  ;;  %v400_v42 = vadd.f32 %v399_v33, %v398_v40  ;;  %v424_v15 = vrot.slane %v423_v46, 4  ;;  %v287_v59 = vrot.slane %v286_v19, 1 }
 0x3b1   : > { %v344_v34 = vadd.f32 %v343_v3, %v342_v58 }
 0x3b2   : > { %v401_v22 = vrot.slane %v400_v42, 2  ;;  %v425_v17 = vadd.f32 %v424_v15, %v423_v46  ;;  %v288_v7 = vadd.f32 %v287_v59, %v286_v19  ;;  %v369_v52 = vadd.f32 %v368_v54, %v367_v47 }
 0x3b3   : > { %v345_v25 = vrot.slane %v344_v34, 1 }
 0x3b4   : > { %v426_v60 = vrot.slane %v425_v17, 2  ;;  %3830 = vpush %v288_v7  ;;  %v370_v48 = vrot.slane %v369_v52, 1  ;;  %v402_v63 = vadd.f32 %v401_v22, %v400_v42 }
 0x3b5   : > { %3832 = vpush %v313_v45  ;;  %v346_v43 = vadd.f32 %v345_v25, %v344_v34 }
 0x3b6   : > { %v427_v57 = vadd.f32 %v426_v60, %v425_v17  ;;  %v371_v30 = vadd.f32 %v370_v48, %v369_v52  ;;  %v403_v56 = vrot.slane %v402_v63, 1 }
 0x3b7   : > { %3834 = vpush %v346_v43 }
 0x3b8   : > { %3836 = vpush %v371_v30  ;;  %v404_v20 = vadd.f32 %v403_v56, %v402_v63  ;;  %v428_v23 = vrot.slane %v427_v57, 1 }
 0x3ba   : > { %3838 = vpush %v404_v20  ;;  %v429_v31 = vadd.f32 %v428_v23, %v427_v57 }
 0x3bc   : > { %3840 = vpush %v429_v31 }
 0x3ce   : > { %v3357_v27 = vpop.xlane.xlu0 %3356 }
 0x3cf   : > { %v3358_v37 = vrot.slane %v3357_v27, 4 }
 0x3d1   : > { %v3359_v5 = vadd.f32 %v3358_v37, %v3357_v27 }
 0x3d3   : > { %v3360_v28 = vrot.slane %v3359_v5, 2 }
 0x3d5   : > { %v3361_v0 = vadd.f32 %v3360_v28, %v3359_v5 }
 0x3d7   : > { %v3362_v44 = vrot.slane %v3361_v0, 1 }
 0x3d9   : > { %v3363_v62 = vadd.f32 %v3362_v44, %v3361_v0 }
 0x3db   : > { %3842 = vpush %v3363_v62 }
 0x3dc   : > { %s3829_s28 = spop %3828 }
 0x3dd   : > { %s271_s20 = smul.f32 0.00390625, %s3829_s28  ;;  %s3461_s28 = sshll.u32 %s176_s10, 3 }
 0x3de   : > { %s178_s13 = scalar_lea.vmem [#allocation4], %s3461_s28 }
 0x3e5   : > { %s3831_s4 = spop %3830 }
 0x3e6   : > { %s3833_s17 = spop %3832  ;;  %s290_s24 = smul.f32 0.00390625, %s3831_s4 }
 0x3e7   : > { %s315_s27 = smul.f32 0.00390625, %s3833_s17 }
 0x3e8   : > { %s3835_s19 = spop %3834  ;;  %s327_s30 = smul.f32 0.001, %s290_s24 }
 0x3e9   : > { %s348_s25 = smul.f32 0.00390625, %s3835_s19  ;;  %s3837_s26 = spop %3836 }
 0x3ea   : > { %s331_s5 = sadd.f32 %s290_s24, %s271_s20  ;;  %s373_s9 = smul.f32 0.00390625, %s3837_s26 }
 0x3eb   : > { %s3839_s29 = spop %3838  ;;  %s385_s6 = smul.f32 0.001, %s348_s25 }
 0x3ec   : > { %s406_s7 = smul.f32 0.00390625, %s3839_s29  ;;  %s389_s11 = sadd.f32 %s348_s25, %s331_s5 }
 0x3ed   : > { %s3841_s8 = spop %3840  ;;  %s328_s1 = sadd.f32 %s327_s30, %s315_s27 }
 0x3ee   : > { %s431_s0 = smul.f32 0.00390625, %s3841_s8  ;;  %s386_s21 = sadd.f32 %s385_s6, %s373_s9 }
 0x3ef   : > { %s443_s2 = smul.f32 0.001, %s406_s7  ;;  %s447_s14 = sadd.f32 %s406_s7, %s389_s11 }
 0x3f0   : > { %s329_s4 = smul.f32 0.29891, %s328_s1  ;;  %s3602_s26 = sshll.u32 %s4275_s16, 7 }
 0x3f1   : > { %s444_s19 = sadd.f32 %s443_s2, %s431_s0  ;;  %s387_s18 = smul.f32 0.58661, %s386_s21 }
 0x3f2   : > { %s3366_s17 = smul.f32 0.00025, %s447_s14  ;;  %s3386_s25 = sshll.u32 %s178_s13, 4  ;;  %s6164_s25 = int_to_ptr.vmem [resolvable:$true] %s3386_s25 }
 0x3f3   : > { %s445_s23 = smul.f32 0.11448, %s444_s19  ;;  %s388_s20 = sadd.f32 %s387_s18, %s329_s4 }
 0x3f4   : > { %s6162_s7 = scalar_lea.hbm %s6207_s3, %s3602_s26  ;;  %s3373_s0 = scalar_lea.sflag [#allocation5], %s176_s10 }
 0x3f5   : > { %s446_s5 = sadd.f32 %s445_s23, %s388_s20  ;;  %s4160_s1 = scalar_lea.vmem %s6164_s25, 128 }
 0x3f6   : > { %p4161_p11 = scmp.ne.s32.totalorder %s6164_s25, %s4160_s1  ;;  %s4233_s2 = smov [#allocation4]  }
 0x3f8   : > { %p4162_p12 = pnand %p4161_p11, %p4292_p5 }
 0x3fa   : > { %p4163_p13 = pneg %p4162_p12 }
 0x40c   : > { %s3843_s12 = spop %3842 }
 0x40d   : > { %s3365_s24 = smul.f32 2.7126736e-05, %s3843_s12  ;;  %s4164_s12 = sshll.u32 %s4233_s2, 4  ;;  %s4165_s12 = int_to_ptr.vmem [resolvable:$false] %s4164_s12 }
 0x40e   : > { %s4166_s14 = scalar_lea.vmem %s4165_s12, 256  ;;  %p4167_p0 = scmp.lt.s32.totalorder %s6164_s25, %s4165_s12 }
 0x40f   : > { %s3367_s29 = sadd.f32 %s3366_s17, %s3365_s24  ;;  %p4168_p1 = scmp.lt.s32.totalorder %s4166_s14, %s4160_s1 }
 0x411   : > { %s3368_s8 = smul.f32 0.4, %s3367_s29  ;;  %p4169_p2 = por %p4168_p1, %p4167_p0 }
 0x413   : > { %s3369_s27 = sadd.f32 %s3368_s8, %s446_s5  ;;  %p4170_p3 = pnand %p4169_p2, %p4163_p13 }
 0x415   : > { %v3370_v24 = vstv %s3369_s27 }
 0x416   : > { %3371 = vst [vmem:[%s178_s13] sm:$0xff] %v3370_v24 }
 0x417   : > { %4173 = shalt.err (!%p4170_p3)
}
 0x418   : > { %s4174_s13 = scalar_lea.hbm %s6162_s7, 128  ;;  %s4178_s21 = scalar_lea.hbm %s6207_s3, 256 }
 0x419   : > { %p4175_p4 = scmp.ne.s32.totalorder %s6162_s7, %s4174_s13  ;;  %p4179_p9 = scmp.lt.u32.totalorder %s6162_s7, %s6207_s3 }
 0x41a   : > { %p4180_p10 = scmp.lt.u32.totalorder %s4178_s21, %s4174_s13  ;;  %p4182_p12 = scmp.lt.u32.totalorder %s4174_s13, %s6162_s7 }
 0x41b   : > { %p4176_p7 = pnand %p4175_p4, %p4292_p5 }
 0x41c   : > { %p4181_p11 = por %p4180_p10, %p4179_p9 }
 0x41d   : > { %p4177_p8 = pneg %p4176_p7 }
 0x41e   : > { %p4183_p13 = por %p4182_p12, %p4181_p11 }
 0x420   : > { %p4184_p0 = pnand %p4183_p13, %p4177_p8 }
 0x422   : > { %4187 = shalt.err (!%p4184_p0)
}
 0x423   : > { %3844 = dma.vmem_to_hbm [thread:$0]  (%p4292_p5), %s6164_s25, 128, %s6162_s7, %s3373_s0  }
 0x424 PF: > { %s6277_s10 = sld [smem:[#allocation7_spill]]  ;;  %p3850_p1 = scmp.ge.s32.totalorder %s4222_s15, 2 }
 0x426   : > { %p3847_p2 = pnand %p3850_p1, %p4296_p6 }
 0x42a   : > { %s3398_s28 = sand.u32 1, %s6277_s10  }
 0x42b   : > { %s3399_s4 = scalar_lea.sflag [#allocation5], %s3398_s28 }
 0x42c   : > { %4205 = dma.done.wait (!%p3847_p2), %s3399_s4, 128  }
 0x42d   : > { %4207 = vsyncadd (!%p3847_p2), %s3399_s4, 4294967168  ;;  %s6279_s15 = sld [smem:[#allocation10_spill]]  ;;  %s6280_s12 = sld [smem:[#allocation8_spill]] }
 0x42e   : > { %s6281_s13 = sld [smem:[#allocation9_spill]]  ;;  %s6282_s14 = sld [smem:[#allocation11_spill]] }
 0x433   : > { %p13_p3 = scmp.ge.s32.totalorder %s6279_s15, 4  }
 0x435   :  { %15 = sbr.rel (!%p13_p3) target bundleno = 7 (0x7), region = 74 }
 0x43c   :  { %3404 = vsyncpa [#allocation5], 1 }
 0x43d   :  { %3406 = vsyncpa [#allocation5 + $0x1], 1 }

</bundles_post_ra>
